<compile_context>
chip_gen: v6e
topology: v6e:2x2x1
jax: 0.10.0
libtpu: 0.0.40
codegen_flags: <defaults>
</compile_context>

<pallas_src>
import jax
import jax.numpy as jnp
from jax import lax
from jax.experimental import pallas as pl
from jax.experimental.pallas import tpu as pltpu

LANE = 128


def basic_block_kernel(x_ref, w1_ref, w2_ref, b1_ref, b2_ref, out_ref,
                       xpad_sc, mid_sc):
    """One batch element per grid step.

    x_ref   : (1, H, W, C)   input NHWC, channels padded to LANE, f32
    w1_ref  : (3, 3*C, P)    conv1 weights * bn1 scale, bf16 (dh, dw-major K)
    w2_ref  : (3, 3*P, P)    conv2 weights * bn2 scale, bf16
    b*_ref  : (1, P)         folded BN bias, f32
    out_ref : (1, H, W, P)   output, f32
    xpad_sc : (H+2, W+2, C)  f32 scratch: zero border + x interior
    mid_sc  : (H+2, W+2, P)  f32 scratch: zero border + relu(bn1(conv1)) interior
    """
    H, W, P = out_ref.shape[1], out_ref.shape[2], out_ref.shape[3]
    C = x_ref.shape[3]

    # Zero the padded scratches once.  Borders never change afterwards and the
    # interiors are fully overwritten every step.  (Scratch persists across
    # grid steps; requires the batch axis to be traversed sequentially.)
    @pl.when(pl.program_id(0) == 0)
    def _init():
        xpad_sc[...] = jnp.zeros_like(xpad_sc)
        mid_sc[...] = jnp.zeros_like(mid_sc)

    x = x_ref[0]                                           # (H, W, C) f32
    xpad_sc[1:1 + H, 1:1 + W, :] = x

    def conv3x3_grouped(src_ref, w_ref, cin):
        """3x3 SAME conv as 3 matmuls with K = 3*cin (dw taps grouped on K)."""
        src = src_ref[...]                                 # (H+2, W+2, cin) f32
        acc = None
        for dh in range(3):
            rows = src[dh:dh + H]                          # (H, W+2, cin)
            patch = jnp.concatenate(
                [rows[:, 0:W, :], rows[:, 1:1 + W, :], rows[:, 2:2 + W, :]],
                axis=-1).reshape(H * W, 3 * cin)           # (H*W, 3*cin) f32
            part = jnp.dot(patch.astype(jnp.bfloat16), w_ref[dh],
                           preferred_element_type=jnp.float32)
            acc = part if acc is None else acc + part      # init from first dot
        return acc                                         # (H*W, P) f32

    # conv1 (bn1 scale pre-folded into weights) + bias + relu
    out1 = jnp.maximum(conv3x3_grouped(xpad_sc, w1_ref, C) + b1_ref[0], 0.0)
    mid_sc[1:1 + H, 1:1 + W, :] = out1.reshape(H, W, P)

    # conv2 (bn2 scale pre-folded) + bias + residual + relu
    acc2 = conv3x3_grouped(mid_sc, w2_ref, P)
    residual = x.reshape(H * W, C)                         # C == P (no downsample)
    out = jnp.maximum(acc2 + b2_ref[0] + residual, 0.0)
    out_ref[0] = out.reshape(H, W, P).astype(out_ref.dtype)


def basic_block_pallas(x_nchw, w1, w2, scale1, bias1, scale2, bias2):
    """x_nchw: (N, C, H, W) f32 (PyTorch layout); w*: (3,3,Cin,Cout) HWIO."""
    N, C, H, W = x_nchw.shape
    P = w1.shape[-1]
    assert C == P, "stride=1 / downsample=None requires inplanes == planes"

    Cp = ((C + LANE - 1) // LANE) * LANE                   # lane-dense channels
    Hp, Wp = H + 2, W + 2

    # NCHW -> NHWC; zero-pad channels to Cp (padded channels stay exactly zero
    # through conv / BN bias / relu / residual and are sliced off at the end).
    x = jnp.transpose(x_nchw, (0, 2, 3, 1))
    x = jnp.pad(x, ((0, 0), (0, 0), (0, 0), (0, Cp - C)))

    # Fold BN scale into the conv weights host-side (constants, amortized),
    # pad channels, reshape each dh row into a (3*Cin, Cout) slab whose row
    # order (dw-major, then cin) matches the kernel's patch concat order,
    # and cast to bf16 for the MXU.
    def prep_w(w, scale):
        wf = w * scale.reshape(1, 1, 1, -1)
        wf = jnp.pad(wf, ((0, 0), (0, 0),
                          (0, Cp - w.shape[2]), (0, Cp - w.shape[3])))
        return wf.reshape(3, 3 * Cp, Cp).astype(jnp.bfloat16)

    w1s = prep_w(w1, scale1)
    w2s = prep_w(w2, scale2)
    b1p = jnp.pad(bias1, (0, Cp - P)).reshape(1, Cp).astype(jnp.float32)
    b2p = jnp.pad(bias2, (0, Cp - P)).reshape(1, Cp).astype(jnp.float32)

    # NOTE: the weight/bias blocks are grid-invariant; single-buffering them
    # would shave a little VMEM, but the default pipelining is kept here.
    out_nhwc = pl.pallas_call(
        basic_block_kernel,
        out_shape=jax.ShapeDtypeStruct((N, H, W, Cp), jnp.float32),
        grid_spec=pltpu.PrefetchScalarGridSpec(
            num_scalar_prefetch=0,
            grid=(N,),
            in_specs=[
                pl.BlockSpec((1, H, W, Cp), lambda n: (n, 0, 0, 0)),
                pl.BlockSpec((3, 3 * Cp, Cp), lambda n: (0, 0, 0)),
                pl.BlockSpec((3, 3 * Cp, Cp), lambda n: (0, 0, 0)),
                pl.BlockSpec((1, Cp), lambda n: (0, 0)),
                pl.BlockSpec((1, Cp), lambda n: (0, 0)),
            ],
            out_specs=pl.BlockSpec((1, H, W, Cp), lambda n: (n, 0, 0, 0)),
            scratch_shapes=[
                pltpu.VMEM((Hp, Wp, Cp), jnp.float32),     # padded x
                pltpu.VMEM((Hp, Wp, Cp), jnp.float32),     # padded mid act
            ],
        ),
        # "arbitrary": the zero-once scratch-border trick requires a single
        # sequential traversal of the batch axis (scratch persistence).
        compiler_params=pltpu.CompilerParams(
            dimension_semantics=("arbitrary",)),
    )(x, w1s, w2s, b1p, b2p)

    out = out_nhwc[..., :P]                                # drop padded channels
    return jnp.transpose(out, (0, 3, 1, 2))                # NHWC -> NCHW


def reference_forward(x_nchw, w1, w2, s1, b1, s2, b2):
    """Pure-JAX reference (eval-mode BN folded into scale/bias), f32."""
    x = jnp.transpose(x_nchw, (0, 2, 3, 1))
    dn = ("NHWC", "HWIO", "NHWC")
    y = lax.conv_general_dilated(x, w1, (1, 1), "SAME", dimension_numbers=dn)
    y = jnp.maximum(y * s1 + b1, 0.0)
    z = lax.conv_general_dilated(y, w2, (1, 1), "SAME", dimension_numbers=dn)
    z = jnp.maximum(z * s2 + b2 + x, 0.0)
    return jnp.transpose(z, (0, 3, 1, 2))


if __name__ == "__main__":
    # Small shapes consistent with BasicBlock(inplanes=4, planes=4, stride=1).
    N, C, H, W = 2, 4, 16, 16
    P = C

    key = jax.random.PRNGKey(0)
    kx, kw1, kw2, kg1, kb1, km1, kv1, kg2, kb2, km2, kv2 = jax.random.split(key, 11)

    x = jax.random.normal(kx, (N, C, H, W), jnp.float32)

    # Conv weights in HWIO (synthetic values).
    w1 = jax.random.normal(kw1, (3, 3, C, P), jnp.float32) * 0.1
    w2 = jax.random.normal(kw2, (3, 3, P, P), jnp.float32) * 0.1

    # BatchNorm parameters (eval mode: running stats folded into scale/bias).
    eps = 1e-5
    gamma1 = 0.5 + jax.random.uniform(kg1, (P,), jnp.float32)
    beta1 = jax.random.normal(kb1, (P,), jnp.float32) * 0.1
    rmean1 = jax.random.normal(km1, (P,), jnp.float32) * 0.1
    rvar1 = 0.5 + jax.random.uniform(kv1, (P,), jnp.float32)
    gamma2 = 0.5 + jax.random.uniform(kg2, (P,), jnp.float32)
    beta2 = jax.random.normal(kb2, (P,), jnp.float32) * 0.1
    rmean2 = jax.random.normal(km2, (P,), jnp.float32) * 0.1
    rvar2 = 0.5 + jax.random.uniform(kv2, (P,), jnp.float32)

    scale1 = gamma1 / jnp.sqrt(rvar1 + eps)
    bias1 = beta1 - rmean1 * scale1
    scale2 = gamma2 / jnp.sqrt(rvar2 + eps)
    bias2 = beta2 - rmean2 * scale2

    out = basic_block_pallas(x, w1, w2, scale1, bias1, scale2, bias2)
    out = jax.block_until_ready(out)

    ref = reference_forward(x, w1, w2, scale1, bias1, scale2, bias2)
    assert out.shape == (N, P, H, W)
    # bf16 MXU operands (f32 accumulation / element-wise) -> loosened tolerance.
    assert jnp.allclose(out, ref, rtol=2e-2, atol=3e-2), "mismatch vs reference"

    print("KERNEL_OK")
</pallas_src>

<mosaic_0001>
module attributes {stable_mosaic.version = 11 : i64} {
  func.func @basic_block_kernel(%arg0: i32, %arg1: memref<1x16x16x128xf32, #tpu.memory_space<vmem>>, %arg2: memref<3x384x128xbf16, #tpu.memory_space<vmem>>, %arg3: memref<3x384x128xbf16, #tpu.memory_space<vmem>>, %arg4: memref<1x128xf32, #tpu.memory_space<vmem>>, %arg5: memref<1x128xf32, #tpu.memory_space<vmem>>, %arg6: memref<1x16x16x128xf32, #tpu.memory_space<vmem>>, %arg7: memref<18x18x128xf32, #tpu.memory_space<vmem>>, %arg8: memref<18x18x128xf32, #tpu.memory_space<vmem>>) attributes {dimension_semantics = [#tpu.dimension_semantics<arbitrary>], iteration_bounds = array<i64: 2>, scalar_prefetch = 0 : i64, scratch_operands = 2 : i64, tpu.core_type = #tpu.core_type<tc>, window_params = [{transform_indices = @transform_0, window_bounds = array<i64: 1, 16, 16, 128>}, {pipeline_mode = #tpu.pipeline_mode<synchronous>, transform_indices = @transform_1, window_bounds = array<i64: 3, 384, 128>}, {pipeline_mode = #tpu.pipeline_mode<synchronous>, transform_indices = @transform_2, window_bounds = array<i64: 3, 384, 128>}, {pipeline_mode = #tpu.pipeline_mode<synchronous>, transform_indices = @transform_3, window_bounds = array<i64: 1, 128>}, {pipeline_mode = #tpu.pipeline_mode<synchronous>, transform_indices = @transform_4, window_bounds = array<i64: 1, 128>}, {transform_indices = @transform_5, window_bounds = array<i64: 1, 16, 16, 128>}]} {
    %c0_i32 = arith.constant 0 : i32
    %0 = arith.cmpi eq, %arg0, %c0_i32 : i32
    %1 = arith.extui %0 : i1 to i32
    %c0_i32_0 = arith.constant 0 : i32
    %2 = arith.cmpi ne, %1, %c0_i32_0 : i32
    scf.if %2 {
      %cst_47 = arith.constant 0.000000e+00 : f32
      %94 = vector.broadcast %cst_47 : f32 to vector<18x18x128xf32>
      %c0_48 = arith.constant 0 : index
      %c0_49 = arith.constant 0 : index
      %c0_50 = arith.constant 0 : index
      %95 = vector.load %arg7[%c0_48, %c0_49, %c0_50] : memref<18x18x128xf32, #tpu.memory_space<vmem>>, vector<18x18x128xf32>
      tpu.vector_store %arg7[%c0_48, %c0_49, %c0_50], %94 {strides = array<i32>} : memref<18x18x128xf32, #tpu.memory_space<vmem>>, vector<18x18x128xf32>,
      %cst_51 = arith.constant 0.000000e+00 : f32
      %96 = vector.broadcast %cst_51 : f32 to vector<18x18x128xf32>
      %c0_52 = arith.constant 0 : index
      %c0_53 = arith.constant 0 : index
      %c0_54 = arith.constant 0 : index
      %97 = vector.load %arg8[%c0_52, %c0_53, %c0_54] : memref<18x18x128xf32, #tpu.memory_space<vmem>>, vector<18x18x128xf32>
      tpu.vector_store %arg8[%c0_52, %c0_53, %c0_54], %96 {strides = array<i32>} : memref<18x18x128xf32, #tpu.memory_space<vmem>>, vector<18x18x128xf32>,
    } else {
    }
    %c0 = arith.constant 0 : index
    %c0_1 = arith.constant 0 : index
    %c0_2 = arith.constant 0 : index
    %c0_3 = arith.constant 0 : index
    %3 = vector.load %arg1[%c0, %c0_1, %c0_2, %c0_3] : memref<1x16x16x128xf32, #tpu.memory_space<vmem>>, vector<1x16x16x128xf32>
    %4 = vector.shape_cast %3 : vector<1x16x16x128xf32> to vector<16x16x128xf32>
    %c1 = arith.constant 1 : index
    %c1_4 = arith.constant 1 : index
    %c0_5 = arith.constant 0 : index
    %5 = vector.load %arg7[%c1, %c1_4, %c0_5] : memref<18x18x128xf32, #tpu.memory_space<vmem>>, vector<16x16x128xf32>
    tpu.vector_store %arg7[%c1, %c1_4, %c0_5], %4 {strides = array<i32>} : memref<18x18x128xf32, #tpu.memory_space<vmem>>, vector<16x16x128xf32>,
    %c0_6 = arith.constant 0 : index
    %c0_7 = arith.constant 0 : index
    %c0_8 = arith.constant 0 : index
    %6 = vector.load %arg7[%c0_6, %c0_7, %c0_8] : memref<18x18x128xf32, #tpu.memory_space<vmem>>, vector<18x18x128xf32>
    %7 = vector.extract_strided_slice %6 {offsets = [0, 0, 0], sizes = [16, 18, 128], strides = [1, 1, 1]} : vector<18x18x128xf32> to vector<16x18x128xf32>
    %8 = vector.extract_strided_slice %7 {offsets = [0, 0, 0], sizes = [16, 16, 128], strides = [1, 1, 1]} : vector<16x18x128xf32> to vector<16x16x128xf32>
    %9 = vector.extract_strided_slice %7 {offsets = [0, 1, 0], sizes = [16, 16, 128], strides = [1, 1, 1]} : vector<16x18x128xf32> to vector<16x16x128xf32>
    %10 = vector.extract_strided_slice %7 {offsets = [0, 2, 0], sizes = [16, 16, 128], strides = [1, 1, 1]} : vector<16x18x128xf32> to vector<16x16x128xf32>
    %11 = tpu.concatenate %8, %9, %10 in 2 : vector<16x16x128xf32>, vector<16x16x128xf32>, vector<16x16x128xf32> -> vector<16x16x384xf32>
    %12 = vector.shape_cast %11 : vector<16x16x384xf32> to vector<256x384xf32>
    %13 = arith.truncf %12 : vector<256x384xf32> to vector<256x384xbf16>
    %c0_9 = arith.constant 0 : index
    %c0_10 = arith.constant 0 : index
    %c0_11 = arith.constant 0 : index
    %14 = vector.load %arg2[%c0_9, %c0_10, %c0_11] : memref<3x384x128xbf16, #tpu.memory_space<vmem>>, vector<1x384x128xbf16>
    %15 = vector.shape_cast %14 : vector<1x384x128xbf16> to vector<384x128xbf16>
    %cst = arith.constant dense<0.000000e+00> : vector<256x128xf32>
    %16 = tpu.matmul %13, %15, %cst {dimension_numbers = #tpu.dot_dimension_numbers<[1], [0], [0], [1], [0, 0, 1, 1], [], []>} : vector<256x384xbf16>, vector<384x128xbf16>, vector<256x128xf32> -> vector<256x128xf32>
    %17 = vector.extract_strided_slice %6 {offsets = [1, 0, 0], sizes = [16, 18, 128], strides = [1, 1, 1]} : vector<18x18x128xf32> to vector<16x18x128xf32>
    %18 = vector.extract_strided_slice %17 {offsets = [0, 0, 0], sizes = [16, 16, 128], strides = [1, 1, 1]} : vector<16x18x128xf32> to vector<16x16x128xf32>
    %19 = vector.extract_strided_slice %17 {offsets = [0, 1, 0], sizes = [16, 16, 128], strides = [1, 1, 1]} : vector<16x18x128xf32> to vector<16x16x128xf32>
    %20 = vector.extract_strided_slice %17 {offsets = [0, 2, 0], sizes = [16, 16, 128], strides = [1, 1, 1]} : vector<16x18x128xf32> to vector<16x16x128xf32>
    %21 = tpu.concatenate %18, %19, %20 in 2 : vector<16x16x128xf32>, vector<16x16x128xf32>, vector<16x16x128xf32> -> vector<16x16x384xf32>
    %22 = vector.shape_cast %21 : vector<16x16x384xf32> to vector<256x384xf32>
    %23 = arith.truncf %22 : vector<256x384xf32> to vector<256x384xbf16>
    %c1_12 = arith.constant 1 : index
    %c0_13 = arith.constant 0 : index
    %c0_14 = arith.constant 0 : index
    %24 = vector.load %arg2[%c1_12, %c0_13, %c0_14] : memref<3x384x128xbf16, #tpu.memory_space<vmem>>, vector<1x384x128xbf16>
    %25 = vector.shape_cast %24 : vector<1x384x128xbf16> to vector<384x128xbf16>
    %cst_15 = arith.constant dense<0.000000e+00> : vector<256x128xf32>
    %26 = tpu.matmul %23, %25, %cst_15 {dimension_numbers = #tpu.dot_dimension_numbers<[1], [0], [0], [1], [0, 0, 1, 1], [], []>} : vector<256x384xbf16>, vector<384x128xbf16>, vector<256x128xf32> -> vector<256x128xf32>
    %27 = arith.addf %16, %26 : vector<256x128xf32>
    %28 = vector.extract_strided_slice %6 {offsets = [2, 0, 0], sizes = [16, 18, 128], strides = [1, 1, 1]} : vector<18x18x128xf32> to vector<16x18x128xf32>
    %29 = vector.extract_strided_slice %28 {offsets = [0, 0, 0], sizes = [16, 16, 128], strides = [1, 1, 1]} : vector<16x18x128xf32> to vector<16x16x128xf32>
    %30 = vector.extract_strided_slice %28 {offsets = [0, 1, 0], sizes = [16, 16, 128], strides = [1, 1, 1]} : vector<16x18x128xf32> to vector<16x16x128xf32>
    %31 = vector.extract_strided_slice %28 {offsets = [0, 2, 0], sizes = [16, 16, 128], strides = [1, 1, 1]} : vector<16x18x128xf32> to vector<16x16x128xf32>
    %32 = tpu.concatenate %29, %30, %31 in 2 : vector<16x16x128xf32>, vector<16x16x128xf32>, vector<16x16x128xf32> -> vector<16x16x384xf32>
    %33 = vector.shape_cast %32 : vector<16x16x384xf32> to vector<256x384xf32>
    %34 = arith.truncf %33 : vector<256x384xf32> to vector<256x384xbf16>
    %c2 = arith.constant 2 : index
    %c0_16 = arith.constant 0 : index
    %c0_17 = arith.constant 0 : index
    %35 = vector.load %arg2[%c2, %c0_16, %c0_17] : memref<3x384x128xbf16, #tpu.memory_space<vmem>>, vector<1x384x128xbf16>
    %36 = vector.shape_cast %35 : vector<1x384x128xbf16> to vector<384x128xbf16>
    %cst_18 = arith.constant dense<0.000000e+00> : vector<256x128xf32>
    %37 = tpu.matmul %34, %36, %cst_18 {dimension_numbers = #tpu.dot_dimension_numbers<[1], [0], [0], [1], [0, 0, 1, 1], [], []>} : vector<256x384xbf16>, vector<384x128xbf16>, vector<256x128xf32> -> vector<256x128xf32>
    %38 = arith.addf %27, %37 : vector<256x128xf32>
    %c0_19 = arith.constant 0 : index
    %c0_20 = arith.constant 0 : index
    %39 = vector.load %arg4[%c0_19, %c0_20] : memref<1x128xf32, #tpu.memory_space<vmem>>, vector<1x128xf32>
    %40 = vector.shape_cast %39 : vector<1x128xf32> to vector<128xf32>
    %41 = vector.shape_cast %40 : vector<128xf32> to vector<1x128xf32>
    %42 = vector.broadcast %41 : vector<1x128xf32> to vector<256x128xf32>
    %43 = arith.addf %38, %42 : vector<256x128xf32>
    %cst_21 = arith.constant 0.000000e+00 : f32
    %44 = vector.broadcast %cst_21 : f32 to vector<256x128xf32>
    %45 = arith.maximumf %43, %44 : vector<256x128xf32>
    %46 = vector.shape_cast %45 : vector<256x128xf32> to vector<16x16x128xf32>
    %c1_22 = arith.constant 1 : index
    %c1_23 = arith.constant 1 : index
    %c0_24 = arith.constant 0 : index
    %47 = vector.load %arg8[%c1_22, %c1_23, %c0_24] : memref<18x18x128xf32, #tpu.memory_space<vmem>>, vector<16x16x128xf32>
    tpu.vector_store %arg8[%c1_22, %c1_23, %c0_24], %46 {strides = array<i32>} : memref<18x18x128xf32, #tpu.memory_space<vmem>>, vector<16x16x128xf32>,
    %c0_25 = arith.constant 0 : index
    %c0_26 = arith.constant 0 : index
    %c0_27 = arith.constant 0 : index
    %48 = vector.load %arg8[%c0_25, %c0_26, %c0_27] : memref<18x18x128xf32, #tpu.memory_space<vmem>>, vector<18x18x128xf32>
    %49 = vector.extract_strided_slice %48 {offsets = [0, 0, 0], sizes = [16, 18, 128], strides = [1, 1, 1]} : vector<18x18x128xf32> to vector<16x18x128xf32>
    %50 = vector.extract_strided_slice %49 {offsets = [0, 0, 0], sizes = [16, 16, 128], strides = [1, 1, 1]} : vector<16x18x128xf32> to vector<16x16x128xf32>
    %51 = vector.extract_strided_slice %49 {offsets = [0, 1, 0], sizes = [16, 16, 128], strides = [1, 1, 1]} : vector<16x18x128xf32> to vector<16x16x128xf32>
    %52 = vector.extract_strided_slice %49 {offsets = [0, 2, 0], sizes = [16, 16, 128], strides = [1, 1, 1]} : vector<16x18x128xf32> to vector<16x16x128xf32>
    %53 = tpu.concatenate %50, %51, %52 in 2 : vector<16x16x128xf32>, vector<16x16x128xf32>, vector<16x16x128xf32> -> vector<16x16x384xf32>
    %54 = vector.shape_cast %53 : vector<16x16x384xf32> to vector<256x384xf32>
    %55 = arith.truncf %54 : vector<256x384xf32> to vector<256x384xbf16>
    %c0_28 = arith.constant 0 : index
    %c0_29 = arith.constant 0 : index
    %c0_30 = arith.constant 0 : index
    %56 = vector.load %arg3[%c0_28, %c0_29, %c0_30] : memref<3x384x128xbf16, #tpu.memory_space<vmem>>, vector<1x384x128xbf16>
    %57 = vector.shape_cast %56 : vector<1x384x128xbf16> to vector<384x128xbf16>
    %cst_31 = arith.constant dense<0.000000e+00> : vector<256x128xf32>
    %58 = tpu.matmul %55, %57, %cst_31 {dimension_numbers = #tpu.dot_dimension_numbers<[1], [0], [0], [1], [0, 0, 1, 1], [], []>} : vector<256x384xbf16>, vector<384x128xbf16>, vector<256x128xf32> -> vector<256x128xf32>
    %59 = vector.extract_strided_slice %48 {offsets = [1, 0, 0], sizes = [16, 18, 128], strides = [1, 1, 1]} : vector<18x18x128xf32> to vector<16x18x128xf32>
    %60 = vector.extract_strided_slice %59 {offsets = [0, 0, 0], sizes = [16, 16, 128], strides = [1, 1, 1]} : vector<16x18x128xf32> to vector<16x16x128xf32>
    %61 = vector.extract_strided_slice %59 {offsets = [0, 1, 0], sizes = [16, 16, 128], strides = [1, 1, 1]} : vector<16x18x128xf32> to vector<16x16x128xf32>
    %62 = vector.extract_strided_slice %59 {offsets = [0, 2, 0], sizes = [16, 16, 128], strides = [1, 1, 1]} : vector<16x18x128xf32> to vector<16x16x128xf32>
    %63 = tpu.concatenate %60, %61, %62 in 2 : vector<16x16x128xf32>, vector<16x16x128xf32>, vector<16x16x128xf32> -> vector<16x16x384xf32>
    %64 = vector.shape_cast %63 : vector<16x16x384xf32> to vector<256x384xf32>
    %65 = arith.truncf %64 : vector<256x384xf32> to vector<256x384xbf16>
    %c1_32 = arith.constant 1 : index
    %c0_33 = arith.constant 0 : index
    %c0_34 = arith.constant 0 : index
    %66 = vector.load %arg3[%c1_32, %c0_33, %c0_34] : memref<3x384x128xbf16, #tpu.memory_space<vmem>>, vector<1x384x128xbf16>
    %67 = vector.shape_cast %66 : vector<1x384x128xbf16> to vector<384x128xbf16>
    %cst_35 = arith.constant dense<0.000000e+00> : vector<256x128xf32>
    %68 = tpu.matmul %65, %67, %cst_35 {dimension_numbers = #tpu.dot_dimension_numbers<[1], [0], [0], [1], [0, 0, 1, 1], [], []>} : vector<256x384xbf16>, vector<384x128xbf16>, vector<256x128xf32> -> vector<256x128xf32>
    %69 = arith.addf %58, %68 : vector<256x128xf32>
    %70 = vector.extract_strided_slice %48 {offsets = [2, 0, 0], sizes = [16, 18, 128], strides = [1, 1, 1]} : vector<18x18x128xf32> to vector<16x18x128xf32>
    %71 = vector.extract_strided_slice %70 {offsets = [0, 0, 0], sizes = [16, 16, 128], strides = [1, 1, 1]} : vector<16x18x128xf32> to vector<16x16x128xf32>
    %72 = vector.extract_strided_slice %70 {offsets = [0, 1, 0], sizes = [16, 16, 128], strides = [1, 1, 1]} : vector<16x18x128xf32> to vector<16x16x128xf32>
    %73 = vector.extract_strided_slice %70 {offsets = [0, 2, 0], sizes = [16, 16, 128], strides = [1, 1, 1]} : vector<16x18x128xf32> to vector<16x16x128xf32>
    %74 = tpu.concatenate %71, %72, %73 in 2 : vector<16x16x128xf32>, vector<16x16x128xf32>, vector<16x16x128xf32> -> vector<16x16x384xf32>
    %75 = vector.shape_cast %74 : vector<16x16x384xf32> to vector<256x384xf32>
    %76 = arith.truncf %75 : vector<256x384xf32> to vector<256x384xbf16>
    %c2_36 = arith.constant 2 : index
    %c0_37 = arith.constant 0 : index
    %c0_38 = arith.constant 0 : index
    %77 = vector.load %arg3[%c2_36, %c0_37, %c0_38] : memref<3x384x128xbf16, #tpu.memory_space<vmem>>, vector<1x384x128xbf16>
    %78 = vector.shape_cast %77 : vector<1x384x128xbf16> to vector<384x128xbf16>
    %cst_39 = arith.constant dense<0.000000e+00> : vector<256x128xf32>
    %79 = tpu.matmul %76, %78, %cst_39 {dimension_numbers = #tpu.dot_dimension_numbers<[1], [0], [0], [1], [0, 0, 1, 1], [], []>} : vector<256x384xbf16>, vector<384x128xbf16>, vector<256x128xf32> -> vector<256x128xf32>
    %80 = arith.addf %69, %79 : vector<256x128xf32>
    %81 = vector.shape_cast %4 : vector<16x16x128xf32> to vector<256x128xf32>
    %c0_40 = arith.constant 0 : index
    %c0_41 = arith.constant 0 : index
    %82 = vector.load %arg5[%c0_40, %c0_41] : memref<1x128xf32, #tpu.memory_space<vmem>>, vector<1x128xf32>
    %83 = vector.shape_cast %82 : vector<1x128xf32> to vector<128xf32>
    %84 = vector.shape_cast %83 : vector<128xf32> to vector<1x128xf32>
    %85 = vector.broadcast %84 : vector<1x128xf32> to vector<256x128xf32>
    %86 = arith.addf %80, %85 : vector<256x128xf32>
    %87 = arith.addf %86, %81 : vector<256x128xf32>
    %cst_42 = arith.constant 0.000000e+00 : f32
    %88 = vector.broadcast %cst_42 : f32 to vector<256x128xf32>
    %89 = arith.maximumf %87, %88 : vector<256x128xf32>
    %90 = vector.shape_cast %89 : vector<256x128xf32> to vector<16x16x128xf32>
    %c0_43 = arith.constant 0 : index
    %c0_44 = arith.constant 0 : index
    %c0_45 = arith.constant 0 : index
    %c0_46 = arith.constant 0 : index
    %91 = vector.load %arg6[%c0_43, %c0_44, %c0_45, %c0_46] : memref<1x16x16x128xf32, #tpu.memory_space<vmem>>, vector<1x16x16x128xf32>
    %92 = vector.shape_cast %91 : vector<1x16x16x128xf32> to vector<16x16x128xf32>
    %93 = vector.shape_cast %90 : vector<16x16x128xf32> to vector<1x16x16x128xf32>
    tpu.vector_store %arg6[%c0_43, %c0_44, %c0_45, %c0_46], %93 {strides = array<i32>} : memref<1x16x16x128xf32, #tpu.memory_space<vmem>>, vector<1x16x16x128xf32>,
    return
  }
  func.func @transform_0(%arg0: i32) -> (i32, i32, i32, i32) {
    %c0_i32 = arith.constant 0 : i32
    %c0_i32_0 = arith.constant 0 : i32
    %c0_i32_1 = arith.constant 0 : i32
    %c0_i32_2 = arith.constant 0 : i32
    return %arg0, %c0_i32, %c0_i32_0, %c0_i32_1 : i32, i32, i32, i32
  }
  func.func @transform_1(%arg0: i32) -> (i32, i32, i32) {
    %c0_i32 = arith.constant 0 : i32
    %c0_i32_0 = arith.constant 0 : i32
    %c0_i32_1 = arith.constant 0 : i32
    %c0_i32_2 = arith.constant 0 : i32
    return %c0_i32, %c0_i32_0, %c0_i32_1 : i32, i32, i32
  }
  func.func @transform_2(%arg0: i32) -> (i32, i32, i32) {
    %c0_i32 = arith.constant 0 : i32
    %c0_i32_0 = arith.constant 0 : i32
    %c0_i32_1 = arith.constant 0 : i32
    %c0_i32_2 = arith.constant 0 : i32
    return %c0_i32, %c0_i32_0, %c0_i32_1 : i32, i32, i32
  }
  func.func @transform_3(%arg0: i32) -> (i32, i32) {
    %c0_i32 = arith.constant 0 : i32
    %c0_i32_0 = arith.constant 0 : i32
    %c0_i32_1 = arith.constant 0 : i32
    return %c0_i32, %c0_i32_0 : i32, i32
  }
  func.func @transform_4(%arg0: i32) -> (i32, i32) {
    %c0_i32 = arith.constant 0 : i32
    %c0_i32_0 = arith.constant 0 : i32
    %c0_i32_1 = arith.constant 0 : i32
    return %c0_i32, %c0_i32_0 : i32, i32
  }
  func.func @transform_5(%arg0: i32) -> (i32, i32, i32, i32) {
    %c0_i32 = arith.constant 0 : i32
    %c0_i32_0 = arith.constant 0 : i32
    %c0_i32_1 = arith.constant 0 : i32
    %c0_i32_2 = arith.constant 0 : i32
    return %arg0, %c0_i32, %c0_i32_0, %c0_i32_1 : i32, i32, i32, i32
  }
}

</mosaic_0001>

<bundles_post_ra>
// kernel: tpu_custom_call.1
= control target key start
LH: loop header
LB: loop body
LE: loop exit
PB: predicated region body
PF: predicated region fallthrough
CT: control target
= control target key end

     0   :  { %10 = vsyncpa [#allocation5], 0  ;;  %s8563_s0 = inlined_call_operand.hbm [shape: f32[2,16,16,128], index: 0, kind: input, shape index: {}]   ;;  %s8564_s1 = inlined_call_operand.hbm [shape: bf16[3,384,128], index: 1, kind: input, shape index: {}]   ;;  %s8565_s2 = inlined_call_operand.hbm [shape: bf16[3,384,128], index: 2, kind: input, shape index: {}]   ;;  %s8566_s3 = inlined_call_operand.vmem [shape: f32[1,128], index: 3, kind: input, shape index: {}]   ;;  %s8567_s4 = inlined_call_operand.vmem [shape: f32[1,128], index: 4, kind: input, shape index: {}]   ;;  %s8568_s5 = inlined_call_operand.hbm [shape: f32[2,16,16,128], index: 5, kind: output, shape index: {}]  }
   0x1   :  { %12 = vsyncpa [#allocation5 + $0x1], 0 }
   0x2   :  { %13 = vsyncpa [#allocation8], 0 }
   0x3   :  { %14 = vsyncpa [#allocation6], 0 }
   0x4   :  { %16 = vsyncpa [#allocation6 + $0x1], 0  ;;  %s6490_s18 = smov 0   ;;  %s6492_s19 = smov 0  }
   0x5   :  { %s6494_s20 = smov 0   ;;  %s6496_s21 = smov 0  }
   0x6 LB: > { %s6511_s22 = sadd.s32 4294967295, %s6447_s21   ;;  %s4777_s23 = sadd.s32 4294967294, %s6447_s21   ;;  %s6447_s21 = sphi %s6496_s21, %s8726_s21   ;;  %s6443_s20 = sphi %s6494_s20, %s8725_s20   ;;  %s6439_s19 = sphi %s6492_s19, %s8724_s19   ;;  %s6435_s18 = sphi %s6490_s18, %s8723_s18  }
   0x7   : > { %p42_p0 = scmp.ne.s32.totalorder %s6439_s19, %s6435_s18  ;;  %p8569_p1 = scmp.eq.s32.totalorder %s6511_s22, 0 }
   0x8   : > { %p156_p3 = scmp.eq.s32.totalorder %s4777_s23, 1  ;;  %p4778_p5 = scmp.ge.s32.totalorder %s6447_s21, 1 }
   0x9   : > { %p6520_p4 = por %p8569_p1, %p42_p0  ;;  %p163_p7 = scmp.lt.s32.totalorder %s6447_s21, 3 }
   0xa   : > { %p6525_p6 = por %p156_p3, %p42_p0  ;;  %s6449_s27 = smov [#allocation7]  }
   0xb   : > { %s8621_s24 = scalar_select %p6520_p4, 1, 0 }
   0xc   : > { %s8622_s25 = scalar_select %p6525_p6, 1, 0 }
   0xd   : > { %p6531_p9 = pnand %p4778_p5, %p163_p7  ;;  %s175_s28 = sshll.u32 %s6449_s27, 4  ;;  %s176_s28 = int_to_ptr.vmem [resolvable:$true] %s175_s28 }
   0xe   : > { %s6450_s30 = smov [#allocation9]   ;;  %s6310_s7 = scalar_lea.vmem %s176_s28, 9216 }
   0xf   : > { %s8623_s26 = scalar_select %p6531_p9, 1, 0 }
  0x10   : > { %p6060_p10 = pneg %p6531_p9  ;;  %s188_s6 = sshll.u32 %s6450_s30, 4  ;;  %s189_s6 = int_to_ptr.vmem [resolvable:$true] %s188_s6 }
  0x11   : > { %p6311_p0 = scmp.ne.s32.totalorder %s176_s28, %s6310_s7  ;;  %p6318_p7 = scmp.lt.s32.totalorder %s176_s28, %s176_s28 }
  0x12   : > { %p6540_p12 = pnand %p6060_p10, %p8569_p1  ;;  %p6319_p11 = scmp.lt.s32.totalorder %s6310_s7, %s6310_s7 }
  0x14   : > { %p6301_p13 = pneg %p6540_p12  ;;  %p6320_p8 = por %p6319_p11, %p6318_p7 }
  0x16   : > { %p6313_p3 = pnand %p6311_p0, %p6301_p13 }
  0x18   : > { %p6314_p5 = pneg %p6313_p3 }
  0x1a   : > { %p6321_p10 = pnand %p6320_p8, %p6314_p5 }
  0x1c   : > { %6324 = shalt.err (!%p6321_p10)
}
  0x1d   : > { %s6451_s8 = smov 64   ;;  %s6452_s9 = smov 4  }
  0x1e   : > { %6063 = dma.hbm_to_vmem [thread:$0]  (!%p6540_p12), %s8564_s1, 9216, %s176_s28, [#allocation8], %s6451_s8, %s6451_s8, %s6452_s9  }
  0x1f   : > { %s6336_s12 = scalar_lea.vmem %s189_s6, 9216  ;;  %p6344_p2 = scmp.lt.s32.totalorder %s189_s6, %s189_s6 }
  0x20   : > { %p6337_p1 = scmp.ne.s32.totalorder %s189_s6, %s6336_s12  ;;  %p6345_p6 = scmp.lt.s32.totalorder %s6336_s12, %s6336_s12 }
  0x22   : > { %p6339_p0 = pnand %p6337_p1, %p6301_p13  ;;  %p6346_p11 = por %p6345_p6, %p6344_p2 }
  0x24   : > { %p6340_p3 = pneg %p6339_p0 }
  0x26   : > { %p6347_p8 = pnand %p6346_p11, %p6340_p3 }
  0x28   : > { %6350 = shalt.err (!%p6347_p8)
}
  0x29   : > { %6066 = dma.hbm_to_vmem [thread:$0]  (!%p6540_p12), %s8565_s2, 9216, %s189_s6, [#allocation8], %s6451_s8, %s6451_s8, %s6452_s9  }
  0x2a   : > { %s6563_s15 = sadd.s32 1, %s6447_s21   ;;  %s29_s16 = sadd.s32 1, %s6443_s20 }
  0x2b   : > { %s26_s17 = ssub.s32 %s6447_s21, %s6563_s15  ;;  %p36_p1 = scmp.ne.s32.totalorder %s6443_s20, %s6439_s19 }
  0x2c   : > { %p27_p2 = scmp.eq.s32.totalorder %s26_s17, 0  ;;  %p37_p6 = scmp.eq.s32.totalorder %s6447_s21, 0 }
  0x2d   : > { %p8625_p13 = scmp.eq.s32.totalorder %s6511_s22, 1  ;;  %p6077_p7 = scmp.lt.s32.totalorder %s6447_s21, 2 }
  0x2e   : > { %s6579_s27 = scalar_select %p27_p2, %s6443_s20, %s29_s16  }
  0x2f   : > { %p6573_p5 = por %p8625_p13, %p36_p1  ;;  %p38_p10 = por %p37_p6, %p36_p1 }
  0x30   : > { %s208_s28 = sand.u32 1, %s6443_s20   ;;  %s4942_s30 = sshll.u32 %s6447_s21, 12 }
  0x31   : > { %s8626_s23 = scalar_select %p6573_p5, 1, 0 }
  0x32   : > { %s4782_s29 = sshll.u32 %s208_s28, 8  ;;  %s6586_s8 = scalar_lea.hbm %s8563_s0, %s4942_s30 }
  0x33   : > { %s212_s9 = scalar_lea.vmem [#allocation4], %s4782_s29  ;;  %p6590_p12 = pnand %p6077_p7, %p38_p10 }
  0x34   : > { %s219_s10 = sshll.u32 %s212_s9, 4  ;;  %s6594_s12 = scalar_lea.sflag [#allocation5], %s208_s28  ;;  %s6588_s10 = int_to_ptr.vmem [resolvable:$true] %s219_s10 }
  0x35   : > { %s6351_s13 = scalar_lea.hbm %s6586_s8, 4096  ;;  %p6353_p3 = pneg %p6590_p12 }
  0x36   : > { %p6352_p0 = scmp.ne.s32.totalorder %s6586_s8, %s6351_s13  ;;  %s6356_s17 = scalar_lea.hbm %s8563_s0, 8192 }
  0x37   : > { %p6357_p1 = scmp.lt.s32.totalorder %s6586_s8, %s8563_s0  ;;  %p6358_p2 = scmp.lt.s32.totalorder %s6356_s17, %s6351_s13 }
  0x38   : > { %p6354_p11 = pnand %p6353_p3, %p6352_p0 }
  0x39   : > { %p6359_p6 = por %p6358_p2, %p6357_p1 }
  0x3a   : > { %p6355_p8 = pneg %p6354_p11 }
  0x3c   : > { %p6360_p13 = pnand %p6359_p6, %p6355_p8 }
  0x3e   : > { %6363 = shalt.err (!%p6360_p13)
}
  0x3f   : > { %s6364_s28 = scalar_lea.vmem %s6588_s10, 4096  ;;  %s6453_s6 = smov [#allocation4]  }
  0x40   : > { %p6365_p7 = scmp.ne.s32.totalorder %s6588_s10, %s6364_s28  ;;  %s6369_s7 = sshll.u32 %s6453_s6, 4  ;;  %s6370_s7 = int_to_ptr.vmem [resolvable:$false] %s6369_s7 }
  0x41   : > { %s6371_s9 = scalar_lea.vmem %s6370_s7, 8192  ;;  %p6372_p11 = scmp.lt.s32.totalorder %s6588_s10, %s6370_s7 }
  0x42   : > { %p6367_p10 = pnand %p6365_p7, %p6353_p3  ;;  %p6373_p5 = scmp.lt.s32.totalorder %s6371_s9, %s6364_s28 }
  0x44   : > { %p6368_p0 = pneg %p6367_p10  ;;  %p6374_p4 = por %p6373_p5, %p6372_p11 }
  0x46   : > { %p6375_p9 = pnand %p6374_p4, %p6368_p0 }
  0x48   : > { %6378 = shalt.err (!%p6375_p9)
}
  0x49   : > { %s6454_s13 = smov 128   ;;  %s6455_s14 = smov 8  }
  0x4a   : > { %6070 = dma.hbm_to_vmem [thread:$0]  (!%p6590_p12), %s6586_s8, 4096, %s6588_s10, %s6594_s12, %s6454_s13, %s6454_s13, %s6455_s14  }
  0x4b   : > { %p8628_p3 = scmp.ne.s32.totalorder %s8623_s26, 0 }
  0x4d   : > { %231 = sbr.rel (%p8628_p3) target bundleno = 1138 (0x472), region = 40 }
  0x52   : > { %s6618_s16 = sand.u32 1, %s6439_s19   ;;  %p8629_p4 = scmp.ne.s32.totalorder %s8621_s24, 0 }
  0x53   : > { %s4786_s17 = sshll.u32 %s6618_s16, 8  ;;  %s234_s29 = scalar_lea.sflag [#allocation5], %s6618_s16 }
  0x54   : > { %s6622_s30 = scalar_lea.vmem [#allocation4], %s4786_s17 }
  0x55   : > { %6422 = dma.done.wait (%p8629_p4), %s234_s29, 4096  }
  0x56   : > { %6424 = vsyncadd (%p8629_p4), %s234_s29, 4294963200  ;;  %p8630_p9 = scmp.eq.s32.totalorder %s6511_s22, 0 }
  0x58   : > { %6426 = dma.done.wait (%p8630_p9), [#allocation8], 18432   ;;  %p8631_p5 = pmov %p8630_p9 }
  0x59   : > { %s6632_s26 = scalar_lea.vmem [#allocation10], %s4786_s17  ;;  %p8632_p12 = scmp.ne.s32.totalorder %s6511_s22, 0 }
  0x5a   : > { %6428 = vsyncadd (%p8631_p5), [#allocation8], 4294948864 }
  0x5b   : > { %276 = sbr.rel (%p8632_p12) target bundleno = 151 (0x97), region = 56 }
  0x60   : > { %v6456_v0 = vmov 0.0  }
  0x61   : > { %277 = vst [vmem:[#allocation2] sm:$0xff] %v6456_v0  ;;  %278 = vst [vmem:[#allocation2 + $0x8] sm:$0xff] %v6456_v0 }
  0x62   : > { %279 = vst [vmem:[#allocation2 + $0x10] sm:$0x3] %v6456_v0  ;;  %280 = vst [vmem:[#allocation2 + $0x18] sm:$0xff] %v6456_v0 }
  0x63   : > { %281 = vst [vmem:[#allocation2 + $0x20] sm:$0xff] %v6456_v0  ;;  %282 = vst [vmem:[#allocation2 + $0x28] sm:$0x3] %v6456_v0 }
  0x64   : > { %283 = vst [vmem:[#allocation2 + $0x30] sm:$0xff] %v6456_v0  ;;  %284 = vst [vmem:[#allocation2 + $0x38] sm:$0xff] %v6456_v0 }
  0x65   : > { %285 = vst [vmem:[#allocation2 + $0x40] sm:$0x3] %v6456_v0  ;;  %286 = vst [vmem:[#allocation2 + $0x48] sm:$0xff] %v6456_v0 }
  0x66   : > { %287 = vst [vmem:[#allocation2 + $0x50] sm:$0xff] %v6456_v0  ;;  %288 = vst [vmem:[#allocation2 + $0x58] sm:$0x3] %v6456_v0 }
  0x67   : > { %289 = vst [vmem:[#allocation2 + $0x60] sm:$0xff] %v6456_v0  ;;  %290 = vst [vmem:[#allocation2 + $0x68] sm:$0xff] %v6456_v0 }
  0x68   : > { %291 = vst [vmem:[#allocation2 + $0x70] sm:$0x3] %v6456_v0  ;;  %292 = vst [vmem:[#allocation2 + $0x78] sm:$0xff] %v6456_v0 }
  0x69   : > { %293 = vst [vmem:[#allocation2 + $0x80] sm:$0xff] %v6456_v0  ;;  %294 = vst [vmem:[#allocation2 + $0x88] sm:$0x3] %v6456_v0 }
  0x6a   : > { %295 = vst [vmem:[#allocation2 + $0x90] sm:$0xff] %v6456_v0  ;;  %296 = vst [vmem:[#allocation2 + $0x98] sm:$0xff] %v6456_v0 }
  0x6b   : > { %297 = vst [vmem:[#allocation2 + $0xa0] sm:$0x3] %v6456_v0  ;;  %298 = vst [vmem:[#allocation2 + $0xa8] sm:$0xff] %v6456_v0 }
  0x6c   : > { %299 = vst [vmem:[#allocation2 + $0xb0] sm:$0xff] %v6456_v0  ;;  %300 = vst [vmem:[#allocation2 + $0xb8] sm:$0x3] %v6456_v0 }
  0x6d   : > { %301 = vst [vmem:[#allocation2 + $0xc0] sm:$0xff] %v6456_v0  ;;  %302 = vst [vmem:[#allocation2 + $0xc8] sm:$0xff] %v6456_v0 }
  0x6e   : > { %303 = vst [vmem:[#allocation2 + $0xd0] sm:$0x3] %v6456_v0  ;;  %304 = vst [vmem:[#allocation2 + $0xd8] sm:$0xff] %v6456_v0 }
  0x6f   : > { %305 = vst [vmem:[#allocation2 + $0xe0] sm:$0xff] %v6456_v0  ;;  %306 = vst [vmem:[#allocation2 + $0xe8] sm:$0x3] %v6456_v0 }
  0x70   : > { %307 = vst [vmem:[#allocation2 + $0xf0] sm:$0xff] %v6456_v0  ;;  %308 = vst [vmem:[#allocation2 + $0xf8] sm:$0xff] %v6456_v0 }
  0x71   : > { %309 = vst [vmem:[#allocation2 + $0x100] sm:$0x3] %v6456_v0  ;;  %310 = vst [vmem:[#allocation2 + $0x108] sm:$0xff] %v6456_v0 }
  0x72   : > { %311 = vst [vmem:[#allocation2 + $0x110] sm:$0xff] %v6456_v0  ;;  %312 = vst [vmem:[#allocation2 + $0x118] sm:$0x3] %v6456_v0 }
  0x73   : > { %313 = vst [vmem:[#allocation2 + $0x120] sm:$0xff] %v6456_v0  ;;  %314 = vst [vmem:[#allocation2 + $0x128] sm:$0xff] %v6456_v0 }
  0x74   : > { %315 = vst [vmem:[#allocation2 + $0x130] sm:$0x3] %v6456_v0  ;;  %316 = vst [vmem:[#allocation2 + $0x138] sm:$0xff] %v6456_v0 }
  0x75   : > { %317 = vst [vmem:[#allocation2 + $0x140] sm:$0xff] %v6456_v0  ;;  %318 = vst [vmem:[#allocation2 + $0x148] sm:$0x3] %v6456_v0 }
  0x76   : > { %319 = vst [vmem:[#allocation2 + $0x150] sm:$0xff] %v6456_v0  ;;  %320 = vst [vmem:[#allocation2 + $0x158] sm:$0xff] %v6456_v0 }
  0x77   : > { %321 = vst [vmem:[#allocation2 + $0x160] sm:$0x3] %v6456_v0  ;;  %322 = vst [vmem:[#allocation2 + $0x168] sm:$0xff] %v6456_v0 }
  0x78   : > { %323 = vst [vmem:[#allocation2 + $0x170] sm:$0xff] %v6456_v0  ;;  %324 = vst [vmem:[#allocation2 + $0x178] sm:$0x3] %v6456_v0 }
  0x79   : > { %325 = vst [vmem:[#allocation2 + $0x180] sm:$0xff] %v6456_v0  ;;  %326 = vst [vmem:[#allocation2 + $0x188] sm:$0xff] %v6456_v0 }
  0x7a   : > { %327 = vst [vmem:[#allocation2 + $0x190] sm:$0x3] %v6456_v0  ;;  %328 = vst [vmem:[#allocation2 + $0x198] sm:$0xff] %v6456_v0 }
  0x7b   : > { %329 = vst [vmem:[#allocation2 + $0x1a0] sm:$0xff] %v6456_v0  ;;  %330 = vst [vmem:[#allocation2 + $0x1a8] sm:$0x3] %v6456_v0 }
  0x7c   : > { %331 = vst [vmem:[#allocation3] sm:$0xff] %v6456_v0  ;;  %332 = vst [vmem:[#allocation3 + $0x8] sm:$0xff] %v6456_v0 }
  0x7d   : > { %333 = vst [vmem:[#allocation3 + $0x10] sm:$0x3] %v6456_v0  ;;  %334 = vst [vmem:[#allocation3 + $0x18] sm:$0xff] %v6456_v0 }
  0x7e   : > { %335 = vst [vmem:[#allocation3 + $0x20] sm:$0xff] %v6456_v0  ;;  %336 = vst [vmem:[#allocation3 + $0x28] sm:$0x3] %v6456_v0 }
  0x7f   : > { %337 = vst [vmem:[#allocation3 + $0x30] sm:$0xff] %v6456_v0  ;;  %338 = vst [vmem:[#allocation3 + $0x38] sm:$0xff] %v6456_v0 }
  0x80   : > { %339 = vst [vmem:[#allocation3 + $0x40] sm:$0x3] %v6456_v0  ;;  %340 = vst [vmem:[#allocation3 + $0x48] sm:$0xff] %v6456_v0 }
  0x81   : > { %341 = vst [vmem:[#allocation3 + $0x50] sm:$0xff] %v6456_v0  ;;  %342 = vst [vmem:[#allocation3 + $0x58] sm:$0x3] %v6456_v0 }
  0x82   : > { %343 = vst [vmem:[#allocation3 + $0x60] sm:$0xff] %v6456_v0  ;;  %344 = vst [vmem:[#allocation3 + $0x68] sm:$0xff] %v6456_v0 }
  0x83   : > { %345 = vst [vmem:[#allocation3 + $0x70] sm:$0x3] %v6456_v0  ;;  %346 = vst [vmem:[#allocation3 + $0x78] sm:$0xff] %v6456_v0 }
  0x84   : > { %347 = vst [vmem:[#allocation3 + $0x80] sm:$0xff] %v6456_v0  ;;  %348 = vst [vmem:[#allocation3 + $0x88] sm:$0x3] %v6456_v0 }
  0x85   : > { %349 = vst [vmem:[#allocation3 + $0x90] sm:$0xff] %v6456_v0  ;;  %350 = vst [vmem:[#allocation3 + $0x98] sm:$0xff] %v6456_v0 }
  0x86   : > { %351 = vst [vmem:[#allocation3 + $0xa0] sm:$0x3] %v6456_v0  ;;  %352 = vst [vmem:[#allocation3 + $0xa8] sm:$0xff] %v6456_v0 }
  0x87   : > { %353 = vst [vmem:[#allocation3 + $0xb0] sm:$0xff] %v6456_v0  ;;  %354 = vst [vmem:[#allocation3 + $0xb8] sm:$0x3] %v6456_v0 }
  0x88   : > { %355 = vst [vmem:[#allocation3 + $0xc0] sm:$0xff] %v6456_v0  ;;  %356 = vst [vmem:[#allocation3 + $0xc8] sm:$0xff] %v6456_v0 }
  0x89   : > { %357 = vst [vmem:[#allocation3 + $0xd0] sm:$0x3] %v6456_v0  ;;  %358 = vst [vmem:[#allocation3 + $0xd8] sm:$0xff] %v6456_v0 }
  0x8a   : > { %359 = vst [vmem:[#allocation3 + $0xe0] sm:$0xff] %v6456_v0  ;;  %360 = vst [vmem:[#allocation3 + $0xe8] sm:$0x3] %v6456_v0 }
  0x8b   : > { %361 = vst [vmem:[#allocation3 + $0xf0] sm:$0xff] %v6456_v0  ;;  %362 = vst [vmem:[#allocation3 + $0xf8] sm:$0xff] %v6456_v0 }
  0x8c   : > { %363 = vst [vmem:[#allocation3 + $0x100] sm:$0x3] %v6456_v0  ;;  %364 = vst [vmem:[#allocation3 + $0x108] sm:$0xff] %v6456_v0 }
  0x8d   : > { %365 = vst [vmem:[#allocation3 + $0x110] sm:$0xff] %v6456_v0  ;;  %366 = vst [vmem:[#allocation3 + $0x118] sm:$0x3] %v6456_v0 }
  0x8e   : > { %367 = vst [vmem:[#allocation3 + $0x120] sm:$0xff] %v6456_v0  ;;  %368 = vst [vmem:[#allocation3 + $0x128] sm:$0xff] %v6456_v0 }
  0x8f   : > { %369 = vst [vmem:[#allocation3 + $0x130] sm:$0x3] %v6456_v0  ;;  %370 = vst [vmem:[#allocation3 + $0x138] sm:$0xff] %v6456_v0 }
  0x90   : > { %371 = vst [vmem:[#allocation3 + $0x140] sm:$0xff] %v6456_v0  ;;  %372 = vst [vmem:[#allocation3 + $0x148] sm:$0x3] %v6456_v0 }
  0x91   : > { %373 = vst [vmem:[#allocation3 + $0x150] sm:$0xff] %v6456_v0  ;;  %374 = vst [vmem:[#allocation3 + $0x158] sm:$0xff] %v6456_v0 }
  0x92   : > { %375 = vst [vmem:[#allocation3 + $0x160] sm:$0x3] %v6456_v0  ;;  %376 = vst [vmem:[#allocation3 + $0x168] sm:$0xff] %v6456_v0 }
  0x93   : > { %377 = vst [vmem:[#allocation3 + $0x170] sm:$0xff] %v6456_v0  ;;  %378 = vst [vmem:[#allocation3 + $0x178] sm:$0x3] %v6456_v0 }
  0x94   : > { %379 = vst [vmem:[#allocation3 + $0x180] sm:$0xff] %v6456_v0  ;;  %380 = vst [vmem:[#allocation3 + $0x188] sm:$0xff] %v6456_v0 }
  0x95   : > { %381 = vst [vmem:[#allocation3 + $0x190] sm:$0x3] %v6456_v0  ;;  %382 = vst [vmem:[#allocation3 + $0x198] sm:$0xff] %v6456_v0 }
  0x96   : > { %383 = vst [vmem:[#allocation3 + $0x1a0] sm:$0xff] %v6456_v0  ;;  %384 = vst [vmem:[#allocation3 + $0x1a8] sm:$0x3] %v6456_v0 }
  0x97 PF: > { %v6122_v1 = vld [vmem:[#allocation7 + $0x138] sm:$0xff]   ;;  %v6125_v4 = vld [vmem:[#allocation7 + $0x130] sm:$0xff]   ;;  %v6128_v7 = vld [vmem:[#allocation7 + $0x128] sm:$0xff]   ;;  %vm552_vm0 = vcmask 1046528   ;;  %vm665_vm1 = vcmask 1045504   ;;  %s4943_s6 = sshll.u32 %s6511_s22, 12 }
  0x98   : > { %v6123_v2 = vld [vmem:[#allocation7 + $0x178] sm:$0xff]   ;;  %4944 = vmatprep.subr.bf16.mxu0 %v6122_v1  ;;  %v6126_v5 = vld [vmem:[#allocation7 + $0x170] sm:$0xff]   ;;  %v6129_v8 = vld [vmem:[#allocation7 + $0x168] sm:$0xff]   ;;  %s4685_s7 = sshll.u32 %s6632_s26, 4  ;;  %s8517_s14 = scalar_lea.hbm %s8568_s5, %s4943_s6  ;;  %s8519_s7 = int_to_ptr.vmem [resolvable:$true] %s4685_s7 }
  0x99   : > { %v6124_v3 = vld [vmem:[#allocation7 + $0xf8] sm:$0xff]   ;;  %5760 = vmatprep.subr.bf16.mxu1 %v6123_v2  ;;  %v6127_v6 = vld [vmem:[#allocation7 + $0xf0] sm:$0xff]   ;;  %v6130_v9 = vld [vmem:[#allocation7 + $0xe8] sm:$0xff]   ;;  %s4672_s17 = scalar_lea.sflag [#allocation6], %s6618_s16  ;;  %s6379_s29 = scalar_lea.vmem %s8519_s7, 4096 }
  0x9a   : > { %4945 = vmatpush3.bf16.msra.mxu0 %v6124_v3  ;;  %5761 = vmatpush3.bf16.msra.mxu1 %v6123_v2  ;;  %v6131_v10 = vld [vmem:[#allocation7 + $0x120] sm:$0xff]   ;;  %v6134_v13 = vld [vmem:[#allocation7 + $0x118] sm:$0xff]   ;;  %v6137_v16 = vld [vmem:[#allocation7 + $0x110] sm:$0xff]   ;;  %p6380_p8 = scmp.ne.s32.totalorder %s8519_s7, %s6379_s29  ;;  %p8720_p1 = scmp.ne.s32.totalorder %s8626_s23, 0 }
  0x9b   : > { %4946 = vmatprep.subr.bf16.mxu0 %v6125_v4  ;;  %5762 = vmatprep.subr.bf16.mxu1 %v6126_v5  ;;  %v6132_v11 = vld [vmem:[#allocation7 + $0x160] sm:$0xff]   ;;  %v6135_v14 = vld [vmem:[#allocation7 + $0x158] sm:$0xff]   ;;  %v6138_v17 = vld [vmem:[#allocation7 + $0x150] sm:$0xff]   ;;  %s6457_s22 = smov [#allocation10]  }
  0x9c   : > { %v6133_v12 = vld [vmem:[#allocation7 + $0xe0] sm:$0xff]   ;;  %v6136_v15 = vld [vmem:[#allocation7 + $0xd8] sm:$0xff]   ;;  %v6139_v18 = vld [vmem:[#allocation7 + $0xd0] sm:$0xff]   ;;  %p6381_p2 = pnand %p6380_p8, %p8720_p1 }
  0x9d   : > { %v6140_v19 = vld [vmem:[#allocation7 + $0x108] sm:$0xff]   ;;  %v6143_v22 = vld [vmem:[#allocation7 + $0x100] sm:$0xff]   ;;  %v387_v26 = vld [vmem:[%s6622_s30 + $0x10] sm:$0xff] }
  0x9e   : > { %4947 = vmatpush3.bf16.msra.mxu0 %v6127_v6  ;;  %5763 = vmatpush3.bf16.msra.mxu1 %v6126_v5  ;;  %v6141_v20 = vld [vmem:[#allocation7 + $0x148] sm:$0xff]   ;;  %v6144_v23 = vld [vmem:[#allocation7 + $0x140] sm:$0xff]   ;;  %v388_v27 = vld [vmem:[%s6622_s30 + $0x18] sm:$0xff]  ;;  %420 = vst [vmem:[#allocation2 + $0x31] sm:$0xff] %v387_v26  ;;  %p6382_p6 = pneg %p6381_p2 }
  0x9f   : > { %4948 = vmatprep.subr.bf16.mxu0 %v6128_v7  ;;  %5764 = vmatprep.subr.bf16.mxu1 %v6129_v8  ;;  %v6142_v21 = vld [vmem:[#allocation7 + $0xc8] sm:$0xff]   ;;  %v385_v24 = vld [vmem:[%s6622_s30] sm:$0xff]  ;;  %421 = vst [vmem:[#allocation2 + $0x39] sm:$0xff] %v388_v27  ;;  %v6748_v29 = vld [vmem:[#allocation7 + $0xb8] sm:$0xff]  }
  0xa0   : > { %v386_v25 = vld [vmem:[%s6622_s30 + $0x8] sm:$0xff]  ;;  %418 = vst [vmem:[#allocation2 + $0x19] sm:$0xff] %v385_v24  ;;  %v6145_v28 = vld [vmem:[#allocation7 + $0xc0] sm:$0xff]   ;;  %v6147_v30 = vld [vmem:[#allocation7 + $0x78] sm:$0xff]  }
  0xa1   : > { %419 = vst [vmem:[#allocation2 + $0x21] sm:$0xff] %v386_v25  ;;  %v389_v31 = vld [vmem:[%s6622_s30 + $0x20] sm:$0xff]  ;;  %v390_v32 = vld [vmem:[%s6622_s30 + $0x28] sm:$0xff]  ;;  %v391_v33 = vld [vmem:[%s6622_s30 + $0x30] sm:$0xff] }
  0xa2   : > { %4949 = vmatpush3.bf16.msra.mxu0 %v6130_v9  ;;  %5765 = vmatpush3.bf16.msra.mxu1 %v6129_v8  ;;  %422 = vst [vmem:[#allocation2 + $0x49] sm:$0xff] %v389_v31  ;;  %423 = vst [vmem:[#allocation2 + $0x51] sm:$0xff] %v390_v32  ;;  %v392_v34 = vld [vmem:[%s6622_s30 + $0x38] sm:$0xff]  ;;  %v393_v35 = vld [vmem:[%s6622_s30 + $0x40] sm:$0xff] }
  0xa3   : > { %4950 = vmatprep.subr.bf16.mxu0 %v6131_v10  ;;  %5766 = vmatprep.subr.bf16.mxu1 %v6132_v11  ;;  %424 = vst [vmem:[#allocation2 + $0x61] sm:$0xff] %v391_v33  ;;  %425 = vst [vmem:[#allocation2 + $0x69] sm:$0xff] %v392_v34  ;;  %v394_v50 = vld [vmem:[%s6622_s30 + $0x48] sm:$0xff]  ;;  %v6148_v55 = vld [vmem:[#allocation7 + $0x38] sm:$0xff]  }
  0xa4   : > { %426 = vst [vmem:[#allocation2 + $0x79] sm:$0xff] %v393_v35  ;;  %427 = vst [vmem:[#allocation2 + $0x81] sm:$0xff] %v394_v50  ;;  %v395_v56 = vld [vmem:[%s6622_s30 + $0x50] sm:$0xff]  ;;  %v396_v57 = vld [vmem:[%s6622_s30 + $0x58] sm:$0xff] }
  0xa5   : > { %v6755_v43 = vld [vmem:[#allocation2 + $0x30] sm:$0xff]  ;;  %428 = vst [vmem:[#allocation2 + $0x91] sm:$0xff] %v395_v56  ;;  %429 = vst [vmem:[#allocation2 + $0x99] sm:$0xff] %v396_v57  ;;  %v6152_v27 = vld [vmem:[#allocation7 + $0x68] sm:$0xff]  }
  0xa6   : > { %4951 = vmatpush3.bf16.msra.mxu0 %v6133_v12  ;;  %5767 = vmatpush3.bf16.msra.mxu1 %v6132_v11  ;;  %v6757_v44 = vld [vmem:[#allocation2 + $0x38] sm:$0xff]  ;;  %v458_v48 = vld [vmem:[#allocation2 + $0x40] sm:$0x3]  ;;  %v676_v49 = vrot.slane %v6755_v43, 2  ;;  %v563_v61 = vrot.slane %v6755_v43, 1  ;;  %v6149_v1 = vld [vmem:[#allocation7 + $0x70] sm:$0xff]  }
  0xa7   : > { %4952 = vmatprep.subr.bf16.mxu0 %v6134_v13  ;;  %5768 = vmatprep.subr.bf16.mxu1 %v6135_v14  ;;  %v453_v36 = vld [vmem:[#allocation2 + $0x18] sm:$0xff]  ;;  %v677_v53 = vrot.slane %v6757_v44, 2  ;;  %v679_v54 = vrot.slane %v458_v48, 2  ;;  %v564_v5 = vrot.slane %v6757_v44, 1  ;;  %v566_v10 = vrot.slane %v458_v48, 1  ;;  %v6151_v13 = vld [vmem:[#allocation7 + $0xb0] sm:$0xff]  }
  0xa8   : > { %v454_v37 = vld [vmem:[#allocation2 + $0x20] sm:$0xff]  ;;  %v455_v38 = vld [vmem:[#allocation2 + $0x28] sm:$0x3]  ;;  %v558_v39 = vrot.slane %v453_v36, 1  ;;  %v671_v42 = vrot.slane %v453_v36, 2  ;;  %v399_v48 = vld [vmem:[%s6622_s30 + $0x70] sm:$0xff] }
  0xa9   : > { %v559_v40 = vrot.slane %v454_v37, 1  ;;  %v561_v41 = vrot.slane %v455_v38, 1  ;;  %v672_v45 = vrot.slane %v454_v37, 2  ;;  %v674_v46 = vrot.slane %v455_v38, 2  ;;  %v6774_v62 = vld [vmem:[#allocation2 + $0x48] sm:$0xff]  ;;  %v6776_v63 = vld [vmem:[#allocation2 + $0x50] sm:$0xff] }
  0xaa   : > { %4953 = vmatpush3.bf16.msra.mxu0 %v6136_v15  ;;  %5769 = vmatpush3.bf16.msra.mxu1 %v6135_v14  ;;  %v6760_v47 = vpack.c.bf16 %v454_v37, %v453_v36  ;;  %v461_v0 = vld [vmem:[#allocation2 + $0x58] sm:$0x3]  ;;  %v678_v3 = vsel %vm665_vm1, %v676_v49, %v677_v53  ;;  %v680_v4 = vsel %vm665_vm1, %v677_v53, %v679_v54  ;;  %v6783_v6 = vld [vmem:[#allocation2 + $0x60] sm:$0xff]  ;;  %v6785_v7 = vld [vmem:[#allocation2 + $0x68] sm:$0xff]  ;;  %v681_v11 = vrot.slane %v6774_v62, 2 }
  0xab   : > { %4954 = vmatprep.subr.bf16.mxu0 %v6137_v16  ;;  %5770 = vmatprep.subr.bf16.mxu1 %v6138_v17  ;;  %v560_v51 = vsel %vm552_vm0, %v558_v39, %v559_v40  ;;  %v562_v52 = vsel %vm552_vm0, %v559_v40, %v561_v41  ;;  %v673_v59 = vsel %vm665_vm1, %v671_v42, %v672_v45  ;;  %v6787_v8 = vld [vmem:[#allocation2 + $0x70] sm:$0x3]  ;;  %v682_v12 = vrot.slane %v6776_v63, 2  ;;  %v6816_v33 = vld [vmem:[#allocation2 + $0x80] sm:$0xff]  ;;  %v6818_v34 = vld [vmem:[#allocation2 + $0x88] sm:$0x3] }
  0xac   : > { %v6769_v58 = vpack.c.bf16 %v562_v52, %v560_v51  ;;  %v675_v60 = vsel %vm665_vm1, %v672_v45, %v674_v46  ;;  %v6790_v9 = vpack.c.bf16 %v680_v4, %v678_v3  ;;  %v565_v14 = vsel %vm552_vm0, %v563_v61, %v564_v5  ;;  %v398_v35 = vld [vmem:[%s6622_s30 + $0x68] sm:$0xff]  ;;  %v6829_v40 = vld [vmem:[#allocation2 + $0x90] sm:$0xff]  ;;  %v6831_v41 = vld [vmem:[#allocation2 + $0x98] sm:$0xff]  ;;  %432 = vst [vmem:[#allocation2 + $0xc1] sm:$0xff] %v399_v48 }
  0xad   : > { %v6778_v2 = vpack.c.bf16 %v675_v60, %v673_v59  ;;  %v684_v15 = vrot.slane %v461_v0, 2  ;;  %v686_v16 = vrot.slane %v6783_v6, 2  ;;  %v568_v25 = vrot.slane %v6774_v62, 1  ;;  %v6833_v42 = vld [vmem:[#allocation2 + $0xa0] sm:$0x3]  ;;  %431 = vst [vmem:[#allocation2 + $0xb1] sm:$0xff] %v398_v35 }
  0xae   : > { %4955 = vmatpush3.bf16.msra.mxu0 %v6139_v18  ;;  %5771 = vmatpush3.bf16.msra.mxu1 %v6138_v17  ;;  %8634 = vst [vmem:[#allocation15_spill] sm:$0xff] %v6790_v9  ;;  %v6150_v17 = vld [vmem:[#allocation7 + $0x30] sm:$0xff]   ;;  %v6798_v18 = vld [vmem:[#allocation2 + $0x78] sm:$0xff]  ;;  %v569_v26 = vrot.slane %v6776_v63, 1  ;;  %v571_v32 = vrot.slane %v461_v0, 1  ;;  %v6824_v36 = vpack.c.bf16 %v6757_v44, %v6755_v43  ;;  %v692_v39 = vrot.slane %v6816_v33, 2 }
  0xaf   : > { %4956 = vmatprep.subr.bf16.mxu0 %v6140_v19  ;;  %5772 = vmatprep.subr.bf16.mxu1 %v6141_v20  ;;  %8633 = vst [vmem:[#allocation14_spill] sm:$0xff] %v6778_v2  ;;  %v567_v19 = vsel %vm552_vm0, %v564_v5, %v566_v10  ;;  %v685_v24 = vsel %vm665_vm1, %v682_v12, %v684_v15  ;;  %v691_v38 = vrot.slane %v6798_v18, 2  ;;  %v694_v44 = vrot.slane %v6818_v34, 2  ;;  %v400_v49 = vld [vmem:[%s6622_s30 + $0x78] sm:$0xff]  ;;  %v6153_v54 = vld [vmem:[#allocation7 + $0x28] sm:$0xff]   ;;  %v401_v61 = vld [vmem:[%s6622_s30 + $0x80] sm:$0xff] }
  0xb0   : > { %1119 = vmatprep.mubr.bf16.mxu0 %v6769_v58  ;;  %5776 = vmatprep.mubr.bf16.mxu1 %v6778_v2  ;;  %v570_v37 = vsel %vm552_vm0, %v568_v25, %v569_v26  ;;  %v572_v43 = vsel %vm552_vm0, %v569_v26, %v571_v32  ;;  %v696_v46 = vrot.slane %v6829_v40, 2  ;;  %v697_v52 = vrot.slane %v6831_v41, 2  ;;  %433 = vst [vmem:[#allocation2 + $0xc9] sm:$0xff] %v400_v49  ;;  %v402_v3 = vld [vmem:[%s6622_s30 + $0x88] sm:$0xff]  ;;  %v403_v4 = vld [vmem:[%s6622_s30 + $0x90] sm:$0xff]  ;;  %v404_v10 = vld [vmem:[%s6622_s30 + $0x98] sm:$0xff] }
  0xb1   : > { %v6843_v50 = vpack.c.bf16 %v572_v43, %v570_v37  ;;  %v693_v51 = vsel %vm665_vm1, %v691_v38, %v692_v39  ;;  %v699_v53 = vrot.slane %v6833_v42, 2  ;;  %v695_v56 = vsel %vm665_vm1, %v692_v39, %v694_v44  ;;  %434 = vst [vmem:[#allocation2 + $0xd9] sm:$0xff] %v401_v61  ;;  %435 = vst [vmem:[#allocation2 + $0xe1] sm:$0xff] %v402_v3  ;;  %v6156_v15 = vld [vmem:[#allocation7 + $0xa8] sm:$0xff]   ;;  %v6158_v25 = vld [vmem:[#allocation7 + $0x18] sm:$0xff]  }
  0xb2   : > { %4957 = vmatpush3.bf16.msra.mxu0 %v6142_v21  ;;  %5773 = vmatpush3.bf16.msra.mxu1 %v6141_v20  ;;  %v683_v20 = vsel %vm665_vm1, %v681_v11, %v682_v12  ;;  %v687_v21 = vrot.slane %v6785_v7, 2  ;;  %v573_v57 = vrot.slane %v6783_v6, 1  ;;  %v574_v59 = vrot.slane %v6785_v7, 1  ;;  %436 = vst [vmem:[#allocation2 + $0xf1] sm:$0xff] %v403_v4  ;;  %437 = vst [vmem:[#allocation2 + $0xf9] sm:$0xff] %v404_v10  ;;  %v405_v39 = vld [vmem:[%s6622_s30 + $0xa0] sm:$0xff] }
  0xb3   : > { %4958 = vmatprep.subr.bf16.mxu0 %v6143_v22  ;;  %5774 = vmatprep.subr.bf16.mxu1 %v6144_v23  ;;  %v689_v22 = vrot.slane %v6787_v8, 2  ;;  %v576_v60 = vrot.slane %v6787_v8, 1  ;;  %v6854_v0 = vpack.c.bf16 %v695_v56, %v693_v51  ;;  %v698_v5 = vsel %vm665_vm1, %v696_v46, %v697_v52  ;;  %v406_v43 = vld [vmem:[%s6622_s30 + $0xa8] sm:$0xff]  ;;  %438 = vst [vmem:[#allocation2 + $0x109] sm:$0xff] %v405_v39  ;;  %v408_v49 = vld [vmem:[%s6622_s30 + $0xb8] sm:$0xff]  ;;  %v6159_v10 = vld [vmem:[#allocation7 + $0x50] sm:$0xff]  }
  0xb4   : > { %v700_v8 = vsel %vm665_vm1, %v697_v52, %v699_v53  ;;  %v575_v11 = vsel %vm552_vm0, %v573_v57, %v574_v59  ;;  %439 = vst [vmem:[#allocation2 + $0x111] sm:$0xff] %v406_v43  ;;  %441 = vst [vmem:[#allocation2 + $0x129] sm:$0xff] %v408_v49 }
  0xb5   : > { %v690_v31 = vsel %vm665_vm1, %v687_v21, %v689_v22  ;;  %8637 = vst [vmem:[#allocation18_spill] sm:$0xff] %v6854_v0  ;;  %v577_v12 = vsel %vm552_vm0, %v574_v59, %v576_v60  ;;  %v6880_v26 = vpack.c.bf16 %v700_v8, %v698_v5  ;;  %v6930_v8 = vpack.c.bf16 %v6785_v7, %v6783_v6  ;;  %v411_v6 = vld [vmem:[%s6622_s30 + $0xd0] sm:$0xff]  ;;  %v412_v7 = vld [vmem:[%s6622_s30 + $0xd8] sm:$0xff] }
  0xb6   : > { %4959 = vmatpush3.bf16.msra.mxu0 %v6145_v28  ;;  %5775 = vmatpush3.bf16.msra.mxu1 %v6144_v23  ;;  %v6806_v23 = vpack.c.bf16 %v567_v19, %v565_v14  ;;  %v397_v28 = vld [vmem:[%s6622_s30 + $0x60] sm:$0xff]  ;;  %v578_v14 = vrot.slane %v6798_v18, 1  ;;  %444 = vst [vmem:[#allocation2 + $0x151] sm:$0xff] %v411_v6  ;;  %445 = vst [vmem:[#allocation2 + $0x159] sm:$0xff] %v412_v7 }
  0xb7   : > { %5808 = vmatprep.subr.bf16.mxu0 %v6748_v29  ;;  %5080 = vmatprep.subr.bf16.mxu1 %v6147_v30  ;;  %v688_v30 = vsel %vm665_vm1, %v686_v16, %v687_v21  ;;  %430 = vst [vmem:[#allocation2 + $0xa9] sm:$0xff] %v397_v28  ;;  %8638 = vst [vmem:[#allocation19_spill] sm:$0xff] %v6880_v26  ;;  %v6884_v28 = vld [vmem:[#allocation2 + $0xc0] sm:$0xff] }
  0xb8   : > { %v6836_v45 = vpack.c.bf16 %v690_v31, %v688_v30  ;;  %v6886_v30 = vld [vmem:[#allocation2 + $0xc8] sm:$0xff]  ;;  %v6888_v31 = vld [vmem:[#allocation2 + $0xd0] sm:$0x3]  ;;  %v706_v37 = vrot.slane %v6884_v28, 2  ;;  %v6901_v48 = vld [vmem:[#allocation2 + $0xd8] sm:$0xff] }
  0xb9   : > { %1120 = vmatmul.mubr.bf16.vlgmr.msra.gmra.mxu0 %v6760_v47  ;;  %5777 = vmatmul.mubr.bf16.vlgmr.msra.gmra.mxu1 %v6790_v9  ;;  %v707_v38 = vrot.slane %v6886_v30, 2  ;;  %v709_v46 = vrot.slane %v6888_v31, 2  ;;  %v6906_v51 = vld [vmem:[#allocation2 + $0xe0] sm:$0xff]  ;;  %v6908_v52 = vld [vmem:[#allocation2 + $0xe8] sm:$0x3]  ;;  %v711_v53 = vrot.slane %v6901_v48, 2 }
  0xba   : > { %5809 = vmatpush3.bf16.msra.mxu0 %v6748_v29  ;;  %5081 = vmatpush3.bf16.msra.mxu1 %v6148_v55  ;;  %v6812_v29 = vpack.c.bf16 %v685_v24, %v683_v20  ;;  %8636 = vst [vmem:[#allocation17_spill] sm:$0xff] %v6836_v45  ;;  %v6154_v55 = vld [vmem:[#allocation7 + $0x60] sm:$0xff]   ;;  %v6876_v20 = vpack.c.bf16 %v6776_v63, %v6774_v62  ;;  %v6157_v24 = vld [vmem:[#allocation7 + $0x58] sm:$0xff]   ;;  %v579_v62 = vrot.slane %v6816_v33, 1  ;;  %v581_v63 = vrot.slane %v6818_v34, 1  ;;  %v407_v34 = vld [vmem:[%s6622_s30 + $0xb0] sm:$0xff] }
  0xbb   : > { %5810 = vmatprep.subr.bf16.mxu0 %v6151_v13  ;;  %5082 = vmatprep.subr.bf16.mxu1 %v6149_v1  ;;  %v6155_v1 = vld [vmem:[#allocation7 + $0x20] sm:$0xff]   ;;  %440 = vst [vmem:[#allocation2 + $0x121] sm:$0xff] %v407_v34  ;;  %v714_v56 = vrot.slane %v6908_v52, 2  ;;  %v6916_v57 = vld [vmem:[#allocation2 + $0xf0] sm:$0xff]  ;;  %v6918_v59 = vld [vmem:[#allocation2 + $0xf8] sm:$0xff]  ;;  %v708_v60 = vsel %vm665_vm1, %v706_v37, %v707_v38  ;;  %v710_v61 = vsel %vm665_vm1, %v707_v38, %v709_v46 }
  0xbc   : > { %8635 = vst [vmem:[#allocation16_spill] sm:$0xff] %v6812_v29  ;;  %1127 = vmatprep.mubr.bf16.mxu0 %v6806_v23  ;;  %5780 = vmatprep.mubr.bf16.mxu1 %v6812_v29  ;;  %v6924_v3 = vld [vmem:[#allocation2 + $0x100] sm:$0x3]  ;;  %v6950_v37 = vld [vmem:[#allocation2 + $0x110] sm:$0xff]  ;;  %v6952_v38 = vld [vmem:[#allocation2 + $0x118] sm:$0x3] }
  0xbd   : > { %v722_v39 = vrot.slane %v6950_v37, 2  ;;  %v724_v43 = vrot.slane %v6952_v38, 2  ;;  %v6161_v46 = vld [vmem:[#allocation7 + $0xa0] sm:$0xff]  }
  0xbe   : > { %5811 = vmatpush3.bf16.msra.mxu0 %v6151_v13  ;;  %5083 = vmatpush3.bf16.msra.mxu1 %v6150_v17  ;;  %v6866_v13 = vld [vmem:[#allocation2 + $0xa8] sm:$0xff]  ;;  %v6869_v16 = vld [vmem:[#allocation2 + $0xb0] sm:$0xff]  ;;  %v6871_v17 = vld [vmem:[#allocation2 + $0xb8] sm:$0x3] }
  0xbf   : > { %5084 = vmatprep.subr.bf16.mxu1 %v6152_v27  ;;  %v701_v19 = vrot.slane %v6866_v13, 2  ;;  %v702_v21 = vrot.slane %v6869_v16, 2  ;;  %v704_v22 = vrot.slane %v6871_v17, 2  ;;  %5812 = vmatprep.subr.bf16.mxu0 %v6156_v15  ;;  %v6882_v27 = vpack.c.bf16 %v577_v12, %v575_v11 }
  0xc0   : > { %v583_v11 = vrot.slane %v6829_v40, 1  ;;  %v584_v12 = vrot.slane %v6831_v41, 1 }
  0xc1   : > { %1128 = vmatmul.mubr.bf16.gmra.mxu0 %v6824_v36  ;;  %5781 = vmatmul.mubr.bf16.gmra.mxu1 %v6836_v45  ;;  %v703_v32 = vsel %vm665_vm1, %v701_v19, %v702_v21  ;;  %v705_v35 = vsel %vm665_vm1, %v702_v21, %v704_v22  ;;  %v410_v19 = vld [vmem:[%s6622_s30 + $0xc8] sm:$0xff]  ;;  %v6936_v21 = vpack.c.bf16 %v710_v61, %v708_v60  ;;  %v7063_v45 = vld [vmem:[#allocation2 + $0x10] sm:$0x3] }
  0xc2   : > { %1135 = vmatprep.mubr.bf16.mxu0 %v6843_v50  ;;  %5784 = vmatprep.mubr.bf16.mxu1 %v6854_v0  ;;  %v6898_v44 = vpack.c.bf16 %v705_v35, %v703_v32  ;;  %443 = vst [vmem:[#allocation2 + $0x141] sm:$0xff] %v410_v19  ;;  %v719_v32 = vrot.slane %v6924_v3, 2  ;;  %v6948_v35 = vld [vmem:[#allocation2 + $0x108] sm:$0xff]  ;;  %v6958_v34 = vld [vmem:[#allocation2 + $0x120] sm:$0xff]  ;;  %v588_v19 = vrot.slane %v6866_v13, 1 }
  0xc3   : > { %5085 = vmatpush3.bf16.msra.mxu1 %v6153_v54  ;;  %5813 = vmatpush3.bf16.msra.mxu0 %v6156_v15  ;;  %v580_v54 = vsel %vm552_vm0, %v578_v14, %v579_v62  ;;  %v6160_v14 = vld [vmem:[#allocation7 + $0x10] sm:$0xff]   ;;  %v409_v15 = vld [vmem:[%s6622_s30 + $0xc0] sm:$0xff]  ;;  %8640 = vst [vmem:[#allocation21_spill] sm:$0xff] %v6936_v21  ;;  %v6960_v49 = vld [vmem:[#allocation2 + $0x128] sm:$0xff] }
  0xc4   : > { %5086 = vmatprep.subr.bf16.mxu1 %v6154_v55  ;;  %8639 = vst [vmem:[#allocation20_spill] sm:$0xff] %v6898_v44  ;;  %v712_v55 = vrot.slane %v6906_v51, 2  ;;  %442 = vst [vmem:[#allocation2 + $0x139] sm:$0xff] %v409_v15  ;;  %5814 = vmatprep.subr.bf16.mxu0 %v6161_v46  ;;  %v7059_v0 = vld [vmem:[#allocation2] sm:$0xff] }
  0xc6   : > { %v713_v4 = vsel %vm665_vm1, %v711_v53, %v712_v55  ;;  %v715_v5 = vsel %vm665_vm1, %v712_v55, %v714_v56  ;;  %v585_v53 = vsel %vm552_vm0, %v583_v11, %v584_v12  ;;  %v6966_v55 = vld [vmem:[#allocation2 + $0x130] sm:$0x3]  ;;  %v6162_v56 = vld [vmem:[#allocation7 + $0x48] sm:$0xff]  }
  0xc7   : > { %5087 = vmatpush3.bf16.msra.mxu1 %v6155_v1  ;;  %v582_v1 = vsel %vm552_vm0, %v579_v62, %v581_v63  ;;  %v6944_v62 = vpack.c.bf16 %v715_v5, %v713_v4  ;;  %v717_v63 = vrot.slane %v6918_v59, 2  ;;  %v725_v5 = vsel %vm665_vm1, %v722_v39, %v724_v43  ;;  %5815 = vmatpush3.bf16.msra.mxu0 %v6161_v46  ;;  %v414_v11 = vld [vmem:[%s6622_s30 + $0xe8] sm:$0xff] }
  0xc8   : > { %5088 = vmatprep.subr.bf16.mxu1 %v6157_v24  ;;  %v6938_v22 = vpack.c.bf16 %v582_v1, %v580_v54  ;;  %v716_v24 = vrot.slane %v6916_v57, 2  ;;  %v6163_v1 = vld [vmem:[#allocation7 + $0x8] sm:$0xff]   ;;  %447 = vst [vmem:[#allocation2 + $0x171] sm:$0xff] %v414_v11  ;;  %v729_v43 = vrot.slane %v6966_v55, 2 }
  0xc9   : > { %1136 = vmatmul.mubr.bf16.gmra.mxu0 %v6876_v20  ;;  %5785 = vmatmul.mubr.bf16.gmra.mxu1 %v6880_v26  ;;  %8641 = vst [vmem:[#allocation22_spill] sm:$0xff] %v6944_v62  ;;  %v720_v61 = vsel %vm665_vm1, %v717_v63, %v719_v32  ;;  %v6988_v7 = vld [vmem:[#allocation2 + $0x148] sm:$0x3]  ;;  %v591_v32 = vrot.slane %v6871_v17, 1  ;;  %v598_v26 = vrot.slane %v6901_v48, 1 }
  0xca   : > { %1143 = vmatprep.mubr.bf16.mxu0 %v6882_v27  ;;  %5788 = vmatprep.mubr.bf16.mxu1 %v6898_v44  ;;  %v718_v60 = vsel %vm665_vm1, %v716_v24, %v717_v63  ;;  %v589_v24 = vrot.slane %v6869_v16, 1 }
  0xcb   : > { %5089 = vmatpush3.bf16.msra.mxu1 %v6158_v25  ;;  %v586_v25 = vrot.slane %v6833_v42, 1  ;;  %v721_v42 = vrot.slane %v6948_v35, 2  ;;  %v6986_v6 = vld [vmem:[#allocation2 + $0x140] sm:$0xff]  ;;  %v6990_v63 = vpack.c.bf16 %v720_v61, %v718_v60  ;;  %v7003_v60 = vld [vmem:[#allocation2 + $0x150] sm:$0xff] }
  0xcc   : > { %5090 = vmatprep.subr.bf16.mxu1 %v6159_v10  ;;  %v413_v10 = vld [vmem:[%s6622_s30 + $0xe0] sm:$0xff]  ;;  %v590_v17 = vsel %vm552_vm0, %v588_v19, %v589_v24 }
  0xcd   : > { %v587_v54 = vsel %vm552_vm0, %v584_v12, %v586_v25  ;;  %v723_v4 = vsel %vm665_vm1, %v721_v42, %v722_v39  ;;  %v415_v12 = vld [vmem:[%s6622_s30 + $0xf0] sm:$0xff]  ;;  %v6984_v25 = vld [vmem:[#allocation2 + $0x138] sm:$0xff]  ;;  %446 = vst [vmem:[#allocation2 + $0x169] sm:$0xff] %v413_v10  ;;  %8642 = vst [vmem:[#allocation23_spill] sm:$0xff] %v6990_v63 }
  0xce   : > { %v6980_v15 = vpack.c.bf16 %v587_v54, %v585_v53  ;;  %448 = vst [vmem:[#allocation2 + $0x181] sm:$0xff] %v415_v12  ;;  %v416_v42 = vld [vmem:[%s6622_s30 + $0xf8] sm:$0xff]  ;;  %v6996_v39 = vpack.c.bf16 %v725_v5, %v723_v4  ;;  %v731_v46 = vrot.slane %v6984_v25, 2  ;;  %v732_v53 = vrot.slane %v6986_v6, 2  ;;  %v6165_v61 = vld [vmem:[#allocation7] sm:$0xff]   ;;  %s6383_s30 = sshll.u32 %s6457_s22, 4  ;;  %s6384_s30 = int_to_ptr.vmem [resolvable:$false] %s6383_s30 }
  0xcf   : > { %5091 = vmatpush3.bf16.msra.mxu1 %v6160_v14  ;;  %v6978_v14 = vpack.c.bf16 %v6816_v33, %v6798_v18  ;;  %v726_v18 = vrot.slane %v6958_v34, 2  ;;  %v727_v33 = vrot.slane %v6960_v49, 2  ;;  %449 = vst [vmem:[#allocation2 + $0x189] sm:$0xff] %v416_v42  ;;  %v734_v54 = vrot.slane %v6988_v7, 2  ;;  %v7009_v4 = vld [vmem:[#allocation2 + $0x158] sm:$0xff]  ;;  %s6385_s24 = scalar_lea.vmem %s6384_s30, 8192  ;;  %p6386_p13 = scmp.lt.s32.totalorder %s8519_s7, %s6384_s30 }
  0xd0   : > { %5092 = vmatprep.subr.bf16.mxu1 %v6162_v56  ;;  %8643 = vst [vmem:[#allocation24_spill] sm:$0xff] %v6996_v39  ;;  %v6164_v56 = vld [vmem:[#allocation7 + $0x40] sm:$0xff]   ;;  %v6166_v12 = vld [vmem:[#allocation7 + $0x98] sm:$0xff]   ;;  %p6387_p7 = scmp.lt.s32.totalorder %s6385_s24, %s6379_s29 }
  0xd1   : > { %1144 = vmatmul.mubr.bf16.gmra.mxu0 %v6930_v8  ;;  %5789 = vmatmul.mubr.bf16.gmra.mxu1 %v6936_v21  ;;  %v7011_v5 = vld [vmem:[#allocation2 + $0x160] sm:$0x3]  ;;  %v728_v10 = vsel %vm665_vm1, %v726_v18, %v727_v33  ;;  %v730_v11 = vsel %vm665_vm1, %v727_v33, %v729_v43  ;;  %v7016_v42 = vld [vmem:[#allocation7 + $0x238] sm:$0xff]   ;;  %v735_v19 = vsel %vm665_vm1, %v732_v53, %v734_v54  ;;  %v594_v43 = vrot.slane %v6886_v30, 1 }
  0xd2   : > { %1151 = vmatprep.mubr.bf16.mxu0 %v6938_v22  ;;  %5792 = vmatprep.mubr.bf16.mxu1 %v6944_v62  ;;  %v7027_v18 = vpack.c.bf16 %v6831_v41, %v6829_v40  ;;  %v736_v54 = vrot.slane %v7003_v60, 2  ;;  %v739_v40 = vrot.slane %v7011_v5, 2  ;;  %p6388_p10 = por %p6387_p7, %p6386_p13 }
  0xd3   : > { %5093 = vmatpush3.bf16.msra.mxu1 %v6163_v1  ;;  %v592_v1 = vsel %vm552_vm0, %v589_v24, %v591_v32  ;;  %v593_v24 = vrot.slane %v6884_v28, 1  ;;  %5816 = vmatprep.subr.bf16.mxu0 %v6166_v12 }
  0xd4   : > { %5094 = vmatprep.subr.bf16.mxu1 %v6164_v56  ;;  %v7021_v32 = vld [vmem:[#allocation2 + $0x168] sm:$0xff]  ;;  %v7023_v62 = vld [vmem:[#allocation2 + $0x170] sm:$0xff]  ;;  %v7029_v33 = vpack.c.bf16 %v592_v1, %v590_v17  ;;  %v596_v56 = vrot.slane %v6888_v31, 1  ;;  %5817 = vmatpush3.bf16.msra.mxu0 %v6166_v12  ;;  %p6389_p0 = pnand %p6388_p10, %p6382_p6 }
  0xd5   : > { %v741_v17 = vrot.slane %v7021_v32, 2  ;;  %v742_v31 = vrot.slane %v7023_v62, 2  ;;  %v7054_v21 = vld [vmem:[#allocation2 + $0x180] sm:$0xff] }
  0xd6   : > { %v597_v12 = vsel %vm552_vm0, %v594_v43, %v596_v56  ;;  %v7056_v44 = vld [vmem:[#allocation2 + $0x188] sm:$0xff]  ;;  %v7067_v56 = vld [vmem:[#allocation2 + $0x190] sm:$0x3]  ;;  %v884_v9 = vrot.slane %v7054_v21, 2 }
  0xd7   : > { %5095 = vmatpush3.bf16.msra.mxu1 %v6165_v61  ;;  %v737_v61 = vrot.slane %v7009_v4, 2 }
  0xd8   : > { %5856 = vmatprep.subr.bf16.mxu1 %v7016_v42 }
  0xd9   : > { %1152 = vmatmul.mubr.bf16.gmra.mxu0 %v6978_v14  ;;  %5793 = vmatmul.mubr.bf16.gmra.mxu1 %v6990_v63  ;;  %v733_v63 = vsel %vm665_vm1, %v731_v46, %v732_v53  ;;  %v7033_v46 = vld [vmem:[#allocation2 + $0x178] sm:$0x3]  ;;  %v7036_v53 = vpack.c.bf16 %v730_v11, %v728_v10  ;;  %v6170_v10 = vld [vmem:[#allocation7 + $0x88] sm:$0xff]   ;;  %v595_v11 = vsel %vm552_vm0, %v593_v24, %v594_v43 }
  0xda   : > { %1159 = vmatprep.mubr.bf16.mxu0 %v6980_v15  ;;  %5796 = vmatprep.mubr.bf16.mxu1 %v6996_v39  ;;  %v7041_v41 = vpack.c.bf16 %v735_v19, %v733_v63  ;;  %v744_v1 = vrot.slane %v7033_v46, 2  ;;  %v6168_v39 = vld [vmem:[#allocation7 + $0x90] sm:$0xff]   ;;  %v738_v63 = vsel %vm665_vm1, %v736_v54, %v737_v61  ;;  %v740_v19 = vsel %vm665_vm1, %v737_v61, %v739_v40 }
  0xdb   : > { %8644 = vst [vmem:[#allocation25_spill] sm:$0xff] %v7036_v53  ;;  %5818 = vmatprep.subr.bf16.mxu0 %v6168_v39  ;;  %v743_v24 = vsel %vm665_vm1, %v741_v17, %v742_v31  ;;  %v7071_v54 = vpack.c.bf16 %v6869_v16, %v6866_v13  ;;  %v7073_v61 = vpack.c.bf16 %v597_v12, %v595_v11  ;;  %v599_v40 = vrot.slane %v6906_v51, 1 }
  0xdc   : > { %8645 = vst [vmem:[#allocation26_spill] sm:$0xff] %v7041_v41  ;;  %v745_v43 = vsel %vm665_vm1, %v742_v31, %v744_v1  ;;  %5819 = vmatpush3.bf16.msra.mxu0 %v6168_v39  ;;  %v7076_v29 = vpack.c.bf16 %v740_v19, %v738_v63  ;;  %v601_v17 = vrot.slane %v6908_v52, 1  ;;  %v7082_v31 = vpack.c.bf16 %v7023_v62, %v7021_v32  ;;  %v6174_v63 = vld [vmem:[#allocation7 + $0x1f8] sm:$0xff]  }
  0xdd   : > { %8646 = vst [vmem:[#allocation27_spill] sm:$0xff] %v7073_v61  ;;  %5820 = vmatprep.subr.bf16.mxu0 %v6170_v10  ;;  %v7084_v39 = vpack.c.bf16 %v745_v43, %v743_v24  ;;  %v885_v13 = vrot.slane %v7056_v44, 2  ;;  %v887_v16 = vrot.slane %v7067_v56, 2  ;;  %v7090_v1 = vpack.c.bf16 %v7056_v44, %v7054_v21 }
  0xde   : > { %8647 = vst [vmem:[#allocation28_spill] sm:$0xff] %v7076_v29  ;;  %v553_v11 = vrot.slane %v7059_v0, 1  ;;  %v556_v52 = vrot.slane %v7063_v45, 1  ;;  %v600_v43 = vsel %vm552_vm0, %v598_v26, %v599_v40  ;;  %v602_v2 = vsel %vm552_vm0, %v599_v40, %v601_v17 }
  0xdf   : > { %8648 = vst [vmem:[#allocation29_spill] sm:$0xff] %v7084_v39  ;;  %8649 = vst [vmem:[#allocation30_spill] sm:$0xff] %v7090_v1  ;;  %v886_v19 = vsel %vm665_vm1, %v884_v9, %v885_v13  ;;  %v888_v24 = vsel %vm665_vm1, %v885_v13, %v887_v16  ;;  %v603_v9 = vrot.slane %v6916_v57, 1  ;;  %v604_v26 = vrot.slane %v6918_v59, 1 }
  0xe0   : > { %5821 = vmatpush3.bf16.msra.mxu0 %v6170_v10  ;;  %v606_v40 = vrot.slane %v6924_v3, 1  ;;  %v608_v17 = vrot.slane %v6948_v35, 1 }
  0xe1   : > { %1160 = vmatmul.mubr.bf16.gmra.mxu0 %v7027_v18  ;;  %5797 = vmatmul.mubr.bf16.gmra.mxu1 %v7036_v53  ;;  %v7061_v53 = vld [vmem:[#allocation2 + $0x8] sm:$0xff]  ;;  %v605_v16 = vsel %vm552_vm0, %v603_v9, %v604_v26  ;;  %v628_v9 = vrot.slane %v7021_v32, 1  ;;  %v8650_v32 = vrot.slane %v7056_v44, 1 }
  0xe2   : > { %1167 = vmatprep.mubr.bf16.mxu0 %v7029_v33  ;;  %5800 = vmatprep.mubr.bf16.mxu1 %v7041_v41  ;;  %v6172_v41 = vld [vmem:[#allocation7 + $0x80] sm:$0xff]   ;;  %v554_v12 = vrot.slane %v7061_v53, 1  ;;  %v607_v3 = vsel %vm552_vm0, %v604_v26, %v606_v40  ;;  %v7158_v40 = vpack.c.bf16 %v6918_v59, %v6916_v57  ;;  %v7170_v57 = vpack.c.bf16 %v6950_v37, %v6948_v35 }
  0xe3   : > { %5822 = vmatprep.subr.bf16.mxu0 %v6172_v41  ;;  %v6173_v26 = vld [vmem:[#allocation7 + $0x220] sm:$0xff]   ;;  %v7182_v35 = vpack.c.bf16 %v6960_v49, %v6958_v34 }
  0xe4   : > { %v555_v10 = vsel %vm552_vm0, %v553_v11, %v554_v12  ;;  %v557_v1 = vsel %vm552_vm0, %v554_v12, %v556_v52  ;;  %5823 = vmatpush3.bf16.msra.mxu0 %v6172_v41  ;;  %v609_v41 = vrot.slane %v6950_v37, 1  ;;  %v618_v11 = vrot.slane %v6984_v25, 1 }
  0xe5   : > { %5216 = vmatprep.subr.bf16.mxu0 %v6174_v63  ;;  %v779_v13 = vpack.c.bf16 %v557_v1, %v555_v10  ;;  %v616_v1 = vrot.slane %v6966_v55, 1  ;;  %v619_v12 = vrot.slane %v6986_v6, 1  ;;  %v7132_v52 = vpack.c.bf16 %v6906_v51, %v6901_v48  ;;  %v6169_v55 = vld [vmem:[#allocation7 + $0x230] sm:$0xff]  }
  0xe6   : > { %v623_v63 = vrot.slane %v7003_v60, 1  ;;  %v626_v10 = vrot.slane %v7011_v5, 1  ;;  %v6171_v5 = vld [vmem:[#allocation7 + $0x228] sm:$0xff]   ;;  %v610_v48 = vsel %vm552_vm0, %v608_v17, %v609_v41 }
  0xe9   : > { %1168 = vmatmul.mubr.bf16.gmra.mxu0 %v7071_v54  ;;  %5801 = vmatmul.mubr.bf16.gmra.mxu1 %v7076_v29  ;;  %v7107_v29 = vpack.c.bf16 %v6886_v30, %v6884_v28  ;;  %v611_v28 = vrot.slane %v6952_v38, 1  ;;  %v614_v30 = vrot.slane %v6960_v49, 1  ;;  %v621_v38 = vrot.slane %v6988_v7, 1 }
  0xea   : > { %1175 = vmatprep.mubr.bf16.mxu0 %v7073_v61  ;;  %5804 = vmatprep.mubr.bf16.mxu1 %v7084_v39  ;;  %v7109_v61 = vpack.c.bf16 %v888_v24, %v886_v19  ;;  %v7111_v39 = vpack.c.bf16 %v602_v2, %v600_v43  ;;  %v613_v2 = vrot.slane %v6958_v34, 1  ;;  %v624_v19 = vrot.slane %v7009_v4, 1 }
  0xeb   : > { %v778_v24 = vpack.c.bf16 %v7061_v53, %v7059_v0  ;;  %v7138_v43 = vpack.c.bf16 %v607_v3, %v605_v16  ;;  %v629_v7 = vrot.slane %v7023_v62, 1  ;;  %v667_v16 = vrot.slane %v7061_v53, 2  ;;  %v6179_v53 = vld [vmem:[#allocation7 + $0x1e8] sm:$0xff]  }
  0xec   : > { %v669_v3 = vrot.slane %v7063_v45, 2  ;;  %v612_v51 = vsel %vm552_vm0, %v609_v41, %v611_v28  ;;  %v617_v17 = vsel %vm552_vm0, %v614_v30, %v616_v1  ;;  %v6181_v41 = vld [vmem:[#allocation7 + $0x210] sm:$0xff]   ;;  %v620_v28 = vsel %vm552_vm0, %v618_v11, %v619_v12 }
  0xed   : > { %v625_v1 = vsel %vm552_vm0, %v623_v63, %v624_v19  ;;  %v627_v11 = vsel %vm552_vm0, %v624_v19, %v626_v10  ;;  %v7194_v34 = vpack.c.bf16 %v6986_v6, %v6984_v25  ;;  %v7214_v6 = vpack.c.bf16 %v7009_v4, %v7003_v60  ;;  %v8655_v10 = vld [vmem:[#allocation30_spill] sm:$0xff]  ;;  %v6178_v45 = vld [vmem:[#allocation7 + $0x1b0] sm:$0xff]  }
  0xee   : > { %v7196_v49 = vpack.c.bf16 %v627_v11, %v625_v1  ;;  %v8651_v62 = vrot.slane %v7054_v21, 1  ;;  %v8652_v63 = vrot.slane %v7067_v56, 1  ;;  %v8653_v60 = vmov %v8650_v32  ;;  %v6192_v1 = vld [vmem:[#allocation7 + $0x1c0] sm:$0xff]   ;;  %v8663_v11 = vld [vmem:[#allocation20_spill] sm:$0xff] }
  0xef   : > { %v8654_v21 = vrot.slane %v7059_v0, 2  ;;  %v670_v44 = vsel %vm665_vm1, %v667_v16, %v669_v3  ;;  %v8658_v0 = vld [vmem:[#allocation15_spill] sm:$0xff]  ;;  %v6183_v3 = vld [vmem:[#allocation7 + $0x1a0] sm:$0xff]  }
  0xf0   : > { %v881_v4 = vsel %vm552_vm0, %v8653_v60, %v8652_v63  ;;  %v8668_v63 = vld [vmem:[#allocation25_spill] sm:$0xff]  ;;  %v8669_v60 = vld [vmem:[#allocation26_spill] sm:$0xff] }
  0xf1   : > { %1176 = vmatmul.mubr.bf16.gmra.mxu0 %v7107_v29  ;;  %5805 = vmatmul.mubr.bf16.gmra.mxu1 %v7109_v61  ;;  %v668_v56 = vsel %vm665_vm1, %v8654_v21, %v667_v16  ;;  %v8660_v16 = vld [vmem:[#allocation17_spill] sm:$0xff] }
  0xf2   : > { %1183 = vmatprep.mubr.bf16.mxu0 %v7111_v39  ;;  %1585 = vmatprep.mubr.bf16.mxu1 %v779_v13  ;;  %v631_v13 = vrot.slane %v7033_v46, 1  ;;  %v879_v46 = vsel %vm552_vm0, %v8651_v62, %v8650_v32  ;;  %v8665_v32 = vld [vmem:[#allocation22_spill] sm:$0xff]  ;;  %v8666_v62 = vld [vmem:[#allocation23_spill] sm:$0xff]  ;;  %v7279_v21 = vld [vmem:[#allocation2 + $0x198] sm:$0xff] }
  0xf3   : > { %v7232_v19 = vpack.c.bf16 %v881_v4, %v879_v46  ;;  %v8667_v46 = vld [vmem:[#allocation24_spill] sm:$0xff] }
  0xf4   : > { %v632_v25 = vsel %vm552_vm0, %v629_v7, %v631_v13  ;;  %v6177_v13 = vld [vmem:[#allocation7 + $0x1f0] sm:$0xff]  }
  0xf5   : > { %v8670_v4 = vld [vmem:[#allocation28_spill] sm:$0xff] }
  0xf9   : > { %1184 = vmatmul.mubr.bf16.gmra.mxu0 %v7132_v52  ;;  %1586 = vmatmul.mubr.bf16.vlgmr.msra.gmra.mxu1 %v778_v24  ;;  %v7160_v24 = vpack.c.bf16 %v612_v51, %v610_v48  ;;  %v8657_v48 = vld [vmem:[#allocation14_spill] sm:$0xff]  ;;  %v6180_v51 = vld [vmem:[#allocation7 + $0x1a8] sm:$0xff]  }
  0xfa   : > { %1191 = vmatprep.mubr.bf16.mxu0 %v7138_v43  ;;  %5857 = vmatpush3.bf16.msra.mxu1 %v7016_v42  ;;  %v615_v42 = vsel %vm552_vm0, %v613_v2, %v614_v30  ;;  %v622_v2 = vsel %vm552_vm0, %v619_v12, %v621_v38  ;;  %v6191_v30 = vld [vmem:[#allocation7 + $0x200] sm:$0xff]   ;;  %v630_v12 = vsel %vm552_vm0, %v628_v9, %v629_v7  ;;  %v8656_v9 = vld [vmem:[#allocation27_spill] sm:$0xff]  ;;  %v6175_v7 = vld [vmem:[#allocation7 + $0x1b8] sm:$0xff]  }
  0xfb   : > { %1593 = vmatprep.mubr.bf16.mxu1 %v6769_v58  ;;  %5858 = vmatprep.subr.bf16.mxu1 %v6169_v55  ;;  %v6176_v58 = vld [vmem:[#allocation7 + $0x218] sm:$0xff]   ;;  %v7172_v59 = vpack.c.bf16 %v617_v17, %v615_v42  ;;  %v7184_v37 = vpack.c.bf16 %v622_v2, %v620_v28  ;;  %v7216_v38 = vpack.c.bf16 %v632_v25, %v630_v12  ;;  %v6187_v17 = vld [vmem:[#allocation7 + $0x1d0] sm:$0xff]   ;;  %v6189_v2 = vld [vmem:[#allocation7 + $0x1c8] sm:$0xff]  }
  0xfc   : > { %v6185_v42 = vld [vmem:[#allocation7 + $0x198] sm:$0xff]   ;;  %v6188_v28 = vld [vmem:[#allocation7 + $0x190] sm:$0xff]   ;;  %v6193_v25 = vld [vmem:[#allocation7 + $0x180] sm:$0xff]  }
  0xfd   : > { %v8664_v12 = vld [vmem:[#allocation21_spill] sm:$0xff] }
  0xfe   : > { %5859 = vmatpush3.bf16.msra.mxu1 %v6169_v55  ;;  %v780_v55 = vpack.c.bf16 %v670_v44, %v668_v56  ;;  %v7281_v56 = vld [vmem:[#allocation2 + $0x1a0] sm:$0xff] }
  0xff   : > { %5860 = vmatprep.subr.bf16.mxu1 %v6171_v5  ;;  %v1892_v44 = vpack.c.bf16 %v7281_v56, %v7279_v21 }
 0x101   : > { %1192 = vmatmul.mubr.bf16.gmra.mxu0 %v7158_v40  ;;  %1594 = vmatmul.mubr.bf16.gmra.mxu1 %v6760_v47  ;;  %v6186_v47 = vld [vmem:[#allocation7 + $0x208] sm:$0xff]  }
 0x102   : > { %1199 = vmatprep.mubr.bf16.mxu0 %v7160_v24  ;;  %1601 = vmatprep.mubr.bf16.mxu1 %v6806_v23 }
 0x103   : > { %5861 = vmatpush3.bf16.msra.mxu1 %v6171_v5  ;;  %v8659_v5 = vld [vmem:[#allocation16_spill] sm:$0xff] }
 0x104   : > { %5862 = vmatprep.subr.bf16.mxu1 %v6173_v26 }
 0x107   : > { %5863 = vmatpush3.bf16.msra.mxu1 %v6173_v26  ;;  %v6182_v26 = vld [vmem:[#allocation7 + $0x1e0] sm:$0xff]  }
 0x108   : > { %5864 = vmatprep.subr.bf16.mxu1 %v6176_v58 }
 0x109   : > { %1200 = vmatmul.mubr.bf16.gmra.mxu0 %v7170_v57  ;;  %1602 = vmatmul.mubr.bf16.gmra.mxu1 %v6824_v36 }
 0x10a   : > { %1207 = vmatprep.mubr.bf16.mxu0 %v7172_v59  ;;  %1609 = vmatprep.mubr.bf16.mxu1 %v6843_v50 }
 0x10b   : > { %5865 = vmatpush3.bf16.msra.mxu1 %v6176_v58  ;;  %v6184_v58 = vld [vmem:[#allocation7 + $0x1d8] sm:$0xff]  }
 0x10c   : > { %5866 = vmatprep.subr.bf16.mxu1 %v6181_v41 }
 0x10f   : > { %5867 = vmatpush3.bf16.msra.mxu1 %v6181_v41  ;;  %v8661_v41 = vld [vmem:[#allocation18_spill] sm:$0xff] }
 0x110   : > { %5868 = vmatprep.subr.bf16.mxu1 %v6186_v47 }
 0x111   : > { %1208 = vmatmul.mubr.bf16.gmra.mxu0 %v7182_v35  ;;  %1610 = vmatmul.mubr.bf16.gmra.mxu1 %v6876_v20 }
 0x112   : > { %1215 = vmatprep.mubr.bf16.mxu0 %v7184_v37  ;;  %1617 = vmatprep.mubr.bf16.mxu1 %v6882_v27 }
 0x113   : > { %5869 = vmatpush3.bf16.msra.mxu1 %v6186_v47  ;;  %v8662_v47 = vld [vmem:[#allocation19_spill] sm:$0xff] }
 0x114   : > { %5870 = vmatprep.subr.bf16.mxu1 %v6191_v30 }
 0x117   : > { %5871 = vmatpush3.bf16.msra.mxu1 %v6191_v30  ;;  %v6190_v30 = vld [vmem:[#allocation7 + $0x188] sm:$0xff]  }
 0x119   : > { %1216 = vmatmul.mubr.bf16.gmra.mxu0 %v7194_v34  ;;  %1618 = vmatmul.mubr.bf16.gmra.mxu1 %v6930_v8 }
 0x11a   : > { %1223 = vmatprep.mubr.bf16.mxu0 %v7196_v49  ;;  %1625 = vmatprep.mubr.bf16.mxu1 %v6938_v22 }
 0x121   : > { %1224 = vmatmul.mubr.bf16.gmra.mxu0 %v7214_v6  ;;  %1626 = vmatmul.mubr.bf16.gmra.mxu1 %v6978_v14 }
 0x122   : > { %1231 = vmatprep.mubr.bf16.mxu0 %v7216_v38  ;;  %1633 = vmatprep.mubr.bf16.mxu1 %v6980_v15 }
 0x129   : > { %1232 = vmatmul.mubr.bf16.gmra.mxu0 %v7082_v31  ;;  %1634 = vmatmul.mubr.bf16.gmra.mxu1 %v7027_v18 }
 0x12a   : > { %1239 = vmatprep.mubr.bf16.mxu0 %v7232_v19  ;;  %1641 = vmatprep.mubr.bf16.mxu1 %v7029_v33 }
 0x131   : > { %1240 = vmatmul.mubr.bf16.gmra.mxu0 %v8655_v10  ;;  %1642 = vmatmul.mubr.bf16.gmra.mxu1 %v7071_v54 }
 0x132   : > { %5824 = vmatprep.mubr.bf16.mxu0 %v780_v55  ;;  %1649 = vmatprep.mubr.bf16.mxu1 %v8656_v9  ;;  %v8671_v55 = vld [vmem:[#allocation29_spill] sm:$0xff] }
 0x139   : > { %5825 = vmatmul.mubr.bf16.vlgmr.msra.gmra.mxu0 %v8657_v48  ;;  %1650 = vmatmul.mubr.bf16.gmra.mxu1 %v7107_v29 }
 0x13a   : > { %5217 = vmatpush3.bf16.msra.mxu0 %v6175_v7  ;;  %1657 = vmatprep.mubr.bf16.mxu1 %v7111_v39 }
 0x13b   : > { %5828 = vmatprep.mubr.bf16.mxu0 %v8658_v0  ;;  %5218 = vmatprep.subr.bf16.mxu0 %v6177_v13 }
 0x13e   : > { %5219 = vmatpush3.bf16.msra.mxu0 %v6178_v45 }
 0x13f   : > { %5220 = vmatprep.subr.bf16.mxu0 %v6179_v53 }
 0x141   : > { %5829 = vmatmul.mubr.bf16.gmra.mxu0 %v8659_v5  ;;  %1658 = vmatmul.mubr.bf16.gmra.mxu1 %v7132_v52 }
 0x142   : > { %5832 = vmatprep.mubr.bf16.mxu0 %v8660_v16  ;;  %1665 = vmatprep.mubr.bf16.mxu1 %v7138_v43 }
 0x143   : > { %5221 = vmatpush3.bf16.msra.mxu0 %v6180_v51 }
 0x144   : > { %5222 = vmatprep.subr.bf16.mxu0 %v6182_v26 }
 0x147   : > { %5223 = vmatpush3.bf16.msra.mxu0 %v6183_v3 }
 0x148   : > { %5224 = vmatprep.subr.bf16.mxu0 %v6184_v58 }
 0x149   : > { %5833 = vmatmul.mubr.bf16.gmra.mxu0 %v8661_v41  ;;  %1666 = vmatmul.mubr.bf16.gmra.mxu1 %v7158_v40 }
 0x14a   : > { %5836 = vmatprep.mubr.bf16.mxu0 %v8662_v47  ;;  %1673 = vmatprep.mubr.bf16.mxu1 %v7160_v24 }
 0x14b   : > { %5225 = vmatpush3.bf16.msra.mxu0 %v6185_v42 }
 0x14c   : > { %5226 = vmatprep.subr.bf16.mxu0 %v6187_v17 }
 0x14f   : > { %5227 = vmatpush3.bf16.msra.mxu0 %v6188_v28 }
 0x150   : > { %5228 = vmatprep.subr.bf16.mxu0 %v6189_v2 }
 0x151   : > { %5837 = vmatmul.mubr.bf16.gmra.mxu0 %v8663_v11  ;;  %1674 = vmatmul.mubr.bf16.gmra.mxu1 %v7170_v57 }
 0x152   : > { %5840 = vmatprep.mubr.bf16.mxu0 %v8664_v12  ;;  %1681 = vmatprep.mubr.bf16.mxu1 %v7172_v59 }
 0x153   : > { %5229 = vmatpush3.bf16.msra.mxu0 %v6190_v30 }
 0x154   : > { %5230 = vmatprep.subr.bf16.mxu0 %v6192_v1 }
 0x157   : > { %5231 = vmatpush3.bf16.msra.mxu0 %v6193_v25 }
 0x159   : > { %5841 = vmatmul.mubr.bf16.gmra.mxu0 %v8665_v32  ;;  %1682 = vmatmul.mubr.bf16.gmra.mxu1 %v7182_v35 }
 0x15a   : > { %5844 = vmatprep.mubr.bf16.mxu0 %v8666_v62  ;;  %1689 = vmatprep.mubr.bf16.mxu1 %v7184_v37 }
 0x161   : > { %5845 = vmatmul.mubr.bf16.gmra.mxu0 %v8667_v46  ;;  %1690 = vmatmul.mubr.bf16.gmra.mxu1 %v7194_v34 }
 0x162   : > { %5848 = vmatprep.mubr.bf16.mxu0 %v8668_v63  ;;  %1697 = vmatprep.mubr.bf16.mxu1 %v7196_v49 }
 0x169   : > { %5849 = vmatmul.mubr.bf16.gmra.mxu0 %v8669_v60  ;;  %1698 = vmatmul.mubr.bf16.gmra.mxu1 %v7214_v6 }
 0x16a   : > { %5852 = vmatprep.mubr.bf16.mxu0 %v8670_v4  ;;  %1705 = vmatprep.mubr.bf16.mxu1 %v7216_v38 }
 0x171   : > { %5853 = vmatmul.mubr.bf16.gmra.mxu0 %v8671_v55  ;;  %1706 = vmatmul.mubr.bf16.gmra.mxu1 %v7082_v31 }
 0x172   : > { %2120 = vmatprep.mubr.bf16.mxu0 %v6806_v23  ;;  %5872 = vmatprep.mubr.bf16.mxu1 %v8658_v0 }
 0x179   : > { %v4960_v7 = vpop.f32.mrf.mxu0  ;;  %2121 = vmatmul.mubr.bf16.vlgmr.msra.gmra.mxu0 %v6824_v36  ;;  %v5778_v13 = vpop.f32.mrf.mxu1  ;;  %5873 = vmatmul.mubr.bf16.vlgmr.msra.gmra.mxu1 %v8659_v5 }
 0x17a   : > { %2128 = vmatprep.mubr.bf16.mxu0 %v6843_v50  ;;  %5876 = vmatprep.mubr.bf16.mxu1 %v8660_v16 }
 0x17b   : > { %v4961_v48 = vpop.f32.mrf.mxu0  ;;  %v1282_v53 = vpop.f32.mrf.mxu1 }
 0x17c   : > { %v4962_v45 = vadd.f32 %v4961_v48, %v4960_v7 }
 0x17d   : > { %v4963_v51 = vpop.f32.mrf.mxu0  ;;  %v5779_v3 = vpop.f32.mrf.mxu1 }
 0x17e   : > { %v7293_v26 = vadd.f32 %v4962_v45, %v1282_v53 }
 0x17f   : > { %v4964_v23 = vpop.f32.mrf.mxu0  ;;  %v1285_v0 = vpop.f32.mrf.mxu1 }
 0x180   : > { %v4965_v58 = vadd.f32 %v4964_v23, %v4963_v51 }
 0x181   : > { %v4966_v42 = vpop.f32.mrf.mxu0  ;;  %2129 = vmatmul.mubr.bf16.gmra.mxu0 %v6876_v20  ;;  %v5782_v5 = vpop.f32.mrf.mxu1  ;;  %5877 = vmatmul.mubr.bf16.gmra.mxu1 %v8661_v41 }
 0x182   : > { %v7296_v36 = vadd.f32 %v4965_v58, %v1285_v0  ;;  %2136 = vmatprep.mubr.bf16.mxu0 %v6882_v27  ;;  %5880 = vmatprep.mubr.bf16.mxu1 %v8662_v47 }
 0x183   : > { %v4967_v50 = vpop.f32.mrf.mxu0  ;;  %v1298_v17 = vpop.f32.mrf.mxu1 }
 0x184   : > { %v4968_v16 = vadd.f32 %v4967_v50, %v4966_v42 }
 0x185   : > { %v4969_v28 = vpop.f32.mrf.mxu0  ;;  %v5783_v30 = vpop.f32.mrf.mxu1 }
 0x186   : > { %v7301_v2 = vadd.f32 %v5778_v13, %v4968_v16 }
 0x187   : > { %v4970_v1 = vpop.f32.mrf.mxu0  ;;  %v1301_v7 = vpop.f32.mrf.mxu1 }
 0x188   : > { %v4971_v25 = vadd.f32 %v4970_v1, %v4969_v28 }
 0x189   : > { %v4972_v20 = vpop.f32.mrf.mxu0  ;;  %2137 = vmatmul.mubr.bf16.gmra.mxu0 %v6930_v8  ;;  %v7306_v41 = vpop.f32.mrf.mxu1  ;;  %5881 = vmatmul.mubr.bf16.gmra.mxu1 %v8663_v11 }
 0x18a   : > { %v7304_v48 = vadd.f32 %v5779_v3, %v4971_v25  ;;  %2144 = vmatprep.mubr.bf16.mxu0 %v6938_v22  ;;  %5884 = vmatprep.mubr.bf16.mxu1 %v8664_v12 }
 0x18b   : > { %v4973_v27 = vpop.f32.mrf.mxu0  ;;  %v1314_v13 = vpop.f32.mrf.mxu1 }
 0x18c   : > { %v4974_v47 = vadd.f32 %v4973_v27, %v4972_v20 }
 0x18d   : > { %v4975_v45 = vpop.f32.mrf.mxu0  ;;  %v7313_v51 = vpop.f32.mrf.mxu1 }
 0x18e   : > { %v7311_v53 = vadd.f32 %v4974_v47, %v1298_v17 }
 0x18f   : > { %v4976_v23 = vpop.f32.mrf.mxu0  ;;  %v1317_v3 = vpop.f32.mrf.mxu1 }
 0x190   : > { %v4977_v8 = vadd.f32 %v4976_v23, %v4975_v45 }
 0x191   : > { %v4978_v58 = vpop.f32.mrf.mxu0  ;;  %2145 = vmatmul.mubr.bf16.gmra.mxu0 %v6978_v14  ;;  %v7318_v22 = vpop.f32.mrf.mxu1  ;;  %5885 = vmatmul.mubr.bf16.gmra.mxu1 %v8665_v32 }
 0x192   : > { %v7316_v0 = vadd.f32 %v4977_v8, %v1301_v7  ;;  %2152 = vmatprep.mubr.bf16.mxu0 %v6980_v15  ;;  %5888 = vmatprep.mubr.bf16.mxu1 %v8666_v62  ;;  %v6194_v15 = vld [vmem:[#allocation9 + $0x138] sm:$0xff]  }
 0x193   : > { %v4979_v11 = vpop.f32.mrf.mxu0  ;;  %v7323_v42 = vpop.f32.mrf.mxu1  ;;  %v6195_v62 = vld [vmem:[#allocation9 + $0xf8] sm:$0xff]   ;;  %5352 = vmatprep.subr.bf16.mxu1 %v6194_v15  ;;  %v1886_v15 = vrot.slane %v7281_v56, 2 }
 0x194   : > { %v4980_v12 = vadd.f32 %v4979_v11, %v4978_v58  ;;  %5353 = vmatpush3.bf16.msra.mxu1 %v6195_v62 }
 0x195   : > { %v4981_v50 = vpop.f32.mrf.mxu0  ;;  %v7327_v17 = vpop.f32.mrf.mxu1 }
 0x196   : > { %v7325_v16 = vadd.f32 %v5782_v5, %v4980_v12  ;;  %v6196_v5 = vld [vmem:[#allocation9 + $0x178] sm:$0xff]  }
 0x197   : > { %v4982_v14 = vpop.f32.mrf.mxu0  ;;  %v7329_v1 = vpop.f32.mrf.mxu1  ;;  %5904 = vmatprep.subr.bf16.mxu0 %v6196_v5 }
 0x198   : > { %v4983_v28 = vadd.f32 %v4982_v14, %v4981_v50  ;;  %5905 = vmatpush3.bf16.msra.mxu0 %v6196_v5 }
 0x199   : > { %v4984_v25 = vpop.f32.mrf.mxu0  ;;  %2153 = vmatmul.mubr.bf16.gmra.mxu0 %v7027_v18  ;;  %v7334_v7 = vpop.f32.mrf.mxu1  ;;  %5889 = vmatmul.mubr.bf16.gmra.mxu1 %v8667_v46 }
 0x19a   : > { %v7332_v32 = vadd.f32 %v5783_v30, %v4983_v28  ;;  %2160 = vmatprep.mubr.bf16.mxu0 %v7029_v33  ;;  %5892 = vmatprep.mubr.bf16.mxu1 %v8668_v63  ;;  %v6197_v63 = vld [vmem:[#allocation9 + $0x130] sm:$0xff]   ;;  %v7357_v28 = vld [vmem:[#allocation2 + $0x1a8] sm:$0x3] }
 0x19b   : > { %v4985_v20 = vpop.f32.mrf.mxu0  ;;  %v7339_v47 = vpop.f32.mrf.mxu1  ;;  %5354 = vmatprep.subr.bf16.mxu1 %v6197_v63 }
 0x19c   : > { %v4986_v27 = vadd.f32 %v4985_v20, %v4984_v25 }
 0x19d   : > { %v4987_v18 = vpop.f32.mrf.mxu0  ;;  %v7343_v45 = vpop.f32.mrf.mxu1 }
 0x19e   : > { %v7341_v30 = vadd.f32 %v4986_v27, %v1314_v13  ;;  %v6198_v13 = vld [vmem:[#allocation9 + $0xf0] sm:$0xff]   ;;  %v6199_v27 = vld [vmem:[#allocation9 + $0x128] sm:$0xff]  }
 0x19f   : > { %v4988_v33 = vpop.f32.mrf.mxu0  ;;  %v7345_v46 = vpop.f32.mrf.mxu1  ;;  %5355 = vmatpush3.bf16.msra.mxu1 %v6198_v13 }
 0x1a0   : > { %v4989_v23 = vadd.f32 %v4988_v33, %v4987_v18  ;;  %v6200_v33 = vld [vmem:[#allocation9 + $0xe8] sm:$0xff]   ;;  %5356 = vmatprep.subr.bf16.mxu1 %v6199_v27 }
 0x1a1   : > { %v4990_v8 = vpop.f32.mrf.mxu0  ;;  %2161 = vmatmul.mubr.bf16.gmra.mxu0 %v7071_v54  ;;  %v7350_v11 = vpop.f32.mrf.mxu1  ;;  %5893 = vmatmul.mubr.bf16.gmra.mxu1 %v8669_v60  ;;  %v1885_v60 = vrot.slane %v7279_v21, 2 }
 0x1a2   : > { %v7348_v58 = vadd.f32 %v4989_v23, %v1317_v3  ;;  %2168 = vmatprep.mubr.bf16.mxu0 %v8656_v9  ;;  %5896 = vmatprep.mubr.bf16.mxu1 %v8670_v4  ;;  %v1888_v4 = vrot.slane %v7357_v28, 2  ;;  %v6201_v23 = vld [vmem:[#allocation9 + $0x170] sm:$0xff]  }
 0x1a3   : > { %v4991_v12 = vpop.f32.mrf.mxu0  ;;  %v7355_v14 = vpop.f32.mrf.mxu1  ;;  %v1887_v63 = vsel %vm665_vm1, %v1885_v60, %v1886_v15  ;;  %5357 = vmatpush3.bf16.msra.mxu1 %v6200_v33  ;;  %5906 = vmatprep.subr.bf16.mxu0 %v6201_v23 }
 0x1a4   : > { %v4992_v50 = vadd.f32 %v4991_v12, %v4990_v8  ;;  %v1889_v13 = vsel %vm665_vm1, %v1886_v15, %v1888_v4  ;;  %5907 = vmatpush3.bf16.msra.mxu0 %v6201_v23  ;;  %v6202_v15 = vld [vmem:[#allocation9 + $0x120] sm:$0xff]  }
 0x1a5   : > { %v4993_v54 = vpop.f32.mrf.mxu0  ;;  %v7362_v25 = vpop.f32.mrf.mxu1  ;;  %5358 = vmatprep.subr.bf16.mxu1 %v6202_v15  ;;  %v6204_v15 = vld [vmem:[#allocation9 + $0x118] sm:$0xff]  }
 0x1a6   : > { %v7360_v3 = vadd.f32 %v7306_v41, %v4992_v50  ;;  %v1894_v50 = vpack.c.bf16 %v1889_v13, %v1887_v63 }
 0x1a7   : > { %v4994_v9 = vpop.f32.mrf.mxu0  ;;  %v7367_v5 = vpop.f32.mrf.mxu1 }
 0x1a8   : > { %v4995_v62 = vadd.f32 %v4994_v9, %v4993_v54 }
 0x1a9   : > { %v4996_v20 = vpop.f32.mrf.mxu0  ;;  %2169 = vmatmul.mubr.bf16.gmra.mxu0 %v7107_v29  ;;  %v7373_v41 = vpop.f32.mrf.mxu1  ;;  %5897 = vmatmul.mubr.bf16.gmra.mxu1 %v8671_v55 }
 0x1aa   : > { %v7371_v18 = vadd.f32 %v7313_v51, %v4995_v62  ;;  %2176 = vmatprep.mubr.bf16.mxu0 %v7111_v39  ;;  %5900 = vmatprep.mubr.bf16.mxu1 %v7109_v61 }
 0x1ab   : > { %v4997_v8 = vpop.f32.mrf.mxu0  ;;  %v7380_v12 = vpop.f32.mrf.mxu1 }
 0x1ac   : > { %v4998_v29 = vadd.f32 %v4997_v8, %v4996_v20 }
 0x1ad   : > { %v4999_v51 = vpop.f32.mrf.mxu0  ;;  %v7385_v55 = vpop.f32.mrf.mxu1 }
 0x1ae   : > { %v7383_v39 = vadd.f32 %v4998_v29, %v7323_v42  ;;  %v6203_v42 = vld [vmem:[#allocation9 + $0xe0] sm:$0xff]  }
 0x1af   : > { %v5000_v54 = vpop.f32.mrf.mxu0  ;;  %v7387_v9 = vpop.f32.mrf.mxu1  ;;  %5359 = vmatpush3.bf16.msra.mxu1 %v6203_v42  ;;  %v6205_v42 = vld [vmem:[#allocation9 + $0xd8] sm:$0xff]  }
 0x1b0   : > { %v5001_v61 = vadd.f32 %v5000_v54, %v4999_v51  ;;  %5360 = vmatprep.subr.bf16.mxu1 %v6204_v15 }
 0x1b1   : > { %v5002_v60 = vpop.f32.mrf.mxu0  ;;  %2177 = vmatmul.mubr.bf16.gmra.mxu0 %v7132_v52  ;;  %v7393_v62 = vpop.f32.mrf.mxu1  ;;  %5901 = vmatmul.mubr.bf16.gmra.mxu1 %v1894_v50 }
 0x1b2   : > { %v7391_v4 = vadd.f32 %v5001_v61, %v7329_v1  ;;  %2184 = vmatprep.mubr.bf16.mxu0 %v7138_v43 }
 0x1b3   : > { %v5003_v20 = vpop.f32.mrf.mxu0  ;;  %v7396_v33 = vpop.f32.mrf.mxu1  ;;  %5361 = vmatpush3.bf16.msra.mxu1 %v6205_v42 }
 0x1b4   : > { %v5004_v27 = vadd.f32 %v5003_v20, %v5002_v60  ;;  %v6206_v20 = vld [vmem:[#allocation9 + $0x168] sm:$0xff]  }
 0x1b5   : > { %v5005_v23 = vpop.f32.mrf.mxu0  ;;  %v7401_v52 = vpop.f32.mrf.mxu1  ;;  %5908 = vmatprep.subr.bf16.mxu0 %v6206_v20 }
 0x1b6   : > { %v7399_v8 = vadd.f32 %v7318_v22, %v5004_v27  ;;  %5909 = vmatpush3.bf16.msra.mxu0 %v6206_v20 }
 0x1b7   : > { %v5006_v1 = vpop.f32.mrf.mxu0  ;;  %v7403_v13 = vpop.f32.mrf.mxu1 }
 0x1b8   : > { %v5007_v63 = vadd.f32 %v5006_v1, %v5005_v23 }
 0x1b9   : > { %v5008_v29 = vpop.f32.mrf.mxu0  ;;  %2185 = vmatmul.mubr.bf16.gmra.mxu0 %v7158_v40  ;;  %v5096_v51 = vpop.f32.mrf.mxu1 }
 0x1ba   : > { %v7407_v43 = vadd.f32 %v7327_v17, %v5007_v63  ;;  %2192 = vmatprep.mubr.bf16.mxu0 %v7160_v24 }
 0x1bb   : > { %v5009_v50 = vpop.f32.mrf.mxu0  ;;  %v5097_v61 = vpop.f32.mrf.mxu1 }
 0x1bc   : > { %v5010_v54 = vadd.f32 %v5009_v50, %v5008_v29  ;;  %v5098_v22 = vadd.f32 %v5097_v61, %v5096_v51 }
 0x1bd   : > { %v5011_v60 = vpop.f32.mrf.mxu0  ;;  %v5099_v23 = vpop.f32.mrf.mxu1 }
 0x1be   : > { %v7411_v27 = vadd.f32 %v5010_v54, %v7339_v47  ;;  %v7414_v40 = vadd.f32 %v5098_v22, %v7293_v26 }
 0x1bf   : > { %v5012_v1 = vpop.f32.mrf.mxu0  ;;  %v5100_v24 = vpop.f32.mrf.mxu1 }
 0x1c0   : > { %v7416_v17 = vadd.f32 %v5012_v1, %v5011_v60  ;;  %v5101_v63 = vadd.f32 %v5100_v24, %v5099_v23 }
 0x1c1   : > { %v5014_v29 = vpop.f32.mrf.mxu0  ;;  %2193 = vmatmul.mubr.bf16.gmra.mxu0 %v7170_v57  ;;  %v5102_v51 = vpop.f32.mrf.mxu1 }
 0x1c2   : > { %2200 = vmatprep.mubr.bf16.mxu0 %v7172_v59  ;;  %v7421_v50 = vadd.f32 %v5101_v63, %v7296_v36  ;;  %v6207_v63 = vld [vmem:[#allocation9 + $0x110] sm:$0xff]  }
 0x1c3   : > { %v5015_v47 = vpop.f32.mrf.mxu0  ;;  %v5103_v54 = vpop.f32.mrf.mxu1  ;;  %5362 = vmatprep.subr.bf16.mxu1 %v6207_v63 }
 0x1c4   : > { %v5016_v26 = vadd.f32 %v5015_v47, %v5014_v29  ;;  %v5104_v61 = vadd.f32 %v5103_v54, %v5102_v51  ;;  %v6211_v29 = vld [vmem:[#allocation9 + $0x160] sm:$0xff]  }
 0x1c5   : > { %v5017_v22 = vpop.f32.mrf.mxu0  ;;  %v5105_v15 = vpop.f32.mrf.mxu1  ;;  %5910 = vmatprep.subr.bf16.mxu0 %v6211_v29 }
 0x1c6   : > { %v7424_v60 = vadd.f32 %v7334_v7, %v5016_v26  ;;  %v7427_v20 = vadd.f32 %v5104_v61, %v7301_v2  ;;  %v6208_v7 = vld [vmem:[#allocation9 + $0xd0] sm:$0xff]   ;;  %5911 = vmatpush3.bf16.msra.mxu0 %v6211_v29 }
 0x1c7   : > { %v5018_v42 = vpop.f32.mrf.mxu0  ;;  %v5106_v23 = vpop.f32.mrf.mxu1  ;;  %5363 = vmatpush3.bf16.msra.mxu1 %v6208_v7  ;;  %v6213_v7 = vld [vmem:[#allocation9 + $0x100] sm:$0xff]  }
 0x1c8   : > { %v5019_v57 = vadd.f32 %v5018_v42, %v5017_v22  ;;  %v5107_v1 = vadd.f32 %v5106_v23, %v5105_v15  ;;  %v6209_v42 = vld [vmem:[#allocation9 + $0x108] sm:$0xff]  }
 0x1c9   : > { %v5020_v59 = vpop.f32.mrf.mxu0  ;;  %2201 = vmatmul.mubr.bf16.gmra.mxu0 %v7182_v35  ;;  %v5108_v24 = vpop.f32.mrf.mxu1  ;;  %v6210_v23 = vld [vmem:[#allocation9 + $0xc8] sm:$0xff]   ;;  %5364 = vmatprep.subr.bf16.mxu1 %v6209_v42 }
 0x1ca   : > { %v7431_v36 = vadd.f32 %v7343_v45, %v5019_v57  ;;  %2208 = vmatprep.mubr.bf16.mxu0 %v7184_v37  ;;  %v7435_v47 = vadd.f32 %v5107_v1, %v7304_v48  ;;  %v6212_v37 = vld [vmem:[#allocation9 + $0x158] sm:$0xff]  }
 0x1cb   : > { %v5021_v51 = vpop.f32.mrf.mxu0  ;;  %v5109_v26 = vpop.f32.mrf.mxu1  ;;  %5912 = vmatprep.subr.bf16.mxu0 %v6212_v37  ;;  %5365 = vmatpush3.bf16.msra.mxu1 %v6210_v23 }
 0x1cc   : > { %v5022_v2 = vadd.f32 %v5021_v51, %v5020_v59  ;;  %v5110_v54 = vadd.f32 %v5109_v26, %v5108_v24  ;;  %5913 = vmatpush3.bf16.msra.mxu0 %v6212_v37  ;;  %5366 = vmatprep.subr.bf16.mxu1 %v6213_v7 }
 0x1cd   : > { %v5023_v61 = vpop.f32.mrf.mxu0  ;;  %v5111_v45 = vpop.f32.mrf.mxu1 }
 0x1ce   : > { %v7438_v35 = vadd.f32 %v5022_v2, %v7355_v14  ;;  %v7441_v15 = vadd.f32 %v5110_v54, %v7311_v53  ;;  %v6215_v14 = vld [vmem:[#allocation9 + $0x150] sm:$0xff]   ;;  %v6214_v2 = vld [vmem:[#allocation9 + $0xc0] sm:$0xff]  }
 0x1cf   : > { %v5024_v22 = vpop.f32.mrf.mxu0  ;;  %v5112_v57 = vpop.f32.mrf.mxu1  ;;  %5914 = vmatprep.subr.bf16.mxu0 %v6215_v14  ;;  %5367 = vmatpush3.bf16.msra.mxu1 %v6214_v2 }
 0x1d0   : > { %v7443_v48 = vadd.f32 %v5024_v22, %v5023_v61  ;;  %v5113_v1 = vadd.f32 %v5112_v57, %v5111_v45  ;;  %5915 = vmatpush3.bf16.msra.mxu0 %v6215_v14 }
 0x1d1   : > { %v5026_v59 = vpop.f32.mrf.mxu0  ;;  %2209 = vmatmul.mubr.bf16.gmra.mxu0 %v7194_v34  ;;  %v5114_v24 = vpop.f32.mrf.mxu1 }
 0x1d2   : > { %2216 = vmatprep.mubr.bf16.mxu0 %v7196_v49  ;;  %v7448_v53 = vadd.f32 %v5113_v1, %v7316_v0  ;;  %v6216_v49 = vld [vmem:[#allocation9 + $0x148] sm:$0xff]   ;;  %v6218_v1 = vld [vmem:[#allocation9 + $0x140] sm:$0xff]  }
 0x1d3   : > { %v5027_v63 = vpop.f32.mrf.mxu0  ;;  %v5115_v51 = vpop.f32.mrf.mxu1  ;;  %5916 = vmatprep.subr.bf16.mxu0 %v6216_v49 }
 0x1d4   : > { %v5028_v29 = vadd.f32 %v5027_v63, %v5026_v59  ;;  %v5116_v26 = vadd.f32 %v5115_v51, %v5114_v24  ;;  %5917 = vmatpush3.bf16.msra.mxu0 %v6216_v49  ;;  %v1879_v51 = vrot.slane %v7281_v56, 1  ;;  %v7479_v49 = vld [vmem:[#allocation9 + $0xb8] sm:$0xff]  }
 0x1d5   : > { %v5029_v54 = vpop.f32.mrf.mxu0  ;;  %v5117_v61 = vpop.f32.mrf.mxu1  ;;  %5918 = vmatprep.subr.bf16.mxu0 %v6218_v1  ;;  %5952 = vmatprep.subr.bf16.mxu1 %v7479_v49 }
 0x1d6   : > { %v7451_v34 = vadd.f32 %v7350_v11, %v5028_v29  ;;  %v7454_v22 = vadd.f32 %v5116_v26, %v7325_v16 }
 0x1d7   : > { %v5030_v45 = vpop.f32.mrf.mxu0  ;;  %v5118_v37 = vpop.f32.mrf.mxu1 }
 0x1d8   : > { %v5031_v0 = vadd.f32 %v5030_v45, %v5029_v54  ;;  %v5119_v42 = vadd.f32 %v5118_v37, %v5117_v61  ;;  %5919 = vmatpush3.bf16.msra.mxu0 %v6218_v1 }
 0x1d9   : > { %v5032_v57 = vpop.f32.mrf.mxu0  ;;  %2217 = vmatmul.mubr.bf16.gmra.mxu0 %v7214_v6  ;;  %v5120_v11 = vpop.f32.mrf.mxu1 }
 0x1da   : > { %v7458_v23 = vadd.f32 %v7362_v25, %v5031_v0  ;;  %2224 = vmatprep.mubr.bf16.mxu0 %v7216_v38  ;;  %v7462_v24 = vadd.f32 %v5119_v42, %v7332_v32  ;;  %v1878_v38 = vrot.slane %v7279_v21, 1  ;;  %v1881_v32 = vrot.slane %v7357_v28, 1 }
 0x1db   : > { %v5033_v59 = vpop.f32.mrf.mxu0  ;;  %v5121_v14 = vpop.f32.mrf.mxu1 }
 0x1dc   : > { %v5034_v16 = vadd.f32 %v5033_v59, %v5032_v57  ;;  %v5122_v63 = vadd.f32 %v5121_v14, %v5120_v11  ;;  %v1880_v0 = vsel %vm552_vm0, %v1878_v38, %v1879_v51  ;;  %v1882_v37 = vsel %vm552_vm0, %v1879_v51, %v1881_v32 }
 0x1dd   : > { %v7464_v7 = vpop.f32.mrf.mxu0  ;;  %v5123_v25 = vpop.f32.mrf.mxu1  ;;  %v1893_v1 = vpack.c.bf16 %v1882_v37, %v1880_v0 }
 0x1de   : > { %v7467_v6 = vadd.f32 %v5034_v16, %v7380_v12  ;;  %v7475_v2 = vadd.f32 %v5122_v63, %v7341_v30 }
 0x1df   : > { %v7469_v29 = vpop.f32.mrf.mxu0  ;;  %v5124_v26 = vpop.f32.mrf.mxu1 }
 0x1e0   : > { %v5125_v54 = vadd.f32 %v5124_v26, %v5123_v25 }
 0x1e1   : > { %v5038_v61 = vpop.f32.mrf.mxu0  ;;  %2225 = vmatmul.mubr.bf16.gmra.mxu0 %v7082_v31  ;;  %v5126_v12 = vpop.f32.mrf.mxu1 }
 0x1e2   : > { %2232 = vmatprep.mubr.bf16.mxu0 %v7232_v19  ;;  %v7484_v28 = vadd.f32 %v5125_v54, %v7348_v58 }
 0x1e3   : > { %v5039_v45 = vpop.f32.mrf.mxu0  ;;  %v5127_v42 = vpop.f32.mrf.mxu1 }
 0x1e4   : > { %v5040_v30 = vadd.f32 %v5039_v45, %v5038_v61  ;;  %v5128_v57 = vadd.f32 %v5127_v42, %v5126_v12 }
 0x1e5   : > { %v5041_v11 = vpop.f32.mrf.mxu0  ;;  %v5129_v19 = vpop.f32.mrf.mxu1 }
 0x1e6   : > { %v7488_v31 = vadd.f32 %v7373_v41, %v5040_v30  ;;  %v7491_v16 = vadd.f32 %v5128_v57, %v7360_v3 }
 0x1e7   : > { %v5042_v59 = vpop.f32.mrf.mxu0  ;;  %v5130_v63 = vpop.f32.mrf.mxu1 }
 0x1e8   : > { %v5043_v14 = vadd.f32 %v5042_v59, %v5041_v11  ;;  %v5131_v25 = vadd.f32 %v5130_v63, %v5129_v19 }
 0x1e9   : > { %v5044_v58 = vpop.f32.mrf.mxu0  ;;  %2233 = vmatmul.mubr.bf16.gmra.mxu0 %v8655_v10  ;;  %v5132_v51 = vpop.f32.mrf.mxu1 }
 0x1ea   : > { %v7495_v38 = vadd.f32 %v7385_v55, %v5043_v14  ;;  %2240 = vmatprep.mubr.bf16.mxu0 %v1893_v1  ;;  %v7498_v41 = vadd.f32 %v5131_v25, %v7371_v18 }
 0x1eb   : > { %v5045_v32 = vpop.f32.mrf.mxu0  ;;  %v5133_v54 = vpop.f32.mrf.mxu1 }
 0x1ec   : > { %v5046_v26 = vadd.f32 %v5045_v32, %v5044_v58  ;;  %v5134_v61 = vadd.f32 %v5133_v54, %v5132_v51 }
 0x1ed   : > { %v7500_v3 = vpop.f32.mrf.mxu0  ;;  %v5135_v45 = vpop.f32.mrf.mxu1 }
 0x1ee   : > { %v7503_v12 = vadd.f32 %v5046_v26, %v7396_v33  ;;  %v7508_v10 = vadd.f32 %v5134_v61, %v7383_v39 }
 0x1ef   : > { %v7505_v0 = vpop.f32.mrf.mxu0  ;;  %v5136_v55 = vpop.f32.mrf.mxu1 }
 0x1f0   : > { %v5137_v37 = vadd.f32 %v5136_v55, %v5135_v45 }
 0x1f1   : > { %v5050_v30 = vpop.f32.mrf.mxu0  ;;  %2241 = vmatmul.mubr.bf16.gmra.mxu0 %v1892_v44  ;;  %v5138_v18 = vpop.f32.mrf.mxu1 }
 0x1f2   : > { %v7514_v57 = vadd.f32 %v5137_v37, %v7391_v4 }
 0x1f3   : > { %v5051_v42 = vpop.f32.mrf.mxu0  ;;  %v5139_v11 = vpop.f32.mrf.mxu1 }
 0x1f4   : > { %v7516_v33 = vadd.f32 %v5051_v42, %v5050_v30  ;;  %v5140_v19 = vadd.f32 %v5139_v11, %v5138_v18 }
 0x1f5   : > { %v7518_v1 = vpop.f32.mrf.mxu0  ;;  %v5141_v39 = vpop.f32.mrf.mxu1 }
 0x1f6   : > { %v1644_v14 = vadd.f32 %v5140_v19, %v7399_v8 }
 0x1f7   : > { %v7520_v59 = vpop.f32.mrf.mxu0  ;;  %v5142_v63 = vpop.f32.mrf.mxu1 }
 0x1f8   : > { %v5143_v25 = vadd.f32 %v5142_v63, %v5141_v39 }
 0x1f9   : > { %v5826_v21 = vpop.f32.mrf.mxu0  ;;  %v5144_v56 = vpop.f32.mrf.mxu1 }
 0x1fa   : > { %v7524_v44 = vadd.f32 %v5826_v21, %v7427_v20  ;;  %v1647_v58 = vadd.f32 %v5143_v25, %v7407_v43  ;;  %v1350_v20 = vadd.f32 %v7416_v17, %v7345_v46 }
 0x1fb   : > { %v1748_v4 = vpop.f32.mrf.mxu0  ;;  %v5145_v51 = vpop.f32.mrf.mxu1 }
 0x1fc   : > { %v7528_v32 = vadd.f32 %v1748_v4, %v7414_v40  ;;  %v5146_v26 = vadd.f32 %v5145_v51, %v5144_v56 }
 0x1fd   : > { %v5827_v54 = vpop.f32.mrf.mxu0  ;;  %v5147_v61 = vpop.f32.mrf.mxu1 }
 0x1fe   : > { %v7531_v45 = vadd.f32 %v5827_v54, %v7435_v47  ;;  %v1652_v55 = vadd.f32 %v5146_v26, %v7411_v27 }
 0x1ff   : > { %v7533_v8 = vpop.f32.mrf.mxu0  ;;  %v5148_v37 = vpop.f32.mrf.mxu1 }
 0x200   : > { %v5149_v30 = vadd.f32 %v5148_v37, %v5147_v61 }
 0x201   : > { %v5830_v43 = vpop.f32.mrf.mxu0  ;;  %v5150_v18 = vpop.f32.mrf.mxu1 }
 0x202   : > { %v7539_v40 = vadd.f32 %v5830_v43, %v7454_v22  ;;  %v7541_v11 = vadd.f32 %v5149_v30, %v1350_v20 }
 0x203   : > { %v1764_v42 = vpop.f32.mrf.mxu0  ;;  %v5151_v19 = vpop.f32.mrf.mxu1 }
 0x204   : > { %v7544_v47 = vadd.f32 %v1764_v42, %v7441_v15  ;;  %v5152_v39 = vadd.f32 %v5151_v19, %v5150_v18 }
 0x205   : > { %v5831_v63 = vpop.f32.mrf.mxu0  ;;  %v5153_v27 = vpop.f32.mrf.mxu1 }
 0x206   : > { %v7547_v25 = vadd.f32 %v5831_v63, %v7462_v24  ;;  %v1660_v17 = vadd.f32 %v5152_v39, %v7424_v60 }
 0x207   : > { %v7549_v46 = vpop.f32.mrf.mxu0  ;;  %v5154_v21 = vpop.f32.mrf.mxu1 }
 0x208   : > { %v5155_v22 = vadd.f32 %v5154_v21, %v5153_v27 }
 0x209   : > { %v5834_v56 = vpop.f32.mrf.mxu0  ;;  %v5156_v4 = vpop.f32.mrf.mxu1 }
 0x20a   : > { %v7553_v51 = vadd.f32 %v5834_v56, %v7491_v16  ;;  %v1663_v15 = vadd.f32 %v5155_v22, %v7431_v36  ;;  %v1366_v16 = vadd.f32 %v7443_v48, %v7367_v5 }
 0x20b   : > { %v1780_v26 = vpop.f32.mrf.mxu0  ;;  %v5157_v54 = vpop.f32.mrf.mxu1 }
 0x20c   : > { %v7557_v61 = vadd.f32 %v1780_v26, %v7475_v2  ;;  %v5158_v24 = vadd.f32 %v5157_v54, %v5156_v4 }
 0x20d   : > { %v5835_v37 = vpop.f32.mrf.mxu0  ;;  %v5159_v20 = vpop.f32.mrf.mxu1 }
 0x20e   : > { %v7560_v30 = vadd.f32 %v5835_v37, %v7498_v41  ;;  %v1668_v43 = vadd.f32 %v5158_v24, %v7438_v35 }
 0x20f   : > { %v7562_v60 = vpop.f32.mrf.mxu0  ;;  %v5160_v18 = vpop.f32.mrf.mxu1 }
 0x210   : > { %v5161_v42 = vadd.f32 %v5160_v18, %v5159_v20 }
 0x211   : > { %v5838_v36 = vpop.f32.mrf.mxu0  ;;  %v5162_v19 = vpop.f32.mrf.mxu1 }
 0x212   : > { %v7567_v39 = vadd.f32 %v5838_v36, %v1644_v14  ;;  %v7569_v63 = vadd.f32 %v5161_v42, %v1366_v16 }
 0x213   : > { %v1796_v2 = vpop.f32.mrf.mxu0  ;;  %v5163_v27 = vpop.f32.mrf.mxu1 }
 0x214   : > { %v7572_v41 = vadd.f32 %v1796_v2, %v7508_v10  ;;  %v5164_v21 = vadd.f32 %v5163_v27, %v5162_v19 }
 0x215   : > { %v5839_v22 = vpop.f32.mrf.mxu0  ;;  %v5165_v56 = vpop.f32.mrf.mxu1 }
 0x216   : > { %v7574_v35 = vadd.f32 %v5839_v22, %v1647_v58  ;;  %v1676_v5 = vadd.f32 %v5164_v21, %v7451_v34  ;;  %v5037_v58 = vadd.f32 %v7469_v29, %v7464_v7 }
 0x217   : > { %v7576_v4 = vpop.f32.mrf.mxu0  ;;  %v5166_v48 = vpop.f32.mrf.mxu1 }
 0x218   : > { %v5167_v26 = vadd.f32 %v5166_v48, %v5165_v56  ;;  %v1382_v27 = vadd.f32 %v5037_v58, %v7387_v9  ;;  %v6223_v56 = vld [vmem:[#allocation9 + $0x78] sm:$0xff]  }
 0x219   : > { %v5842_v14 = vpop.f32.mrf.mxu0  ;;  %v5168_v54 = vpop.f32.mrf.mxu1  ;;  %5488 = vmatprep.subr.bf16.mxu0 %v6223_v56 }
 0x21a   : > { %v7579_v24 = vadd.f32 %v5842_v14, %v1660_v17  ;;  %v1679_v20 = vadd.f32 %v5167_v26, %v7458_v23 }
 0x21b   : > { %v1812_v37 = vpop.f32.mrf.mxu0  ;;  %v5169_v10 = vpop.f32.mrf.mxu1 }
 0x21c   : > { %v7582_v18 = vadd.f32 %v1812_v37, %v1652_v55  ;;  %v5170_v16 = vadd.f32 %v5169_v10, %v5168_v54 }
 0x21d   : > { %v5843_v42 = vpop.f32.mrf.mxu0  ;;  %v5171_v36 = vpop.f32.mrf.mxu1 }
 0x21e   : > { %v7586_v19 = vadd.f32 %v5843_v42, %v1663_v15  ;;  %v1684_v2 = vadd.f32 %v5170_v16, %v7467_v6 }
 0x21f   : > { %v7588_v34 = vpop.f32.mrf.mxu0  ;;  %v5172_v17 = vpop.f32.mrf.mxu1 }
 0x220   : > { %v5173_v21 = vadd.f32 %v5172_v17, %v5171_v36 }
 0x221   : > { %v5846_v23 = vpop.f32.mrf.mxu0  ;;  %v5174_v22 = vpop.f32.mrf.mxu1 }
 0x222   : > { %v7592_v55 = vadd.f32 %v5846_v23, %v1676_v5  ;;  %v7594_v7 = vadd.f32 %v5173_v21, %v1382_v27 }
 0x223   : > { %v1828_v48 = vpop.f32.mrf.mxu0  ;;  %v5175_v29 = vpop.f32.mrf.mxu1 }
 0x224   : > { %v7596_v26 = vadd.f32 %v1828_v48, %v1668_v43  ;;  %v5176_v15 = vadd.f32 %v5175_v29, %v5174_v22 }
 0x225   : > { %v5847_v14 = vpop.f32.mrf.mxu0  ;;  %v5177_v54 = vpop.f32.mrf.mxu1 }
 0x226   : > { %v7598_v6 = vadd.f32 %v5847_v14, %v1679_v20  ;;  %v1692_v9 = vadd.f32 %v5176_v15, %v7488_v31  ;;  %v5049_v20 = vadd.f32 %v7505_v0, %v7500_v3  ;;  %v1403_v0 = vadd.f32 %v7393_v62, %v7516_v33 }
 0x227   : > { %v7600_v37 = vpop.f32.mrf.mxu0  ;;  %v5178_v10 = vpop.f32.mrf.mxu1 }
 0x228   : > { %v5179_v5 = vadd.f32 %v5178_v10, %v5177_v54  ;;  %v1398_v15 = vadd.f32 %v5049_v20, %v7403_v13 }
 0x229   : > { %v5850_v58 = vpop.f32.mrf.mxu0  ;;  %v5180_v16 = vpop.f32.mrf.mxu1 }
 0x22a   : > { %v7603_v42 = vadd.f32 %v5850_v58, %v1692_v9  ;;  %v1695_v43 = vadd.f32 %v5179_v5, %v7495_v38  ;;  %v5055_v5 = vadd.f32 %v7520_v59, %v7518_v1 }
 0x22b   : > { %v1844_v36 = vpop.f32.mrf.mxu0  ;;  %v5181_v17 = vpop.f32.mrf.mxu1 }
 0x22c   : > { %v7606_v27 = vadd.f32 %v1844_v36, %v1684_v2  ;;  %v5182_v21 = vadd.f32 %v5181_v17, %v5180_v16  ;;  %v1406_v17 = vadd.f32 %v7401_v52, %v5055_v5  ;;  %v1752_v5 = vadd.f32 %v7533_v8, %v7421_v50 }
 0x22d   : > { %v5851_v23 = vpop.f32.mrf.mxu0  ;;  %v5183_v22 = vpop.f32.mrf.mxu1 }
 0x22e   : > { %v7610_v56 = vadd.f32 %v5851_v23, %v1695_v43  ;;  %v1700_v48 = vadd.f32 %v5182_v21, %v7503_v12 }
 0x22f   : > { %v7612_v31 = vpop.f32.mrf.mxu0  ;;  %v5184_v29 = vpop.f32.mrf.mxu1 }
 0x230   : > { %v5185_v14 = vadd.f32 %v5184_v29, %v5183_v22 }
 0x231   : > { %v5854_v38 = vpop.f32.mrf.mxu0  ;;  %v5186_v54 = vpop.f32.mrf.mxu1 }
 0x232   : > { %v7616_v9 = vadd.f32 %v5185_v14, %v1398_v15 }
 0x233   : > { %v1860_v2 = vpop.f32.mrf.mxu0  ;;  %v5187_v10 = vpop.f32.mrf.mxu1 }
 0x234   : > { %v7618_v3 = vadd.f32 %v1860_v2, %v1700_v48  ;;  %v5188_v58 = vadd.f32 %v5187_v10, %v5186_v54  ;;  %v7634_v54 = vld [vmem:[%s8566_s3] ss:$0 sm:$0xff] }
 0x235   : > { %v5855_v12 = vpop.f32.mrf.mxu0  ;;  %v5189_v16 = vpop.f32.mrf.mxu1 }
 0x236   : > { %v1708_v36 = vadd.f32 %v5188_v58, %v1403_v0 }
 0x237   : > { %v7624_v13 = vpop.f32.mrf.mxu0  ;;  %v5190_v43 = vpop.f32.mrf.mxu1 }
 0x238   : > { %v7627_v20 = vadd.f32 %v5854_v38, %v1708_v36  ;;  %v5191_v21 = vadd.f32 %v5190_v43, %v5189_v16 }
 0x239   : > { %v5232_v23 = vpop.f32.mrf.mxu0  ;;  %v5874_v22 = vpop.f32.mrf.mxu1 }
 0x23a   : > { %v1711_v48 = vadd.f32 %v5191_v21, %v1406_v17 }
 0x23b   : > { %v5233_v29 = vpop.f32.mrf.mxu0  ;;  %v2283_v33 = vpop.f32.mrf.mxu1 }
 0x23c   : > { %v5234_v62 = vadd.f32 %v5233_v29, %v5232_v23  ;;  %v7629_v15 = vadd.f32 %v5855_v12, %v1711_v48 }
 0x23d   : > { %v5235_v1 = vpop.f32.mrf.mxu0  ;;  %v5875_v14 = vpop.f32.mrf.mxu1 }
 0x23e   : > { %v2284_v59 = vadd.f32 %v5234_v62, %v2283_v33 }
 0x23f   : > { %v5236_v52 = vpop.f32.mrf.mxu0  ;;  %v2286_v10 = vpop.f32.mrf.mxu1 }
 0x240   : > { %v2410_v38 = vadd.f32 %v2284_v59, %v7528_v32  ;;  %v5237_v2 = vadd.f32 %v5236_v52, %v5235_v1 }
 0x241   : > { %v5238_v0 = vpop.f32.mrf.mxu0  ;;  %v5878_v23 = vpop.f32.mrf.mxu1 }
 0x242   : > { %v2449_v58 = vadd.f32 %v7634_v54, %v2410_v38  ;;  %v2287_v12 = vadd.f32 %v5237_v2, %v2286_v10 }
 0x243   : > { %v5239_v16 = vpop.f32.mrf.mxu0  ;;  %v2299_v59 = vpop.f32.mrf.mxu1 }
 0x244   : > { %v2481_v36 = vmax.f32 %v2449_v58, 0.0  ;;  %v2411_v43 = vadd.f32 %v2287_v12, %v1752_v5  ;;  %v5240_v17 = vadd.f32 %v5239_v16, %v5238_v0 }
 0x245   : > { %v5241_v21 = vpop.f32.mrf.mxu0  ;;  %v5879_v5 = vpop.f32.mrf.mxu1 }
 0x246   : > { %2514 = vst [vmem:[#allocation3 + $0x19] sm:$0xff] %v2481_v36  ;;  %v2450_v48 = vadd.f32 %v7634_v54, %v2411_v43  ;;  %v2292_v29 = vadd.f32 %v5874_v22, %v5240_v17 }
 0x247   : > { %v5242_v32 = vpop.f32.mrf.mxu0 }
 0x248   : > { %v2482_v62 = vmax.f32 %v2450_v48, 0.0  ;;  %v2412_v33 = vadd.f32 %v2292_v29, %v7524_v44  ;;  %v5243_v1 = vadd.f32 %v5242_v32, %v5241_v21  ;;  %v2302_v21 = vpop.f32.mrf.mxu1 }
 0x249   : > { %v5244_v50 = vpop.f32.mrf.mxu0 }
 0x24a   : > { %2515 = vst [vmem:[#allocation3 + $0x21] sm:$0xff] %v2482_v62  ;;  %v2451_v8 = vadd.f32 %v7634_v54, %v2412_v33  ;;  %v2295_v52 = vadd.f32 %v5875_v14, %v5243_v1  ;;  %v1768_v14 = vadd.f32 %v7549_v46, %v7448_v53 }
 0x24b   : > { %v5245_v38 = vpop.f32.mrf.mxu0 }
 0x24c   : > { %v2483_v2 = vmax.f32 %v2451_v8, 0.0  ;;  %v2413_v10 = vadd.f32 %v2295_v52, %v7531_v45  ;;  %v5246_v0 = vadd.f32 %v5245_v38, %v5244_v50 }
 0x24d   : > { %v5247_v58 = vpop.f32.mrf.mxu0  ;;  %v2549_v16 = vld [vmem:[#allocation3 + $0x18] sm:$0xff] }
 0x24e   : > { %2516 = vst [vmem:[#allocation3 + $0x31] sm:$0xff] %v2483_v2  ;;  %v2452_v22 = vadd.f32 %v7634_v54, %v2413_v10  ;;  %v2300_v12 = vadd.f32 %v5246_v0, %v2299_v59  ;;  %v2653_v32 = vrot.slane %v2549_v16, 1  ;;  %v2765_v8 = vrot.slane %v2549_v16, 2  ;;  %v7650_v0 = vpop.f32.mrf.mxu1 }
 0x24f   : > { %v5248_v44 = vpop.f32.mrf.mxu0 }
 0x250   : > { %v2484_v36 = vmax.f32 %v2452_v22, 0.0  ;;  %v2414_v43 = vadd.f32 %v2300_v12, %v7544_v47  ;;  %v5249_v17 = vadd.f32 %v5248_v44, %v5247_v58 }
 0x251   : > { %v5250_v48 = vpop.f32.mrf.mxu0  ;;  %v2550_v29 = vld [vmem:[#allocation3 + $0x20] sm:$0xff]  ;;  %v2551_v45 = vld [vmem:[#allocation3 + $0x28] sm:$0x3] }
 0x252   : > { %2517 = vst [vmem:[#allocation3 + $0x39] sm:$0xff] %v2484_v36  ;;  %v2453_v62 = vadd.f32 %v7634_v54, %v2414_v43  ;;  %v2303_v33 = vadd.f32 %v5249_v17, %v2302_v21  ;;  %v2654_v1 = vrot.slane %v2550_v29, 1  ;;  %v2656_v59 = vrot.slane %v2551_v45, 1 }
 0x253   : > { %v5251_v50 = vpop.f32.mrf.mxu0  ;;  %v2766_v52 = vrot.slane %v2550_v29, 2  ;;  %v2768_v38 = vrot.slane %v2551_v45, 2  ;;  %v6219_v45 = vld [vmem:[#allocation9 + $0xb0] sm:$0xff]  }
 0x254   : > { %v2485_v47 = vmax.f32 %v2453_v62, 0.0  ;;  %v2415_v2 = vadd.f32 %v2303_v33, %v1768_v14  ;;  %v5252_v10 = vadd.f32 %v5251_v50, %v5250_v48  ;;  %v2655_v53 = vsel %vm552_vm0, %v2653_v32, %v2654_v1 }
 0x255   : > { %v5253_v46 = vpop.f32.mrf.mxu0  ;;  %v2657_v58 = vsel %vm552_vm0, %v2654_v1, %v2656_v59  ;;  %v2767_v22 = vsel %vm665_vm1, %v2765_v8, %v2766_v52  ;;  %v2769_v12 = vsel %vm665_vm1, %v2766_v52, %v2768_v38  ;;  %v2552_v14 = vld [vmem:[#allocation3 + $0x30] sm:$0xff]  ;;  %v7660_v48 = vpack.c.bf16 %v2550_v29, %v2549_v16  ;;  %v2315_v1 = vpop.f32.mrf.mxu1 }
 0x256   : > { %2518 = vst [vmem:[#allocation3 + $0x49] sm:$0xff] %v2485_v47  ;;  %v2454_v44 = vadd.f32 %v7634_v54, %v2415_v2  ;;  %v2308_v36 = vadd.f32 %v5878_v23, %v5252_v10  ;;  %v7656_v43 = vpack.c.bf16 %v2657_v58, %v2655_v53  ;;  %v7658_v17 = vpack.c.bf16 %v2769_v12, %v2767_v22  ;;  %v6220_v53 = vld [vmem:[#allocation9 + $0xa8] sm:$0xff]  }
 0x257   : > { %v5254_v21 = vpop.f32.mrf.mxu0  ;;  %v2658_v8 = vrot.slane %v2552_v14, 1  ;;  %v2770_v47 = vrot.slane %v2552_v14, 2 }
 0x258   : > { %v2486_v32 = vmax.f32 %v2454_v44, 0.0  ;;  %v2416_v62 = vadd.f32 %v2308_v36, %v7539_v40  ;;  %v5255_v33 = vadd.f32 %v5254_v21, %v5253_v46  ;;  %3213 = vmatprep.mubr.bf16.mxu1 %v7656_v43  ;;  %5920 = vmatprep.mubr.bf16.mxu0 %v7658_v17  ;;  %v7670_v44 = vpop.f32.mrf.mxu1 }
 0x259   : > { %3214 = vmatmul.mubr.bf16.vlgmr.msra.gmra.mxu1 %v7660_v48  ;;  %v5256_v23 = vpop.f32.mrf.mxu0  ;;  %v2553_v59 = vld [vmem:[#allocation3 + $0x38] sm:$0xff]  ;;  %v2554_v50 = vld [vmem:[#allocation3 + $0x40] sm:$0x3] }
 0x25a   : > { %2519 = vst [vmem:[#allocation3 + $0x51] sm:$0xff] %v2486_v32  ;;  %v2455_v16 = vadd.f32 %v7634_v54, %v2416_v62  ;;  %v2311_v29 = vadd.f32 %v5879_v5, %v5255_v33  ;;  %5953 = vmatpush3.bf16.msra.mxu1 %v7479_v49  ;;  %v2659_v52 = vrot.slane %v2553_v59, 1  ;;  %v2661_v40 = vrot.slane %v2554_v50, 1  ;;  %v6224_v32 = vld [vmem:[#allocation9 + $0x38] sm:$0xff]  }
 0x25b   : > { %v5257_v38 = vpop.f32.mrf.mxu0  ;;  %v2771_v2 = vrot.slane %v2553_v59, 2  ;;  %v2773_v10 = vrot.slane %v2554_v50, 2  ;;  %5954 = vmatprep.subr.bf16.mxu1 %v6219_v45 }
 0x25c   : > { %v2487_v46 = vmax.f32 %v2455_v16, 0.0  ;;  %v2417_v58 = vadd.f32 %v2311_v29, %v7547_v25  ;;  %v5258_v22 = vadd.f32 %v5257_v38, %v5256_v23  ;;  %v2660_v12 = vsel %vm552_vm0, %v2658_v8, %v2659_v52  ;;  %v6225_v8 = vld [vmem:[#allocation9 + $0x70] sm:$0xff]  }
 0x25d   : > { %v5259_v36 = vpop.f32.mrf.mxu0  ;;  %v2662_v5 = vsel %vm552_vm0, %v2659_v52, %v2661_v40  ;;  %v2772_v49 = vsel %vm665_vm1, %v2770_v47, %v2771_v2  ;;  %v2774_v21 = vsel %vm665_vm1, %v2771_v2, %v2773_v10  ;;  %v2555_v23 = vld [vmem:[#allocation3 + $0x48] sm:$0xff]  ;;  %v7680_v29 = vpack.c.bf16 %v2553_v59, %v2552_v14  ;;  %v6221_v52 = vld [vmem:[#allocation9 + $0xa0] sm:$0xff]   ;;  %v2318_v2 = vpop.f32.mrf.mxu1 }
 0x25e   : > { %2520 = vst [vmem:[#allocation3 + $0x61] sm:$0xff] %v2487_v46  ;;  %v2456_v62 = vadd.f32 %v7634_v54, %v2417_v58  ;;  %v2316_v33 = vadd.f32 %v5258_v22, %v2315_v1  ;;  %v7676_v50 = vpack.c.bf16 %v2662_v5, %v2660_v12  ;;  %v7678_v25 = vpack.c.bf16 %v2774_v21, %v2772_v49  ;;  %v6226_v46 = vld [vmem:[#allocation9 + $0x30] sm:$0xff]   ;;  %v6222_v49 = vld [vmem:[#allocation9 + $0x98] sm:$0xff]   ;;  %v6228_v21 = vld [vmem:[#allocation9 + $0x68] sm:$0xff]  }
 0x25f   : > { %5955 = vmatpush3.bf16.msra.mxu1 %v6219_v45  ;;  %v5260_v16 = vpop.f32.mrf.mxu0  ;;  %8672 = vst [vmem:[#allocation30_spill] sm:$0xff] %v7680_v29  ;;  %v1784_v1 = vadd.f32 %v7562_v60, %v7484_v28  ;;  %v2663_v59 = vrot.slane %v2555_v23, 1  ;;  %v2775_v5 = vrot.slane %v2555_v23, 2 }
 0x260   : > { %5956 = vmatprep.subr.bf16.mxu1 %v6220_v53  ;;  %v2488_v40 = vmax.f32 %v2456_v62, 0.0  ;;  %v2418_v38 = vadd.f32 %v2316_v33, %v7557_v61  ;;  %v5261_v47 = vadd.f32 %v5260_v16, %v5259_v36  ;;  %3221 = vmatprep.mubr.bf16.mxu1 %v7676_v50 }
 0x261   : > { %5921 = vmatmul.mubr.bf16.vlgmr.msra.gmra.mxu0 %v7678_v25  ;;  %3222 = vmatmul.mubr.bf16.gmra.mxu1 %v7680_v29  ;;  %v5262_v45 = vpop.f32.mrf.mxu0  ;;  %v2556_v10 = vld [vmem:[#allocation3 + $0x50] sm:$0xff]  ;;  %v2557_v14 = vld [vmem:[#allocation3 + $0x58] sm:$0x3]  ;;  %v7690_v29 = vpop.f32.mrf.mxu1 }
 0x262   : > { %5489 = vmatpush3.bf16.msra.mxu0 %v6224_v32  ;;  %2521 = vst [vmem:[#allocation3 + $0x69] sm:$0xff] %v2488_v40  ;;  %v2457_v61 = vadd.f32 %v7634_v54, %v2418_v38  ;;  %v2319_v58 = vadd.f32 %v5261_v47, %v2318_v2  ;;  %v2664_v22 = vrot.slane %v2556_v10, 1  ;;  %v2666_v12 = vrot.slane %v2557_v14, 1  ;;  %v6229_v47 = vld [vmem:[#allocation9 + $0x28] sm:$0xff]  }
 0x263   : > { %5957 = vmatpush3.bf16.msra.mxu1 %v6220_v53  ;;  %5490 = vmatprep.subr.bf16.mxu0 %v6225_v8  ;;  %v5263_v36 = vpop.f32.mrf.mxu0  ;;  %v2776_v28 = vrot.slane %v2556_v10, 2  ;;  %v2778_v60 = vrot.slane %v2557_v14, 2 }
 0x264   : > { %5958 = vmatprep.subr.bf16.mxu1 %v6221_v52  ;;  %v2489_v62 = vmax.f32 %v2457_v61, 0.0  ;;  %v2419_v33 = vadd.f32 %v2319_v58, %v1784_v1  ;;  %v5264_v16 = vadd.f32 %v5263_v36, %v5262_v45  ;;  %v2665_v32 = vsel %vm552_vm0, %v2663_v59, %v2664_v22  ;;  %v6230_v61 = vld [vmem:[#allocation9 + $0x60] sm:$0xff]  }
 0x265   : > { %v5265_v40 = vpop.f32.mrf.mxu0  ;;  %v2667_v38 = vsel %vm552_vm0, %v2664_v22, %v2666_v12  ;;  %v2777_v53 = vsel %vm665_vm1, %v2775_v5, %v2776_v28  ;;  %v2779_v8 = vsel %vm665_vm1, %v2776_v28, %v2778_v60  ;;  %v2558_v59 = vld [vmem:[#allocation3 + $0x60] sm:$0xff]  ;;  %v7701_v22 = vpack.c.bf16 %v2556_v10, %v2555_v23  ;;  %v6231_v23 = vld [vmem:[#allocation9 + $0x20] sm:$0xff]  }
 0x266   : > { %5491 = vmatpush3.bf16.msra.mxu0 %v6226_v46  ;;  %2522 = vst [vmem:[#allocation3 + $0x79] sm:$0xff] %v2489_v62  ;;  %v2458_v2 = vadd.f32 %v7634_v54, %v2419_v33  ;;  %v2324_v14 = vadd.f32 %v7650_v0, %v5264_v16  ;;  %v7697_v1 = vpack.c.bf16 %v2667_v38, %v2665_v32  ;;  %v6227_v12 = vld [vmem:[#allocation9 + $0x90] sm:$0xff]   ;;  %v2331_v0 = vpop.f32.mrf.mxu1  ;;  %v2668_v62 = vrot.slane %v2558_v59, 1 }
 0x267   : > { %v7699_v45 = vpack.c.bf16 %v2779_v8, %v2777_v53  ;;  %5959 = vmatpush3.bf16.msra.mxu1 %v6221_v52  ;;  %v5266_v58 = vpop.f32.mrf.mxu0  ;;  %8673 = vst [vmem:[#allocation27_spill] sm:$0xff] %v7701_v22  ;;  %5492 = vmatprep.subr.bf16.mxu0 %v6228_v21  ;;  %v6232_v53 = vld [vmem:[#allocation9 + $0x88] sm:$0xff]   ;;  %v6233_v8 = vld [vmem:[#allocation9 + $0x58] sm:$0xff]  }
 0x268   : > { %5960 = vmatprep.subr.bf16.mxu1 %v6222_v49  ;;  %v2490_v46 = vmax.f32 %v2458_v2, 0.0  ;;  %v2420_v36 = vadd.f32 %v2324_v14, %v7553_v51  ;;  %v5267_v5 = vadd.f32 %v5266_v58, %v5265_v40  ;;  %3229 = vmatprep.mubr.bf16.mxu1 %v7697_v1  ;;  %v2780_v40 = vrot.slane %v2558_v59, 2 }
 0x269   : > { %5924 = vmatprep.mubr.bf16.mxu0 %v7699_v45  ;;  %3230 = vmatmul.mubr.bf16.gmra.mxu1 %v7701_v22  ;;  %v5268_v28 = vpop.f32.mrf.mxu0  ;;  %v2559_v52 = vld [vmem:[#allocation3 + $0x68] sm:$0xff]  ;;  %v2560_v60 = vld [vmem:[#allocation3 + $0x70] sm:$0x3] }
 0x26a   : > { %5493 = vmatpush3.bf16.msra.mxu0 %v6229_v47  ;;  %2523 = vst [vmem:[#allocation3 + $0x81] sm:$0xff] %v2490_v46  ;;  %v2459_v10 = vadd.f32 %v7634_v54, %v2420_v36  ;;  %v2327_v21 = vadd.f32 %v7670_v44, %v5267_v5  ;;  %v2669_v51 = vrot.slane %v2559_v52, 1  ;;  %v2671_v33 = vrot.slane %v2560_v60, 1  ;;  %v7711_v46 = vpop.f32.mrf.mxu1  ;;  %v6234_v5 = vld [vmem:[#allocation9 + $0x18] sm:$0xff]  }
 0x26b   : > { %5961 = vmatpush3.bf16.msra.mxu1 %v6222_v49  ;;  %5494 = vmatprep.subr.bf16.mxu0 %v6230_v61  ;;  %v5269_v16 = vpop.f32.mrf.mxu0  ;;  %v2783_v32 = vrot.slane %v2560_v60, 2  ;;  %v2781_v38 = vrot.slane %v2559_v52, 2 }
 0x26c   : > { %5962 = vmatprep.subr.bf16.mxu1 %v6227_v12  ;;  %v2491_v2 = vmax.f32 %v2459_v10, 0.0  ;;  %v2421_v47 = vadd.f32 %v2327_v21, %v7560_v30  ;;  %v5270_v14 = vadd.f32 %v5269_v16, %v5268_v28  ;;  %v2670_v58 = vsel %vm552_vm0, %v2668_v62, %v2669_v51  ;;  %v6235_v62 = vld [vmem:[#allocation9 + $0x50] sm:$0xff]  }
 0x26d   : > { %v5271_v44 = vpop.f32.mrf.mxu0  ;;  %v2672_v36 = vsel %vm552_vm0, %v2669_v51, %v2671_v33  ;;  %v2782_v49 = vsel %vm665_vm1, %v2780_v40, %v2781_v38  ;;  %v2784_v61 = vsel %vm665_vm1, %v2781_v38, %v2783_v32  ;;  %v2561_v28 = vld [vmem:[#allocation3 + $0x78] sm:$0xff]  ;;  %v7721_v16 = vpack.c.bf16 %v2559_v52, %v2558_v59  ;;  %v6237_v51 = vld [vmem:[#allocation9 + $0x80] sm:$0xff]   ;;  %v2334_v40 = vpop.f32.mrf.mxu1 }
 0x26e   : > { %5495 = vmatpush3.bf16.msra.mxu0 %v6231_v23  ;;  %2524 = vst [vmem:[#allocation3 + $0x91] sm:$0xff] %v2491_v2  ;;  %v2460_v60 = vadd.f32 %v7634_v54, %v2421_v47  ;;  %v2332_v10 = vadd.f32 %v5270_v14, %v2331_v0  ;;  %v7717_v22 = vpack.c.bf16 %v2672_v36, %v2670_v58  ;;  %v2673_v38 = vrot.slane %v2561_v28, 1  ;;  %v6238_v36 = vld [vmem:[#allocation9 + $0x48] sm:$0xff]  }
 0x26f   : > { %v7719_v30 = vpack.c.bf16 %v2784_v61, %v2782_v49  ;;  %5963 = vmatpush3.bf16.msra.mxu1 %v6227_v12  ;;  %v5272_v21 = vpop.f32.mrf.mxu0  ;;  %5496 = vmatprep.subr.bf16.mxu0 %v6233_v8  ;;  %v1800_v0 = vadd.f32 %v7576_v4, %v7514_v57  ;;  %v6236_v8 = vld [vmem:[#allocation9 + $0x10] sm:$0xff]   ;;  %v6242_v49 = vld [vmem:[#allocation9 + $0x1f8] sm:$0xff]  }
 0x270   : > { %5964 = vmatprep.subr.bf16.mxu1 %v6232_v53  ;;  %v2492_v33 = vmax.f32 %v2460_v60, 0.0  ;;  %v2422_v23 = vadd.f32 %v2332_v10, %v7572_v41  ;;  %v5273_v32 = vadd.f32 %v5272_v21, %v5271_v44  ;;  %3237 = vmatprep.mubr.bf16.mxu1 %v7717_v22  ;;  %v2785_v44 = vrot.slane %v2561_v28, 2 }
 0x271   : > { %5925 = vmatmul.mubr.bf16.gmra.mxu0 %v7719_v30  ;;  %3238 = vmatmul.mubr.bf16.gmra.mxu1 %v7721_v16  ;;  %v5274_v12 = vpop.f32.mrf.mxu0  ;;  %v2562_v59 = vld [vmem:[#allocation3 + $0x80] sm:$0xff]  ;;  %v2563_v52 = vld [vmem:[#allocation3 + $0x88] sm:$0x3] }
 0x272   : > { %5497 = vmatpush3.bf16.msra.mxu0 %v6234_v5  ;;  %2525 = vst [vmem:[#allocation3 + $0x99] sm:$0xff] %v2492_v33  ;;  %v2461_v41 = vadd.f32 %v7634_v54, %v2422_v23  ;;  %v2335_v2 = vadd.f32 %v5273_v32, %v2334_v40  ;;  %v2674_v47 = vrot.slane %v2562_v59, 1  ;;  %v2676_v14 = vrot.slane %v2563_v52, 1  ;;  %v7731_v33 = vpop.f32.mrf.mxu1  ;;  %v6239_v32 = vld [vmem:[#allocation9 + $0x8] sm:$0xff]  }
 0x273   : > { %5965 = vmatpush3.bf16.msra.mxu1 %v6232_v53  ;;  %5498 = vmatprep.subr.bf16.mxu0 %v6235_v62  ;;  %v5275_v58 = vpop.f32.mrf.mxu0  ;;  %v2786_v57 = vrot.slane %v2562_v59, 2  ;;  %v2788_v4 = vrot.slane %v2563_v52, 2 }
 0x274   : > { %5966 = vmatprep.subr.bf16.mxu1 %v6237_v51  ;;  %v2493_v61 = vmax.f32 %v2461_v41, 0.0  ;;  %v2423_v60 = vadd.f32 %v2335_v2, %v1800_v0  ;;  %v5276_v10 = vadd.f32 %v5275_v58, %v5274_v12  ;;  %v2675_v5 = vsel %vm552_vm0, %v2673_v38, %v2674_v47  ;;  %v6240_v41 = vld [vmem:[#allocation9 + $0x40] sm:$0xff]  }
 0x275   : > { %v5277_v21 = vpop.f32.mrf.mxu0  ;;  %v2677_v23 = vsel %vm552_vm0, %v2674_v47, %v2676_v14  ;;  %v2787_v53 = vsel %vm665_vm1, %v2785_v44, %v2786_v57  ;;  %v2789_v62 = vsel %vm665_vm1, %v2786_v57, %v2788_v4  ;;  %v2564_v38 = vld [vmem:[#allocation3 + $0x90] sm:$0xff]  ;;  %v7742_v47 = vpack.c.bf16 %v2562_v59, %v2561_v28 }
 0x276   : > { %5499 = vmatpush3.bf16.msra.mxu0 %v6236_v8  ;;  %2526 = vst [vmem:[#allocation3 + $0xa9] sm:$0xff] %v2493_v61  ;;  %v2462_v40 = vadd.f32 %v7634_v54, %v2423_v60  ;;  %v2340_v52 = vadd.f32 %v7690_v29, %v5276_v10  ;;  %v7738_v0 = vpack.c.bf16 %v2677_v23, %v2675_v5  ;;  %v2347_v29 = vpop.f32.mrf.mxu1  ;;  %v2678_v4 = vrot.slane %v2564_v38, 1  ;;  %v6241_v28 = vld [vmem:[#allocation9] sm:$0xff]   ;;  %v7750_v61 = vld [vmem:[#allocation9 + $0x238] sm:$0xff]  }
 0x277   : > { %v7740_v12 = vpack.c.bf16 %v2789_v62, %v2787_v53  ;;  %5967 = vmatpush3.bf16.msra.mxu1 %v6237_v51  ;;  %v5278_v2 = vpop.f32.mrf.mxu0  ;;  %5500 = vmatprep.subr.bf16.mxu0 %v6238_v36  ;;  %v2790_v5 = vrot.slane %v2564_v38, 2 }
 0x278   : > { %5624 = vmatprep.subr.bf16.mxu1 %v6242_v49  ;;  %v2494_v14 = vmax.f32 %v2462_v40, 0.0  ;;  %v2424_v8 = vadd.f32 %v2340_v52, %v7567_v39  ;;  %v5279_v58 = vadd.f32 %v5278_v2, %v5277_v21  ;;  %3245 = vmatprep.mubr.bf16.mxu1 %v7738_v0  ;;  %v7754_v40 = vpop.f32.mrf.mxu1 }
 0x279   : > { %5928 = vmatprep.mubr.bf16.mxu0 %v7740_v12  ;;  %3246 = vmatmul.mubr.bf16.gmra.mxu1 %v7742_v47  ;;  %v5280_v44 = vpop.f32.mrf.mxu0  ;;  %v2565_v57 = vld [vmem:[#allocation3 + $0x98] sm:$0xff]  ;;  %v2566_v51 = vld [vmem:[#allocation3 + $0xa0] sm:$0x3] }
 0x27a   : > { %5501 = vmatpush3.bf16.msra.mxu0 %v6239_v32  ;;  %2527 = vst [vmem:[#allocation3 + $0xb1] sm:$0xff] %v2494_v14  ;;  %v2463_v59 = vadd.f32 %v7634_v54, %v2424_v8  ;;  %v2343_v36 = vadd.f32 %v7711_v46, %v5279_v58  ;;  %v2679_v39 = vrot.slane %v2565_v57, 1  ;;  %v2681_v49 = vrot.slane %v2566_v51, 1 }
 0x27b   : > { %5502 = vmatprep.subr.bf16.mxu0 %v6240_v41  ;;  %v5281_v60 = vpop.f32.mrf.mxu0  ;;  %v2793_v10 = vrot.slane %v2566_v51, 2  ;;  %v2791_v21 = vrot.slane %v2565_v57, 2 }
 0x27c   : > { %v2495_v23 = vmax.f32 %v2463_v59, 0.0  ;;  %v2425_v53 = vadd.f32 %v2343_v36, %v7574_v35  ;;  %v5282_v62 = vadd.f32 %v5281_v60, %v5280_v44  ;;  %v2680_v32 = vsel %vm552_vm0, %v2678_v4, %v2679_v39 }
 0x27d   : > { %v5283_v52 = vpop.f32.mrf.mxu0  ;;  %v2682_v46 = vsel %vm552_vm0, %v2679_v39, %v2681_v49  ;;  %v2792_v2 = vsel %vm665_vm1, %v2790_v5, %v2791_v21  ;;  %v2794_v41 = vsel %vm665_vm1, %v2791_v21, %v2793_v10  ;;  %v2567_v44 = vld [vmem:[#allocation3 + $0xa8] sm:$0xff]  ;;  %v7765_v4 = vpack.c.bf16 %v2565_v57, %v2564_v38 }
 0x27e   : > { %5503 = vmatpush3.bf16.msra.mxu0 %v6241_v28  ;;  %2528 = vst [vmem:[#allocation3 + $0xc1] sm:$0xff] %v2495_v23  ;;  %v2464_v14 = vadd.f32 %v7634_v54, %v2425_v53  ;;  %v2348_v8 = vadd.f32 %v5282_v62, %v2347_v29  ;;  %v7760_v58 = vpack.c.bf16 %v2682_v46, %v2680_v32  ;;  %v2350_v28 = vpop.f32.mrf.mxu1  ;;  %v2683_v5 = vrot.slane %v2567_v44, 1 }
 0x27f   : > { %v7762_v35 = vpack.c.bf16 %v2794_v41, %v2792_v2  ;;  %6000 = vmatprep.subr.bf16.mxu0 %v7750_v61  ;;  %v5284_v51 = vpop.f32.mrf.mxu0  ;;  %v1816_v29 = vadd.f32 %v7588_v34, %v7541_v11  ;;  %v2795_v53 = vrot.slane %v2567_v44, 2 }
 0x280   : > { %v2496_v59 = vmax.f32 %v2464_v14, 0.0  ;;  %v2426_v36 = vadd.f32 %v2348_v8, %v7582_v18  ;;  %v5285_v39 = vadd.f32 %v5284_v51, %v5283_v52  ;;  %3253 = vmatprep.mubr.bf16.mxu1 %v7760_v58  ;;  %v7775_v41 = vpop.f32.mrf.mxu1 }
 0x281   : > { %5929 = vmatmul.mubr.bf16.gmra.mxu0 %v7762_v35  ;;  %3254 = vmatmul.mubr.bf16.gmra.mxu1 %v7765_v4  ;;  %v5286_v49 = vpop.f32.mrf.mxu0  ;;  %v2568_v60 = vld [vmem:[#allocation3 + $0xb0] sm:$0xff]  ;;  %v2569_v10 = vld [vmem:[#allocation3 + $0xb8] sm:$0x3] }
 0x282   : > { %2529 = vst [vmem:[#allocation3 + $0xc9] sm:$0xff] %v2496_v59  ;;  %v2465_v38 = vadd.f32 %v7634_v54, %v2426_v36  ;;  %v2351_v57 = vadd.f32 %v5285_v39, %v2350_v28  ;;  %v2684_v18 = vrot.slane %v2568_v60, 1  ;;  %v2686_v21 = vrot.slane %v2569_v10, 1 }
 0x283   : > { %v5287_v23 = vpop.f32.mrf.mxu0  ;;  %v2796_v62 = vrot.slane %v2568_v60, 2  ;;  %v2798_v32 = vrot.slane %v2569_v10, 2  ;;  %v7786_v10 = vpack.c.bf16 %v2568_v60, %v2567_v44 }
 0x284   : > { %v2497_v52 = vmax.f32 %v2465_v38, 0.0  ;;  %v2427_v46 = vadd.f32 %v2351_v57, %v1816_v29  ;;  %v5288_v11 = vadd.f32 %v5287_v23, %v5286_v49  ;;  %v2685_v34 = vsel %vm552_vm0, %v2683_v5, %v2684_v18 }
 0x285   : > { %v5289_v2 = vpop.f32.mrf.mxu0  ;;  %v2687_v14 = vsel %vm552_vm0, %v2684_v18, %v2686_v21  ;;  %v2797_v8 = vsel %vm665_vm1, %v2795_v53, %v2796_v62  ;;  %v2799_v51 = vsel %vm665_vm1, %v2796_v62, %v2798_v32  ;;  %v2570_v28 = vld [vmem:[#allocation3 + $0xc0] sm:$0xff]  ;;  %v2363_v18 = vpop.f32.mrf.mxu1 }
 0x286   : > { %2530 = vst [vmem:[#allocation3 + $0xd9] sm:$0xff] %v2497_v52  ;;  %v2466_v59 = vadd.f32 %v7634_v54, %v2427_v46  ;;  %v2356_v36 = vadd.f32 %v7731_v33, %v5288_v11  ;;  %v7782_v39 = vpack.c.bf16 %v2687_v14, %v2685_v34  ;;  %v7784_v29 = vpack.c.bf16 %v2799_v51, %v2797_v8 }
 0x287   : > { %v5290_v49 = vpop.f32.mrf.mxu0  ;;  %v2688_v53 = vrot.slane %v2570_v28, 1  ;;  %v2800_v46 = vrot.slane %v2570_v28, 2  ;;  %v7796_v51 = vpop.f32.mrf.mxu1 }
 0x288   : > { %v2498_v5 = vmax.f32 %v2466_v59, 0.0  ;;  %v2428_v38 = vadd.f32 %v2356_v36, %v7579_v24  ;;  %v5291_v57 = vadd.f32 %v5290_v49, %v5289_v2  ;;  %3261 = vmatprep.mubr.bf16.mxu1 %v7782_v39  ;;  %5932 = vmatprep.mubr.bf16.mxu0 %v7784_v29 }
 0x289   : > { %3262 = vmatmul.mubr.bf16.gmra.mxu1 %v7786_v10  ;;  %v5292_v33 = vpop.f32.mrf.mxu0  ;;  %v2571_v21 = vld [vmem:[#allocation3 + $0xc8] sm:$0xff]  ;;  %v2572_v23 = vld [vmem:[#allocation3 + $0xd0] sm:$0x3] }
 0x28a   : > { %2531 = vst [vmem:[#allocation3 + $0xe1] sm:$0xff] %v2498_v5  ;;  %v2467_v62 = vadd.f32 %v7634_v54, %v2428_v38  ;;  %v2359_v44 = vadd.f32 %v7754_v40, %v5291_v57  ;;  %v2689_v60 = vrot.slane %v2571_v21, 1  ;;  %v2691_v32 = vrot.slane %v2572_v23, 1 }
 0x28b   : > { %v5293_v24 = vpop.f32.mrf.mxu0  ;;  %v2803_v52 = vrot.slane %v2572_v23, 2  ;;  %v2801_v11 = vrot.slane %v2571_v21, 2 }
 0x28c   : > { %v2499_v34 = vmax.f32 %v2467_v62, 0.0  ;;  %v2429_v2 = vadd.f32 %v2359_v44, %v7586_v19  ;;  %v5294_v14 = vadd.f32 %v5293_v24, %v5292_v33  ;;  %v2690_v8 = vsel %vm552_vm0, %v2688_v53, %v2689_v60 }
 0x28d   : > { %v5295_v59 = vpop.f32.mrf.mxu0  ;;  %v2692_v36 = vsel %vm552_vm0, %v2689_v60, %v2691_v32  ;;  %v2802_v49 = vsel %vm665_vm1, %v2800_v46, %v2801_v11  ;;  %v2804_v40 = vsel %vm665_vm1, %v2801_v11, %v2803_v52  ;;  %v2573_v19 = vld [vmem:[#allocation3 + $0xd8] sm:$0xff]  ;;  %v7806_v53 = vpack.c.bf16 %v2571_v21, %v2570_v28 }
 0x28e   : > { %2532 = vst [vmem:[#allocation3 + $0xf1] sm:$0xff] %v2499_v34  ;;  %v2468_v5 = vadd.f32 %v7634_v54, %v2429_v2  ;;  %v2364_v38 = vadd.f32 %v5294_v14, %v2363_v18  ;;  %v7802_v57 = vpack.c.bf16 %v2692_v36, %v2690_v8  ;;  %v7804_v23 = vpack.c.bf16 %v2804_v40, %v2802_v49  ;;  %v2366_v18 = vpop.f32.mrf.mxu1 }
 0x28f   : > { %v5296_v33 = vpop.f32.mrf.mxu0  ;;  %v1832_v32 = vadd.f32 %v7600_v37, %v7569_v63  ;;  %v2693_v11 = vrot.slane %v2573_v19, 1  ;;  %v2805_v14 = vrot.slane %v2573_v19, 2 }
 0x290   : > { %v2500_v62 = vmax.f32 %v2468_v5, 0.0  ;;  %v2430_v44 = vadd.f32 %v2364_v38, %v7596_v26  ;;  %v5297_v60 = vadd.f32 %v5296_v33, %v5295_v59  ;;  %3269 = vmatprep.mubr.bf16.mxu1 %v7802_v57  ;;  %5933 = vmatmul.mubr.bf16.gmra.mxu0 %v7804_v23  ;;  %v7816_v5 = vpop.f32.mrf.mxu1 }
 0x291   : > { %3270 = vmatmul.mubr.bf16.gmra.mxu1 %v7806_v53  ;;  %v5298_v24 = vpop.f32.mrf.mxu0  ;;  %v2574_v52 = vld [vmem:[#allocation3 + $0xe0] sm:$0xff]  ;;  %v2575_v46 = vld [vmem:[#allocation3 + $0xe8] sm:$0x3] }
 0x292   : > { %2533 = vst [vmem:[#allocation3 + $0xf9] sm:$0xff] %v2500_v62  ;;  %v2469_v28 = vadd.f32 %v7634_v54, %v2430_v44  ;;  %v2367_v21 = vadd.f32 %v5297_v60, %v2366_v18  ;;  %v2694_v26 = vrot.slane %v2574_v52, 1  ;;  %v2696_v34 = vrot.slane %v2575_v46, 1 }
 0x293   : > { %v5299_v2 = vpop.f32.mrf.mxu0  ;;  %v2806_v8 = vrot.slane %v2574_v52, 2  ;;  %v2808_v59 = vrot.slane %v2575_v46, 2 }
 0x294   : > { %v2501_v36 = vmax.f32 %v2469_v28, 0.0  ;;  %v2431_v49 = vadd.f32 %v2367_v21, %v1832_v32  ;;  %v5300_v63 = vadd.f32 %v5299_v2, %v5298_v24  ;;  %v2695_v37 = vsel %vm552_vm0, %v2693_v11, %v2694_v26 }
 0x295   : > { %v5301_v40 = vpop.f32.mrf.mxu0  ;;  %v2697_v38 = vsel %vm552_vm0, %v2694_v26, %v2696_v34  ;;  %v2807_v33 = vsel %vm665_vm1, %v2805_v14, %v2806_v8  ;;  %v2809_v62 = vsel %vm665_vm1, %v2806_v8, %v2808_v59  ;;  %v2576_v24 = vld [vmem:[#allocation3 + $0xf0] sm:$0xff]  ;;  %v7827_v11 = vpack.c.bf16 %v2574_v52, %v2573_v19  ;;  %v2379_v34 = vpop.f32.mrf.mxu1 }
 0x296   : > { %2534 = vst [vmem:[#allocation3 + $0x109] sm:$0xff] %v2501_v36  ;;  %v2470_v44 = vadd.f32 %v7634_v54, %v2431_v49  ;;  %v2372_v60 = vadd.f32 %v7775_v41, %v5300_v63  ;;  %v7823_v18 = vpack.c.bf16 %v2697_v38, %v2695_v37  ;;  %v7825_v32 = vpack.c.bf16 %v2809_v62, %v2807_v33 }
 0x297   : > { %v5302_v46 = vpop.f32.mrf.mxu0  ;;  %v2698_v8 = vrot.slane %v2576_v24, 1  ;;  %v2810_v63 = vrot.slane %v2576_v24, 2 }
 0x298   : > { %v2502_v28 = vmax.f32 %v2470_v44, 0.0  ;;  %v2432_v21 = vadd.f32 %v2372_v60, %v7592_v55  ;;  %v5303_v26 = vadd.f32 %v5302_v46, %v5301_v40  ;;  %3277 = vmatprep.mubr.bf16.mxu1 %v7823_v18  ;;  %5936 = vmatprep.mubr.bf16.mxu0 %v7825_v32  ;;  %v7837_v44 = vpop.f32.mrf.mxu1 }
 0x299   : > { %3278 = vmatmul.mubr.bf16.gmra.mxu1 %v7827_v11  ;;  %v5304_v41 = vpop.f32.mrf.mxu0  ;;  %v2577_v2 = vld [vmem:[#allocation3 + $0xf8] sm:$0xff]  ;;  %v2578_v14 = vld [vmem:[#allocation3 + $0x100] sm:$0x3] }
 0x29a   : > { %2535 = vst [vmem:[#allocation3 + $0x111] sm:$0xff] %v2502_v28  ;;  %v2471_v59 = vadd.f32 %v7634_v54, %v2432_v21  ;;  %v2375_v19 = vadd.f32 %v7796_v51, %v5303_v26  ;;  %v2699_v52 = vrot.slane %v2577_v2, 1  ;;  %v2701_v36 = vrot.slane %v2578_v14, 1 }
 0x29b   : > { %v5305_v55 = vpop.f32.mrf.mxu0  ;;  %v2813_v49 = vrot.slane %v2578_v14, 2  ;;  %v2811_v37 = vrot.slane %v2577_v2, 2 }
 0x29c   : > { %v2503_v40 = vmax.f32 %v2471_v59, 0.0  ;;  %v2433_v38 = vadd.f32 %v2375_v19, %v7598_v6  ;;  %v5306_v33 = vadd.f32 %v5305_v55, %v5304_v41  ;;  %v2700_v62 = vsel %vm552_vm0, %v2698_v8, %v2699_v52 }
 0x29d   : > { %v5307_v60 = vpop.f32.mrf.mxu0  ;;  %v2702_v46 = vsel %vm552_vm0, %v2699_v52, %v2701_v36  ;;  %v2812_v28 = vsel %vm665_vm1, %v2810_v63, %v2811_v37  ;;  %v2814_v51 = vsel %vm665_vm1, %v2811_v37, %v2813_v49  ;;  %v2579_v6 = vld [vmem:[#allocation3 + $0x108] sm:$0xff]  ;;  %v7847_v8 = vpack.c.bf16 %v2577_v2, %v2576_v24 }
 0x29e   : > { %2536 = vst [vmem:[#allocation3 + $0x121] sm:$0xff] %v2503_v40  ;;  %v2472_v21 = vadd.f32 %v7634_v54, %v2433_v38  ;;  %v2380_v26 = vadd.f32 %v5306_v33, %v2379_v34  ;;  %v7843_v14 = vpack.c.bf16 %v2702_v46, %v2700_v62  ;;  %v7845_v59 = vpack.c.bf16 %v2814_v51, %v2812_v28  ;;  %v2382_v34 = vpop.f32.mrf.mxu1 }
 0x29f   : > { %v5308_v41 = vpop.f32.mrf.mxu0  ;;  %v1848_v36 = vadd.f32 %v7612_v31, %v7594_v7  ;;  %v2703_v40 = vrot.slane %v2579_v6, 1  ;;  %v2815_v62 = vrot.slane %v2579_v6, 2 }
 0x2a0   : > { %v2504_v19 = vmax.f32 %v2472_v21, 0.0  ;;  %v2434_v55 = vadd.f32 %v2380_v26, %v7606_v27  ;;  %v5309_v52 = vadd.f32 %v5308_v41, %v5307_v60  ;;  %3285 = vmatprep.mubr.bf16.mxu1 %v7843_v14  ;;  %5937 = vmatmul.mubr.bf16.gmra.mxu0 %v7845_v59  ;;  %v7857_v26 = vpop.f32.mrf.mxu1 }
 0x2a1   : > { %3286 = vmatmul.mubr.bf16.gmra.mxu1 %v7847_v8  ;;  %v5310_v49 = vpop.f32.mrf.mxu0  ;;  %v2580_v63 = vld [vmem:[#allocation3 + $0x110] sm:$0xff]  ;;  %v2581_v37 = vld [vmem:[#allocation3 + $0x118] sm:$0x3] }
 0x2a2   : > { %2537 = vst [vmem:[#allocation3 + $0x129] sm:$0xff] %v2504_v19  ;;  %v2473_v24 = vadd.f32 %v7634_v54, %v2434_v55  ;;  %v2383_v2 = vadd.f32 %v5309_v52, %v2382_v34  ;;  %v2704_v27 = vrot.slane %v2580_v63, 1  ;;  %v2706_v38 = vrot.slane %v2581_v37, 1 }
 0x2a3   : > { %v5311_v33 = vpop.f32.mrf.mxu0  ;;  %v2816_v60 = vrot.slane %v2580_v63, 2  ;;  %v2818_v46 = vrot.slane %v2581_v37, 2 }
 0x2a4   : > { %v2505_v28 = vmax.f32 %v2473_v24, 0.0  ;;  %v2435_v51 = vadd.f32 %v2383_v2, %v1848_v36  ;;  %v5312_v7 = vadd.f32 %v5311_v33, %v5310_v49  ;;  %v2705_v31 = vsel %vm552_vm0, %v2703_v40, %v2704_v27  ;;  %v2395_v33 = vpop.f32.mrf.mxu1 }
 0x2a5   : > { %v5313_v21 = vpop.f32.mrf.mxu0  ;;  %v2707_v41 = vsel %vm552_vm0, %v2704_v27, %v2706_v38  ;;  %v2817_v19 = vsel %vm665_vm1, %v2815_v62, %v2816_v60  ;;  %v2819_v55 = vsel %vm665_vm1, %v2816_v60, %v2818_v46  ;;  %v2582_v49 = vld [vmem:[#allocation3 + $0x120] sm:$0xff]  ;;  %v7868_v24 = vpack.c.bf16 %v2580_v63, %v2579_v6  ;;  %v7877_v6 = vld [vmem:[%s8566_s3] ss:$0 sm:$0xff] }
 0x2a6   : > { %2538 = vst [vmem:[#allocation3 + $0x139] sm:$0xff] %v2505_v28  ;;  %v2474_v52 = vadd.f32 %v7634_v54, %v2435_v51  ;;  %v2388_v34 = vadd.f32 %v7816_v5, %v5312_v7  ;;  %v7864_v37 = vpack.c.bf16 %v2707_v41, %v2705_v31  ;;  %v7866_v36 = vpack.c.bf16 %v2819_v55, %v2817_v19 }
 0x2a7   : > { %v5314_v40 = vpop.f32.mrf.mxu0  ;;  %8674 = vst [vmem:[#allocation14_spill] sm:$0xff] %v7868_v24  ;;  %v2708_v60 = vrot.slane %v2582_v49, 1  ;;  %v2820_v31 = vrot.slane %v2582_v49, 2 }
 0x2a8   : > { %v2506_v2 = vmax.f32 %v2474_v52, 0.0  ;;  %v2436_v27 = vadd.f32 %v2388_v34, %v7603_v42  ;;  %v5315_v38 = vadd.f32 %v5314_v40, %v5313_v21  ;;  %3293 = vmatprep.mubr.bf16.mxu1 %v7864_v37  ;;  %5940 = vmatprep.mubr.bf16.mxu0 %v7866_v36  ;;  %v5903_v34 = vpop.f32.mrf.mxu1 }
 0x2a9   : > { %3294 = vmatmul.mubr.bf16.gmra.mxu1 %v7868_v24  ;;  %v5316_v54 = vpop.f32.mrf.mxu0  ;;  %v2583_v5 = vld [vmem:[#allocation3 + $0x128] sm:$0xff]  ;;  %v2584_v62 = vld [vmem:[#allocation3 + $0x130] sm:$0x3] }
 0x2aa   : > { %2539 = vst [vmem:[#allocation3 + $0x141] sm:$0xff] %v2506_v2  ;;  %v2475_v42 = vadd.f32 %v7877_v6, %v2436_v27  ;;  %v2391_v63 = vadd.f32 %v7837_v44, %v5315_v38  ;;  %v2709_v46 = vrot.slane %v2583_v5, 1  ;;  %v2711_v28 = vrot.slane %v2584_v62, 1 }
 0x2ab   : > { %v5317_v51 = vpop.f32.mrf.mxu0  ;;  %v2823_v7 = vrot.slane %v2584_v62, 2  ;;  %v2821_v21 = vrot.slane %v2583_v5, 2 }
 0x2ac   : > { %v2507_v41 = vmax.f32 %v2475_v42, 0.0  ;;  %v2437_v19 = vadd.f32 %v2391_v63, %v7610_v56  ;;  %v5318_v55 = vadd.f32 %v5317_v51, %v5316_v54  ;;  %v2710_v52 = vsel %vm552_vm0, %v2708_v60, %v2709_v46 }
 0x2ad   : > { %v5319_v40 = vpop.f32.mrf.mxu0  ;;  %v2712_v2 = vsel %vm552_vm0, %v2709_v46, %v2711_v28  ;;  %v2822_v27 = vsel %vm665_vm1, %v2820_v31, %v2821_v21  ;;  %v2824_v44 = vsel %vm665_vm1, %v2821_v21, %v2823_v7  ;;  %v2585_v56 = vld [vmem:[#allocation3 + $0x138] sm:$0xff]  ;;  %v7891_v63 = vpack.c.bf16 %v2583_v5, %v2582_v49 }
 0x2ae   : > { %2540 = vst [vmem:[#allocation3 + $0x151] sm:$0xff] %v2507_v41  ;;  %v2476_v38 = vadd.f32 %v7877_v6, %v2437_v19  ;;  %v2396_v62 = vadd.f32 %v5318_v55, %v2395_v33  ;;  %v7887_v24 = vpack.c.bf16 %v2712_v2, %v2710_v52  ;;  %v7889_v42 = vpack.c.bf16 %v2824_v44, %v2822_v27  ;;  %v2398_v33 = vpop.f32.mrf.mxu1 }
 0x2af   : > { %v5320_v54 = vpop.f32.mrf.mxu0  ;;  %v1864_v28 = vadd.f32 %v7624_v13, %v7616_v9  ;;  %v2713_v41 = vrot.slane %v2585_v56, 1  ;;  %v2825_v52 = vrot.slane %v2585_v56, 2 }
 0x2b0   : > { %v2508_v60 = vmax.f32 %v2476_v38, 0.0  ;;  %v2438_v51 = vadd.f32 %v2396_v62, %v7618_v3  ;;  %v5321_v46 = vadd.f32 %v5320_v54, %v5319_v40  ;;  %3301 = vmatprep.mubr.bf16.mxu1 %v7887_v24  ;;  %5941 = vmatmul.mubr.bf16.gmra.mxu0 %v7889_v42 }
 0x2b1   : > { %3302 = vmatmul.mubr.bf16.gmra.mxu1 %v7891_v63  ;;  %v5322_v7 = vpop.f32.mrf.mxu0  ;;  %v2586_v31 = vld [vmem:[#allocation3 + $0x140] sm:$0xff]  ;;  %v2587_v21 = vld [vmem:[#allocation3 + $0x148] sm:$0x3] }
 0x2b2   : > { %2541 = vst [vmem:[#allocation3 + $0x159] sm:$0xff] %v2508_v60  ;;  %v2477_v49 = vadd.f32 %v7877_v6, %v2438_v51  ;;  %v2399_v5 = vadd.f32 %v5321_v46, %v2398_v33  ;;  %v2714_v3 = vrot.slane %v2586_v31, 1  ;;  %v2716_v19 = vrot.slane %v2587_v21, 1 }
 0x2b3   : > { %v5323_v55 = vpop.f32.mrf.mxu0  ;;  %v2826_v40 = vrot.slane %v2586_v31, 2  ;;  %v2828_v2 = vrot.slane %v2587_v21, 2 }
 0x2b4   : > { %v2509_v27 = vmax.f32 %v2477_v49, 0.0  ;;  %v2439_v44 = vadd.f32 %v2399_v5, %v1864_v28  ;;  %v5324_v9 = vadd.f32 %v5323_v55, %v5322_v7  ;;  %v2715_v13 = vsel %vm552_vm0, %v2713_v41, %v2714_v3 }
 0x2b5   : > { %v5325_v38 = vpop.f32.mrf.mxu0  ;;  %v2717_v62 = vsel %vm552_vm0, %v2714_v3, %v2716_v19  ;;  %v2827_v54 = vsel %vm665_vm1, %v2825_v52, %v2826_v40  ;;  %v2829_v60 = vsel %vm665_vm1, %v2826_v40, %v2828_v2  ;;  %v2588_v28 = vld [vmem:[#allocation3 + $0x150] sm:$0xff]  ;;  %v7910_v49 = vpack.c.bf16 %v2586_v31, %v2585_v56 }
 0x2b6   : > { %2542 = vst [vmem:[#allocation3 + $0x169] sm:$0xff] %v2509_v27  ;;  %v2478_v51 = vadd.f32 %v7877_v6, %v2439_v44  ;;  %v2404_v46 = vadd.f32 %v7857_v26, %v5324_v9  ;;  %v7906_v33 = vpack.c.bf16 %v2717_v62, %v2715_v13  ;;  %v7908_v21 = vpack.c.bf16 %v2829_v60, %v2827_v54 }
 0x2b7   : > { %v5326_v7 = vpop.f32.mrf.mxu0  ;;  %8675 = vst [vmem:[#allocation15_spill] sm:$0xff] %v7910_v49  ;;  %v2718_v55 = vrot.slane %v2588_v28, 1  ;;  %v2830_v27 = vrot.slane %v2588_v28, 2 }
 0x2b8   : > { %v2510_v41 = vmax.f32 %v2478_v51, 0.0  ;;  %v2440_v5 = vadd.f32 %v2404_v46, %v7627_v20  ;;  %v5327_v3 = vadd.f32 %v5326_v7, %v5325_v38  ;;  %3309 = vmatprep.mubr.bf16.mxu1 %v7906_v33  ;;  %5944 = vmatprep.mubr.bf16.mxu0 %v7908_v21 }
 0x2b9   : > { %3310 = vmatmul.mubr.bf16.gmra.mxu1 %v7910_v49  ;;  %v2589_v19 = vld [vmem:[#allocation3 + $0x158] sm:$0xff]  ;;  %v2590_v26 = vld [vmem:[#allocation3 + $0x160] sm:$0x3] }
 0x2ba   : > { %2543 = vst [vmem:[#allocation3 + $0x171] sm:$0xff] %v2510_v41  ;;  %v2479_v52 = vadd.f32 %v7877_v6, %v2440_v5  ;;  %v2407_v40 = vadd.f32 %v5903_v34, %v5327_v3  ;;  %v2719_v2 = vrot.slane %v2589_v19, 1  ;;  %v2721_v56 = vrot.slane %v2590_v26, 1  ;;  %v2546_v41 = vld [vmem:[#allocation3] sm:$0xff]  ;;  %v2547_v5 = vld [vmem:[#allocation3 + $0x8] sm:$0xff] }
 0x2bb   : > { %v2833_v31 = vrot.slane %v2590_v26, 2  ;;  %v2831_v44 = vrot.slane %v2589_v19, 2  ;;  %v7928_v7 = vpack.c.bf16 %v2589_v19, %v2588_v28  ;;  %v2548_v3 = vld [vmem:[#allocation3 + $0x10] sm:$0x3]  ;;  %v2649_v28 = vrot.slane %v2547_v5, 1 }
 0x2bc   : > { %v2511_v20 = vmax.f32 %v2479_v52, 0.0  ;;  %v2441_v9 = vadd.f32 %v2407_v40, %v7629_v15  ;;  %v2720_v13 = vsel %vm552_vm0, %v2718_v55, %v2719_v2  ;;  %v2722_v38 = vsel %vm552_vm0, %v2719_v2, %v2721_v56 }
 0x2bd   : > { %v7920_v62 = vpack.c.bf16 %v2722_v38, %v2720_v13  ;;  %v2832_v54 = vsel %vm665_vm1, %v2830_v27, %v2831_v44  ;;  %v2834_v60 = vsel %vm665_vm1, %v2831_v44, %v2833_v31  ;;  %v2591_v46 = vld [vmem:[#allocation3 + $0x168] sm:$0xff]  ;;  %8677 = vst [vmem:[#allocation17_spill] sm:$0xff] %v7928_v7  ;;  %v2648_v27 = vrot.slane %v2546_v41, 1 }
 0x2be   : > { %2544 = vst [vmem:[#allocation3 + $0x181] sm:$0xff] %v2511_v20  ;;  %v2480_v34 = vadd.f32 %v7877_v6, %v2441_v9  ;;  %v7925_v51 = vpack.c.bf16 %v2834_v60, %v2832_v54  ;;  %v2723_v52 = vrot.slane %v2591_v46, 1  ;;  %v2835_v40 = vrot.slane %v2591_v46, 2 }
 0x2bf   : > { %8676 = vst [vmem:[#allocation16_spill] sm:$0xff] %v7920_v62  ;;  %3317 = vmatprep.mubr.bf16.mxu1 %v7920_v62  ;;  %v2651_v19 = vrot.slane %v2548_v3, 1 }
 0x2c0   : > { %v2512_v15 = vmax.f32 %v2480_v34, 0.0  ;;  %5945 = vmatmul.mubr.bf16.gmra.mxu0 %v7925_v51 }
 0x2c1   : > { %3318 = vmatmul.mubr.bf16.gmra.mxu1 %v7928_v7  ;;  %v2592_v26 = vld [vmem:[#allocation3 + $0x170] sm:$0xff]  ;;  %v2593_v55 = vld [vmem:[#allocation3 + $0x178] sm:$0x3] }
 0x2c2   : > { %2545 = vst [vmem:[#allocation3 + $0x189] sm:$0xff] %v2512_v15  ;;  %v2724_v6 = vrot.slane %v2592_v26, 1  ;;  %v2726_v2 = vrot.slane %v2593_v55, 1  ;;  %v2836_v56 = vrot.slane %v2592_v26, 2  ;;  %v2838_v31 = vrot.slane %v2593_v55, 2 }
 0x2c3   : > { %v7942_v34 = vpack.c.bf16 %v2592_v26, %v2591_v46  ;;  %v2760_v15 = vrot.slane %v2546_v41, 2  ;;  %v2761_v55 = vrot.slane %v2547_v5, 2 }
 0x2c4   : > { %v2725_v44 = vsel %vm552_vm0, %v2723_v52, %v2724_v6  ;;  %v2727_v20 = vsel %vm552_vm0, %v2724_v6, %v2726_v2  ;;  %v2837_v9 = vsel %vm665_vm1, %v2835_v40, %v2836_v56  ;;  %v2839_v13 = vsel %vm665_vm1, %v2836_v56, %v2838_v31 }
 0x2c5   : > { %v7936_v38 = vpack.c.bf16 %v2727_v20, %v2725_v44  ;;  %v7938_v54 = vpack.c.bf16 %v2839_v13, %v2837_v9  ;;  %v2594_v60 = vld [vmem:[#allocation3 + $0x180] sm:$0xff]  ;;  %8679 = vst [vmem:[#allocation19_spill] sm:$0xff] %v7942_v34  ;;  %v2763_v52 = vrot.slane %v2548_v3, 2  ;;  %v2650_v6 = vsel %vm552_vm0, %v2648_v27, %v2649_v28 }
 0x2c6   : > { %v2652_v40 = vsel %vm552_vm0, %v2649_v28, %v2651_v19  ;;  %v2971_v31 = vrot.slane %v2594_v60, 1  ;;  %v2978_v44 = vrot.slane %v2594_v60, 2  ;;  %v2762_v46 = vsel %vm665_vm1, %v2760_v15, %v2761_v55 }
 0x2c7   : > { %8678 = vst [vmem:[#allocation18_spill] sm:$0xff] %v7936_v38  ;;  %3325 = vmatprep.mubr.bf16.mxu1 %v7936_v38  ;;  %5948 = vmatprep.mubr.bf16.mxu0 %v7938_v54  ;;  %v2873_v7 = vpack.c.bf16 %v2652_v40, %v2650_v6  ;;  %v2764_v26 = vsel %vm665_vm1, %v2761_v55, %v2763_v52  ;;  %v6249_v52 = vld [vmem:[#allocation9 + $0x230] sm:$0xff]   ;;  %v6243_v6 = vld [vmem:[#allocation9 + $0x1b8] sm:$0xff]   ;;  %v6254_v40 = vld [vmem:[#allocation9 + $0x228] sm:$0xff]  }
 0x2c8   : > { %v2874_v49 = vpack.c.bf16 %v2764_v26, %v2762_v46  ;;  %v2872_v55 = vpack.c.bf16 %v2547_v5, %v2546_v41  ;;  %v6248_v41 = vld [vmem:[#allocation9 + $0x1a8] sm:$0xff]   ;;  %v6252_v5 = vld [vmem:[#allocation9 + $0x1d8] sm:$0xff]  }
 0x2c9   : > { %3326 = vmatmul.mubr.bf16.gmra.mxu1 %v7942_v34  ;;  %v2595_v2 = vld [vmem:[#allocation3 + $0x188] sm:$0xff]  ;;  %v2596_v56 = vld [vmem:[#allocation3 + $0x190] sm:$0x3]  ;;  %v6258_v46 = vld [vmem:[#allocation9 + $0x188] sm:$0xff]  }
 0x2ca   : > { %v2972_v20 = vrot.slane %v2595_v2, 1  ;;  %v2974_v9 = vrot.slane %v2596_v56, 1  ;;  %v2981_v13 = vrot.slane %v2596_v56, 2  ;;  %v2979_v38 = vrot.slane %v2595_v2, 2  ;;  %v8680_v56 = vld [vmem:[#allocation30_spill] sm:$0xff]  ;;  %v8681_v26 = vld [vmem:[#allocation27_spill] sm:$0xff] }
 0x2cb   : > { %v7959_v15 = vpack.c.bf16 %v2595_v2, %v2594_v60  ;;  %v6247_v60 = vld [vmem:[#allocation9 + $0x1e8] sm:$0xff]   ;;  %v6263_v2 = vld [vmem:[#allocation9 + $0x210] sm:$0xff]  }
 0x2cc   : > { %v2973_v3 = vsel %vm552_vm0, %v2971_v31, %v2972_v20  ;;  %v2975_v27 = vsel %vm552_vm0, %v2972_v20, %v2974_v9  ;;  %v2980_v28 = vsel %vm665_vm1, %v2978_v44, %v2979_v38  ;;  %v2982_v19 = vsel %vm665_vm1, %v2979_v38, %v2981_v13  ;;  %v6245_v38 = vld [vmem:[#allocation9 + $0x1f0] sm:$0xff]   ;;  %v6264_v44 = vld [vmem:[#allocation9 + $0x208] sm:$0xff]   ;;  %v6265_v13 = vld [vmem:[#allocation9 + $0x200] sm:$0xff]  }
 0x2cd   : > { %v7953_v34 = vpack.c.bf16 %v2975_v27, %v2973_v3  ;;  %v7955_v62 = vpack.c.bf16 %v2982_v19, %v2980_v28  ;;  %v6255_v31 = vld [vmem:[#allocation9 + $0x1d0] sm:$0xff]   ;;  %v6257_v9 = vld [vmem:[#allocation9 + $0x1c8] sm:$0xff]   ;;  %v6260_v3 = vld [vmem:[#allocation9 + $0x1c0] sm:$0xff]  }
 0x2ce   : > { %v6256_v20 = vld [vmem:[#allocation9 + $0x190] sm:$0xff]   ;;  %v6261_v27 = vld [vmem:[#allocation9 + $0x180] sm:$0xff]  }
 0x2cf   : > { %3333 = vmatprep.mubr.bf16.mxu1 %v7953_v34  ;;  %5949 = vmatmul.mubr.bf16.gmra.mxu0 %v7955_v62 }
 0x2d0   : > { %3679 = vmatprep.mubr.bf16.mxu0 %v2873_v7  ;;  %v6246_v7 = vld [vmem:[#allocation9 + $0x1b0] sm:$0xff]  }
 0x2d1   : > { %3334 = vmatmul.mubr.bf16.gmra.mxu1 %v7959_v15 }
 0x2d2   : > { %5968 = vmatprep.mubr.bf16.mxu1 %v2874_v49  ;;  %v6259_v49 = vld [vmem:[#allocation9 + $0x220] sm:$0xff]  }
 0x2d7   : > { %3680 = vmatmul.mubr.bf16.vlgmr.msra.gmra.mxu0 %v2872_v55 }
 0x2d8   : > { %3687 = vmatprep.mubr.bf16.mxu0 %v7656_v43  ;;  %6001 = vmatpush3.bf16.msra.mxu0 %v7750_v61  ;;  %v6250_v43 = vld [vmem:[#allocation9 + $0x1e0] sm:$0xff]  }
 0x2d9   : > { %5969 = vmatmul.mubr.bf16.vlgmr.msra.gmra.mxu1 %v7658_v17  ;;  %6002 = vmatprep.subr.bf16.mxu0 %v6249_v52  ;;  %v6262_v17 = vld [vmem:[#allocation9 + $0x218] sm:$0xff]   ;;  %v6251_v61 = vld [vmem:[#allocation9 + $0x1a0] sm:$0xff]  }
 0x2da   : > { %5972 = vmatprep.mubr.bf16.mxu1 %v7678_v25  ;;  %5625 = vmatpush3.bf16.msra.mxu1 %v6243_v6 }
 0x2db   : > { %5626 = vmatprep.subr.bf16.mxu1 %v6245_v38 }
 0x2dc   : > { %6003 = vmatpush3.bf16.msra.mxu0 %v6249_v52 }
 0x2dd   : > { %6004 = vmatprep.subr.bf16.mxu0 %v6254_v40 }
 0x2de   : > { %5627 = vmatpush3.bf16.msra.mxu1 %v6246_v7 }
 0x2df   : > { %3688 = vmatmul.mubr.bf16.gmra.mxu0 %v7660_v48  ;;  %5628 = vmatprep.subr.bf16.mxu1 %v6247_v60  ;;  %v6253_v48 = vld [vmem:[#allocation9 + $0x198] sm:$0xff]  }
 0x2e0   : > { %3695 = vmatprep.mubr.bf16.mxu0 %v7676_v50  ;;  %6005 = vmatpush3.bf16.msra.mxu0 %v6254_v40 }
 0x2e1   : > { %5973 = vmatmul.mubr.bf16.gmra.mxu1 %v7699_v45  ;;  %6006 = vmatprep.subr.bf16.mxu0 %v6259_v49 }
 0x2e2   : > { %5976 = vmatprep.mubr.bf16.mxu1 %v7719_v30  ;;  %5629 = vmatpush3.bf16.msra.mxu1 %v6248_v41 }
 0x2e3   : > { %5630 = vmatprep.subr.bf16.mxu1 %v6250_v43 }
 0x2e4   : > { %6007 = vmatpush3.bf16.msra.mxu0 %v6259_v49 }
 0x2e5   : > { %6008 = vmatprep.subr.bf16.mxu0 %v6262_v17 }
 0x2e6   : > { %5631 = vmatpush3.bf16.msra.mxu1 %v6251_v61 }
 0x2e7   : > { %3696 = vmatmul.mubr.bf16.gmra.mxu0 %v8680_v56  ;;  %5632 = vmatprep.subr.bf16.mxu1 %v6252_v5 }
 0x2e8   : > { %3703 = vmatprep.mubr.bf16.mxu0 %v7697_v1  ;;  %6009 = vmatpush3.bf16.msra.mxu0 %v6262_v17 }
 0x2e9   : > { %5977 = vmatmul.mubr.bf16.gmra.mxu1 %v7740_v12  ;;  %6010 = vmatprep.subr.bf16.mxu0 %v6263_v2 }
 0x2ea   : > { %5980 = vmatprep.mubr.bf16.mxu1 %v7762_v35  ;;  %5633 = vmatpush3.bf16.msra.mxu1 %v6253_v48 }
 0x2eb   : > { %5634 = vmatprep.subr.bf16.mxu1 %v6255_v31 }
 0x2ec   : > { %6011 = vmatpush3.bf16.msra.mxu0 %v6263_v2 }
 0x2ed   : > { %6012 = vmatprep.subr.bf16.mxu0 %v6264_v44 }
 0x2ee   : > { %5635 = vmatpush3.bf16.msra.mxu1 %v6256_v20 }
 0x2ef   : > { %3704 = vmatmul.mubr.bf16.gmra.mxu0 %v8681_v26  ;;  %5636 = vmatprep.subr.bf16.mxu1 %v6257_v9  ;;  %v8682_v9 = vld [vmem:[#allocation14_spill] sm:$0xff] }
 0x2f0   : > { %3711 = vmatprep.mubr.bf16.mxu0 %v7717_v22  ;;  %6013 = vmatpush3.bf16.msra.mxu0 %v6264_v44 }
 0x2f1   : > { %5981 = vmatmul.mubr.bf16.gmra.mxu1 %v7784_v29  ;;  %6014 = vmatprep.subr.bf16.mxu0 %v6265_v13 }
 0x2f2   : > { %5984 = vmatprep.mubr.bf16.mxu1 %v7804_v23  ;;  %5637 = vmatpush3.bf16.msra.mxu1 %v6258_v46 }
 0x2f3   : > { %5638 = vmatprep.subr.bf16.mxu1 %v6260_v3 }
 0x2f4   : > { %6015 = vmatpush3.bf16.msra.mxu0 %v6265_v13 }
 0x2f6   : > { %5639 = vmatpush3.bf16.msra.mxu1 %v6261_v27 }
 0x2f7   : > { %3712 = vmatmul.mubr.bf16.gmra.mxu0 %v7721_v16 }
 0x2f8   : > { %3719 = vmatprep.mubr.bf16.mxu0 %v7738_v0 }
 0x2f9   : > { %5985 = vmatmul.mubr.bf16.gmra.mxu1 %v7825_v32 }
 0x2fa   : > { %5988 = vmatprep.mubr.bf16.mxu1 %v7845_v59 }
 0x2ff   : > { %3720 = vmatmul.mubr.bf16.gmra.mxu0 %v7742_v47 }
 0x300   : > { %3727 = vmatprep.mubr.bf16.mxu0 %v7760_v58 }
 0x301   : > { %5989 = vmatmul.mubr.bf16.gmra.mxu1 %v7866_v36 }
 0x302   : > { %5992 = vmatprep.mubr.bf16.mxu1 %v7889_v42 }
 0x307   : > { %3728 = vmatmul.mubr.bf16.gmra.mxu0 %v7765_v4 }
 0x308   : > { %3735 = vmatprep.mubr.bf16.mxu0 %v7782_v39 }
 0x309   : > { %5993 = vmatmul.mubr.bf16.gmra.mxu1 %v7908_v21 }
 0x30a   : > { %5996 = vmatprep.mubr.bf16.mxu1 %v7925_v51 }
 0x30f   : > { %3736 = vmatmul.mubr.bf16.gmra.mxu0 %v7786_v10 }
 0x310   : > { %3743 = vmatprep.mubr.bf16.mxu0 %v7802_v57 }
 0x311   : > { %5997 = vmatmul.mubr.bf16.gmra.mxu1 %v7938_v54 }
 0x312   : > { %4214 = vmatprep.mubr.bf16.mxu1 %v7676_v50 }
 0x317   : > { %3744 = vmatmul.mubr.bf16.gmra.mxu0 %v7806_v53 }
 0x318   : > { %3751 = vmatprep.mubr.bf16.mxu0 %v7823_v18 }
 0x319   : > { %v5368_v28 = vpop.f32.mrf.mxu1  ;;  %4215 = vmatmul.mubr.bf16.vlgmr.msra.gmra.mxu1 %v8680_v56 }
 0x31a   : > { %4222 = vmatprep.mubr.bf16.mxu1 %v7697_v1 }
 0x31b   : > { %v5369_v19 = vpop.f32.mrf.mxu1 }
 0x31c   : > { %v5370_v55 = vadd.f32 %v5369_v19, %v5368_v28 }
 0x31d   : > { %v5371_v52 = vpop.f32.mrf.mxu1 }
 0x31f   : > { %v5372_v6 = vpop.f32.mrf.mxu1  ;;  %3752 = vmatmul.mubr.bf16.gmra.mxu0 %v7827_v11 }
 0x320   : > { %v7999_v38 = vadd.f32 %v5372_v6, %v5371_v52  ;;  %3759 = vmatprep.mubr.bf16.mxu0 %v7843_v14 }
 0x321   : > { %v5922_v40 = vpop.f32.mrf.mxu0  ;;  %v5374_v50 = vpop.f32.mrf.mxu1  ;;  %4223 = vmatmul.mubr.bf16.gmra.mxu1 %v8681_v26 }
 0x322   : > { %4230 = vmatprep.mubr.bf16.mxu1 %v7717_v22 }
 0x323   : > { %v3376_v7 = vpop.f32.mrf.mxu0  ;;  %v5375_v1 = vpop.f32.mrf.mxu1 }
 0x324   : > { %v8004_v60 = vadd.f32 %v5370_v55, %v3376_v7  ;;  %v5376_v49 = vadd.f32 %v5375_v1, %v5374_v50 }
 0x325   : > { %v5377_v41 = vpop.f32.mrf.mxu1  ;;  %v5923_v5 = vpop.f32.mrf.mxu0 }
 0x326   : > { %v8006_v43 = vadd.f32 %v5922_v40, %v5376_v49 }
 0x327   : > { %v5378_v17 = vpop.f32.mrf.mxu1  ;;  %3760 = vmatmul.mubr.bf16.gmra.mxu0 %v7847_v8  ;;  %v8014_v44 = vpop.f32.mrf.mxu0 }
 0x328   : > { %v5379_v61 = vadd.f32 %v5378_v17, %v5377_v41  ;;  %3767 = vmatprep.mubr.bf16.mxu0 %v7864_v37  ;;  %v8683_v41 = vld [vmem:[#allocation15_spill] sm:$0xff] }
 0x329   : > { %v5380_v2 = vpop.f32.mrf.mxu1  ;;  %4231 = vmatmul.mubr.bf16.gmra.mxu1 %v7721_v16 }
 0x32a   : > { %v8011_v48 = vadd.f32 %v5923_v5, %v5379_v61  ;;  %4238 = vmatprep.mubr.bf16.mxu1 %v7738_v0  ;;  %v8684_v5 = vld [vmem:[#allocation16_spill] sm:$0xff] }
 0x32b   : > { %v5381_v22 = vpop.f32.mrf.mxu1 }
 0x32c   : > { %v5382_v56 = vadd.f32 %v5381_v22, %v5380_v2 }
 0x32d   : > { %v5383_v31 = vpop.f32.mrf.mxu1 }
 0x32f   : > { %v5384_v20 = vpop.f32.mrf.mxu1  ;;  %3768 = vmatmul.mubr.bf16.gmra.mxu0 %v8682_v9 }
 0x330   : > { %v8017_v13 = vadd.f32 %v5384_v20, %v5383_v31  ;;  %3775 = vmatprep.mubr.bf16.mxu0 %v7887_v24 }
 0x331   : > { %v5926_v46 = vpop.f32.mrf.mxu0  ;;  %v5386_v26 = vpop.f32.mrf.mxu1  ;;  %4239 = vmatmul.mubr.bf16.gmra.mxu1 %v7742_v47 }
 0x332   : > { %4246 = vmatprep.mubr.bf16.mxu1 %v7760_v58 }
 0x333   : > { %v3392_v16 = vpop.f32.mrf.mxu0  ;;  %v5387_v3 = vpop.f32.mrf.mxu1 }
 0x334   : > { %v8022_v0 = vadd.f32 %v5382_v56, %v3392_v16  ;;  %v5388_v27 = vadd.f32 %v5387_v3, %v5386_v26 }
 0x335   : > { %v5389_v28 = vpop.f32.mrf.mxu1  ;;  %v5927_v6 = vpop.f32.mrf.mxu0 }
 0x336   : > { %v8024_v19 = vadd.f32 %v5926_v46, %v5388_v27  ;;  %v8685_v27 = vld [vmem:[#allocation17_spill] sm:$0xff] }
 0x337   : > { %v5390_v55 = vpop.f32.mrf.mxu1  ;;  %3776 = vmatmul.mubr.bf16.gmra.mxu0 %v7891_v63  ;;  %v8032_v1 = vpop.f32.mrf.mxu0 }
 0x338   : > { %v5391_v52 = vadd.f32 %v5390_v55, %v5389_v28  ;;  %3783 = vmatprep.mubr.bf16.mxu0 %v7906_v33  ;;  %v8686_v55 = vld [vmem:[#allocation18_spill] sm:$0xff] }
 0x339   : > { %v5392_v40 = vpop.f32.mrf.mxu1  ;;  %4247 = vmatmul.mubr.bf16.gmra.mxu1 %v7765_v4 }
 0x33a   : > { %v8029_v47 = vadd.f32 %v5927_v6, %v5391_v52  ;;  %4254 = vmatprep.mubr.bf16.mxu1 %v7782_v39 }
 0x33b   : > { %v5393_v58 = vpop.f32.mrf.mxu1 }
 0x33c   : > { %v5394_v50 = vadd.f32 %v5393_v58, %v5392_v40 }
 0x33d   : > { %v5395_v7 = vpop.f32.mrf.mxu1 }
 0x33f   : > { %v5396_v49 = vpop.f32.mrf.mxu1  ;;  %3784 = vmatmul.mubr.bf16.gmra.mxu0 %v8683_v41 }
 0x340   : > { %v5397_v17 = vadd.f32 %v5396_v49, %v5395_v7  ;;  %3791 = vmatprep.mubr.bf16.mxu0 %v8684_v5 }
 0x341   : > { %v5930_v61 = vpop.f32.mrf.mxu0  ;;  %v5398_v2 = vpop.f32.mrf.mxu1  ;;  %4255 = vmatmul.mubr.bf16.gmra.mxu1 %v7786_v10 }
 0x342   : > { %4262 = vmatprep.mubr.bf16.mxu1 %v7802_v57 }
 0x343   : > { %v3408_v4 = vpop.f32.mrf.mxu0  ;;  %v5399_v39 = vpop.f32.mrf.mxu1 }
 0x344   : > { %v8038_v22 = vadd.f32 %v5394_v50, %v3408_v4  ;;  %v5400_v56 = vadd.f32 %v5399_v39, %v5398_v2  ;;  %v8687_v50 = vld [vmem:[#allocation19_spill] sm:$0xff] }
 0x345   : > { %v5931_v31 = vpop.f32.mrf.mxu0  ;;  %v5401_v20 = vpop.f32.mrf.mxu1 }
 0x346   : > { %v8040_v46 = vadd.f32 %v5930_v61, %v5400_v56 }
 0x347   : > { %v3411_v26 = vpop.f32.mrf.mxu0  ;;  %v5402_v3 = vpop.f32.mrf.mxu1  ;;  %3792 = vmatmul.mubr.bf16.gmra.mxu0 %v8685_v27 }
 0x348   : > { %v8042_v16 = vadd.f32 %v5397_v17, %v3411_v26  ;;  %v5403_v28 = vadd.f32 %v5402_v3, %v5401_v20  ;;  %3799 = vmatprep.mubr.bf16.mxu0 %v8686_v55 }
 0x349   : > { %v5404_v10 = vpop.f32.mrf.mxu1  ;;  %4263 = vmatmul.mubr.bf16.gmra.mxu1 %v7806_v53 }
 0x34a   : > { %v8047_v57 = vadd.f32 %v5931_v31, %v5403_v28  ;;  %4270 = vmatprep.mubr.bf16.mxu1 %v7823_v18 }
 0x34b   : > { %v5405_v52 = vpop.f32.mrf.mxu1 }
 0x34c   : > { %v5406_v6 = vadd.f32 %v5405_v52, %v5404_v10 }
 0x34d   : > { %v5407_v40 = vpop.f32.mrf.mxu1 }
 0x34f   : > { %v5408_v58 = vpop.f32.mrf.mxu1  ;;  %3800 = vmatmul.mubr.bf16.gmra.mxu0 %v8687_v50 }
 0x350   : > { %v5409_v7 = vadd.f32 %v5408_v58, %v5407_v40  ;;  %v5934_v49 = vpop.f32.mrf.mxu0  ;;  %6016 = vmatprep.mubr.bf16.mxu0 %v7678_v25 }
 0x351   : > { %v5410_v17 = vpop.f32.mrf.mxu1  ;;  %4271 = vmatmul.mubr.bf16.gmra.mxu1 %v7827_v11 }
 0x352   : > { %v3424_v61 = vpop.f32.mrf.mxu0  ;;  %4278 = vmatprep.mubr.bf16.mxu1 %v7843_v14 }
 0x353   : > { %v8054_v53 = vadd.f32 %v5406_v6, %v3424_v61  ;;  %v5411_v2 = vpop.f32.mrf.mxu1 }
 0x354   : > { %v5412_v18 = vadd.f32 %v5411_v2, %v5410_v17  ;;  %v5935_v4 = vpop.f32.mrf.mxu0 }
 0x355   : > { %v5413_v39 = vpop.f32.mrf.mxu1 }
 0x356   : > { %v8056_v56 = vadd.f32 %v5934_v49, %v5412_v18  ;;  %v3427_v31 = vpop.f32.mrf.mxu0 }
 0x357   : > { %v8058_v20 = vadd.f32 %v5409_v7, %v3427_v31  ;;  %v5414_v26 = vpop.f32.mrf.mxu1  ;;  %6017 = vmatmul.mubr.bf16.vlgmr.msra.gmra.mxu0 %v7699_v45 }
 0x358   : > { %v5415_v25 = vadd.f32 %v5414_v26, %v5413_v39  ;;  %6020 = vmatprep.mubr.bf16.mxu0 %v7719_v30 }
 0x359   : > { %v5416_v11 = vpop.f32.mrf.mxu1  ;;  %4279 = vmatmul.mubr.bf16.gmra.mxu1 %v7847_v8 }
 0x35a   : > { %v8063_v14 = vadd.f32 %v5935_v4, %v5415_v25  ;;  %4286 = vmatprep.mubr.bf16.mxu1 %v7864_v37 }
 0x35b   : > { %v5417_v3 = vpop.f32.mrf.mxu1 }
 0x35c   : > { %v5418_v28 = vadd.f32 %v5417_v3, %v5416_v11 }
 0x35d   : > { %v5419_v10 = vpop.f32.mrf.mxu1 }
 0x35f   : > { %v5420_v52 = vpop.f32.mrf.mxu1  ;;  %6021 = vmatmul.mubr.bf16.gmra.mxu0 %v7740_v12 }
 0x360   : > { %v5421_v6 = vadd.f32 %v5420_v52, %v5419_v10  ;;  %v5938_v40 = vpop.f32.mrf.mxu0  ;;  %6024 = vmatprep.mubr.bf16.mxu0 %v7762_v35 }
 0x361   : > { %v5422_v45 = vpop.f32.mrf.mxu1  ;;  %4287 = vmatmul.mubr.bf16.gmra.mxu1 %v8682_v9 }
 0x362   : > { %v3440_v30 = vpop.f32.mrf.mxu0  ;;  %4294 = vmatprep.mubr.bf16.mxu1 %v7887_v24 }
 0x363   : > { %v8070_v8 = vadd.f32 %v5418_v28, %v3440_v30  ;;  %v5423_v58 = vpop.f32.mrf.mxu1  ;;  %v2597_v30 = vld [vmem:[#allocation3 + $0x198] sm:$0xff] }
 0x364   : > { %v5424_v37 = vadd.f32 %v5423_v58, %v5422_v45  ;;  %v5939_v7 = vpop.f32.mrf.mxu0  ;;  %v2598_v58 = vld [vmem:[#allocation3 + $0x1a0] sm:$0xff] }
 0x365   : > { %v5425_v49 = vpop.f32.mrf.mxu1 }
 0x366   : > { %v8072_v17 = vadd.f32 %v5938_v40, %v5424_v37  ;;  %v3443_v61 = vpop.f32.mrf.mxu0  ;;  %v2599_v37 = vld [vmem:[#allocation3 + $0x1a8] sm:$0x3] }
 0x367   : > { %v8074_v12 = vadd.f32 %v5421_v6, %v3443_v61  ;;  %v5426_v2 = vpop.f32.mrf.mxu1  ;;  %6025 = vmatmul.mubr.bf16.gmra.mxu0 %v7784_v29  ;;  %v3973_v61 = vrot.slane %v2598_v58, 1 }
 0x368   : > { %v5427_v35 = vadd.f32 %v5426_v2, %v5425_v49  ;;  %6028 = vmatprep.mubr.bf16.mxu0 %v7804_v23  ;;  %v3975_v2 = vrot.slane %v2599_v37, 1 }
 0x369   : > { %v5428_v9 = vpop.f32.mrf.mxu1  ;;  %4295 = vmatmul.mubr.bf16.gmra.mxu1 %v7891_v63 }
 0x36a   : > { %v8079_v24 = vadd.f32 %v5939_v7, %v5427_v35  ;;  %4302 = vmatprep.mubr.bf16.mxu1 %v7906_v33 }
 0x36b   : > { %v5429_v18 = vpop.f32.mrf.mxu1 }
 0x36c   : > { %v5430_v4 = vadd.f32 %v5429_v18, %v5428_v9 }
 0x36d   : > { %v5431_v39 = vpop.f32.mrf.mxu1 }
 0x36f   : > { %v5432_v31 = vpop.f32.mrf.mxu1  ;;  %6029 = vmatmul.mubr.bf16.gmra.mxu0 %v7825_v32 }
 0x370   : > { %v5433_v26 = vadd.f32 %v5432_v31, %v5431_v39  ;;  %v5942_v25 = vpop.f32.mrf.mxu0  ;;  %6032 = vmatprep.mubr.bf16.mxu0 %v7845_v59 }
 0x371   : > { %v5434_v29 = vpop.f32.mrf.mxu1  ;;  %4303 = vmatmul.mubr.bf16.gmra.mxu1 %v8683_v41 }
 0x372   : > { %v3456_v23 = vpop.f32.mrf.mxu0  ;;  %4310 = vmatprep.mubr.bf16.mxu1 %v8684_v5 }
 0x373   : > { %v8086_v63 = vadd.f32 %v5430_v4, %v3456_v23  ;;  %v5435_v11 = vpop.f32.mrf.mxu1 }
 0x374   : > { %v5436_v33 = vadd.f32 %v5435_v11, %v5434_v29  ;;  %v5943_v3 = vpop.f32.mrf.mxu0  ;;  %v3980_v29 = vrot.slane %v2598_v58, 2 }
 0x375   : > { %v5437_v28 = vpop.f32.mrf.mxu1 }
 0x376   : > { %v8088_v10 = vadd.f32 %v5942_v25, %v5436_v33  ;;  %v3459_v52 = vpop.f32.mrf.mxu0  ;;  %v3979_v25 = vrot.slane %v2597_v30, 2 }
 0x377   : > { %v8090_v32 = vadd.f32 %v5433_v26, %v3459_v52  ;;  %v5438_v6 = vpop.f32.mrf.mxu1  ;;  %6033 = vmatmul.mubr.bf16.gmra.mxu0 %v7866_v36  ;;  %v3972_v36 = vrot.slane %v2597_v30, 1  ;;  %v3982_v26 = vrot.slane %v2599_v37, 2 }
 0x378   : > { %v5439_v59 = vadd.f32 %v5438_v6, %v5437_v28  ;;  %6036 = vmatprep.mubr.bf16.mxu0 %v7889_v42  ;;  %v3981_v28 = vsel %vm665_vm1, %v3979_v25, %v3980_v29 }
 0x379   : > { %v5440_v41 = vpop.f32.mrf.mxu1  ;;  %4311 = vmatmul.mubr.bf16.gmra.mxu1 %v8685_v27  ;;  %v3974_v4 = vsel %vm552_vm0, %v3972_v36, %v3973_v61  ;;  %v3983_v52 = vsel %vm665_vm1, %v3980_v29, %v3982_v26 }
 0x37a   : > { %v8095_v5 = vadd.f32 %v5943_v3, %v5439_v59  ;;  %4318 = vmatprep.mubr.bf16.mxu1 %v8686_v55 }
 0x37b   : > { %v5441_v40 = vpop.f32.mrf.mxu1 }
 0x37c   : > { %v5442_v45 = vadd.f32 %v5441_v40, %v5440_v41  ;;  %v3988_v40 = vpack.c.bf16 %v3983_v52, %v3981_v28 }
 0x37d   : > { %v5443_v7 = vpop.f32.mrf.mxu1 }
 0x37f   : > { %v5444_v49 = vpop.f32.mrf.mxu1  ;;  %6037 = vmatmul.mubr.bf16.gmra.mxu0 %v7908_v21  ;;  %v3976_v21 = vsel %vm552_vm0, %v3973_v61, %v3975_v2 }
 0x380   : > { %v5445_v42 = vadd.f32 %v5444_v49, %v5443_v7  ;;  %v5946_v35 = vpop.f32.mrf.mxu0  ;;  %6040 = vmatprep.mubr.bf16.mxu0 %v7925_v51  ;;  %v3986_v7 = vpack.c.bf16 %v2598_v58, %v2597_v30 }
 0x381   : > { %v5446_v27 = vpop.f32.mrf.mxu1  ;;  %4319 = vmatmul.mubr.bf16.gmra.mxu1 %v8687_v50  ;;  %v3987_v50 = vpack.c.bf16 %v3976_v21, %v3974_v4 }
 0x382   : > { %v3472_v55 = vpop.f32.mrf.mxu0  ;;  %4326 = vmatprep.mubr.bf16.mxu1 %v7953_v34 }
 0x383   : > { %v8102_v9 = vadd.f32 %v5442_v45, %v3472_v55  ;;  %v5447_v18 = vpop.f32.mrf.mxu1 }
 0x384   : > { %v5448_v39 = vadd.f32 %v5447_v18, %v5446_v27  ;;  %v5947_v31 = vpop.f32.mrf.mxu0 }
 0x385   : > { %v5449_v23 = vpop.f32.mrf.mxu1 }
 0x386   : > { %v8106_v51 = vadd.f32 %v5946_v35, %v5448_v39  ;;  %v3475_v11 = vpop.f32.mrf.mxu0 }
 0x387   : > { %v8108_v33 = vadd.f32 %v5445_v42, %v3475_v11  ;;  %v5450_v34 = vpop.f32.mrf.mxu1  ;;  %6041 = vmatmul.mubr.bf16.gmra.mxu0 %v7938_v54 }
 0x388   : > { %v5451_v3 = vadd.f32 %v5450_v34, %v5449_v23  ;;  %6044 = vmatprep.mubr.bf16.mxu0 %v7955_v62 }
 0x389   : > { %v5452_v6 = vpop.f32.mrf.mxu1  ;;  %4327 = vmatmul.mubr.bf16.gmra.mxu1 %v7959_v15 }
 0x38a   : > { %v8115_v59 = vadd.f32 %v5947_v31, %v5451_v3  ;;  %4334 = vmatprep.mubr.bf16.mxu1 %v3987_v50  ;;  %v3380_v3 = vadd.f32 %v7999_v38, %v8014_v44 }
 0x38b   : > { %v5453_v41 = vpop.f32.mrf.mxu1 }
 0x38c   : > { %v5454_v45 = vadd.f32 %v5453_v41, %v5452_v6 }
 0x38d   : > { %v5455_v37 = vpop.f32.mrf.mxu1 }
 0x38f   : > { %v5456_v49 = vpop.f32.mrf.mxu1  ;;  %v5950_v54 = vpop.f32.mrf.mxu0  ;;  %6045 = vmatmul.mubr.bf16.gmra.mxu0 %v3988_v40 }
 0x390   : > { %v5457_v36 = vadd.f32 %v5456_v49, %v5455_v37 }
 0x391   : > { %v5458_v62 = vpop.f32.mrf.mxu1  ;;  %4335 = vmatmul.mubr.bf16.gmra.mxu1 %v3986_v7  ;;  %v3488_v61 = vpop.f32.mrf.mxu0 }
 0x392   : > { %v8117_v2 = vadd.f32 %v5454_v45, %v3488_v61 }
 0x393   : > { %v5459_v42 = vpop.f32.mrf.mxu1  ;;  %v5951_v35 = vpop.f32.mrf.mxu0 }
 0x394   : > { %v5460_v15 = vadd.f32 %v5459_v42, %v5458_v62 }
 0x395   : > { %v5461_v27 = vpop.f32.mrf.mxu1  ;;  %v3491_v55 = vpop.f32.mrf.mxu0 }
 0x396   : > { %v8119_v18 = vadd.f32 %v5950_v54, %v5460_v15  ;;  %v8121_v4 = vadd.f32 %v5457_v36, %v3491_v55 }
 0x397   : > { %v5462_v21 = vpop.f32.mrf.mxu1  ;;  %v5504_v30 = vpop.f32.mrf.mxu0 }
 0x398   : > { %v5463_v58 = vadd.f32 %v5462_v21, %v5461_v27 }
 0x399   : > { %v5970_v39 = vpop.f32.mrf.mxu1  ;;  %v5505_v31 = vpop.f32.mrf.mxu0 }
 0x39a   : > { %v8123_v26 = vadd.f32 %v5951_v35, %v5463_v58  ;;  %v5506_v25 = vadd.f32 %v5505_v31, %v5504_v30 }
 0x39b   : > { %v3842_v29 = vpop.f32.mrf.mxu1  ;;  %v5507_v23 = vpop.f32.mrf.mxu0 }
 0x39c   : > { %v3682_v11 = vadd.f32 %v5506_v25, %v8004_v60 }
 0x39d   : > { %v5971_v50 = vpop.f32.mrf.mxu1  ;;  %v5508_v34 = vpop.f32.mrf.mxu0 }
 0x39e   : > { %v8128_v28 = vadd.f32 %v3842_v29, %v3682_v11  ;;  %v5509_v52 = vadd.f32 %v5508_v34, %v5507_v23  ;;  %v3396_v23 = vadd.f32 %v8017_v13, %v8032_v1 }
 0x39f   : > { %v3845_v6 = vpop.f32.mrf.mxu1  ;;  %v5510_v41 = vpop.f32.mrf.mxu0 }
 0x3a0   : > { %v3685_v40 = vadd.f32 %v5509_v52, %v3380_v3 }
 0x3a1   : > { %v5974_v45 = vpop.f32.mrf.mxu1  ;;  %v5511_v37 = vpop.f32.mrf.mxu0 }
 0x3a2   : > { %v8130_v7 = vadd.f32 %v3845_v6, %v3685_v40  ;;  %v5512_v49 = vadd.f32 %v5511_v37, %v5510_v41 }
 0x3a3   : > { %v3858_v54 = vpop.f32.mrf.mxu1  ;;  %v5513_v36 = vpop.f32.mrf.mxu0 }
 0x3a4   : > { %v3690_v60 = vadd.f32 %v5512_v49, %v8006_v43 }
 0x3a5   : > { %v5975_v62 = vpop.f32.mrf.mxu1  ;;  %v5514_v61 = vpop.f32.mrf.mxu0 }
 0x3a6   : > { %v5515_v42 = vadd.f32 %v5514_v61, %v5513_v36  ;;  %v8133_v35 = vadd.f32 %v5970_v39, %v3690_v60 }
 0x3a7   : > { %v3861_v38 = vpop.f32.mrf.mxu1  ;;  %v5516_v44 = vpop.f32.mrf.mxu0 }
 0x3a8   : > { %v3693_v15 = vadd.f32 %v5515_v42, %v8011_v48 }
 0x3a9   : > { %v5978_v27 = vpop.f32.mrf.mxu1  ;;  %v5517_v55 = vpop.f32.mrf.mxu0 }
 0x3aa   : > { %v5518_v21 = vadd.f32 %v5517_v55, %v5516_v44  ;;  %v8136_v30 = vadd.f32 %v5971_v50, %v3693_v15 }
 0x3ab   : > { %v3874_v58 = vpop.f32.mrf.mxu1  ;;  %v5519_v31 = vpop.f32.mrf.mxu0 }
 0x3ac   : > { %v3698_v25 = vadd.f32 %v5518_v21, %v8022_v0 }
 0x3ad   : > { %v5979_v29 = vpop.f32.mrf.mxu1  ;;  %v5520_v43 = vpop.f32.mrf.mxu0 }
 0x3ae   : > { %v5521_v39 = vadd.f32 %v5520_v43, %v5519_v31  ;;  %v8141_v11 = vadd.f32 %v3858_v54, %v3698_v25 }
 0x3af   : > { %v3877_v34 = vpop.f32.mrf.mxu1  ;;  %v5522_v3 = vpop.f32.mrf.mxu0 }
 0x3b0   : > { %v3701_v48 = vadd.f32 %v5521_v39, %v3396_v23 }
 0x3b1   : > { %v8143_v52 = vpop.f32.mrf.mxu1  ;;  %v5523_v6 = vpop.f32.mrf.mxu0 }
 0x3b2   : > { %v5524_v50 = vadd.f32 %v5523_v6, %v5522_v3  ;;  %v8145_v41 = vadd.f32 %v3861_v38, %v3701_v48 }
 0x3b3   : > { %v3890_v40 = vpop.f32.mrf.mxu1  ;;  %v5525_v37 = vpop.f32.mrf.mxu0 }
 0x3b4   : > { %v3706_v0 = vadd.f32 %v5524_v50, %v8024_v19 }
 0x3b5   : > { %v8148_v49 = vpop.f32.mrf.mxu1  ;;  %v5526_v36 = vpop.f32.mrf.mxu0 }
 0x3b6   : > { %v5527_v13 = vadd.f32 %v5526_v36, %v5525_v37  ;;  %v8150_v1 = vadd.f32 %v5974_v45, %v3706_v0 }
 0x3b7   : > { %v3893_v54 = vpop.f32.mrf.mxu1  ;;  %v5528_v60 = vpop.f32.mrf.mxu0 }
 0x3b8   : > { %v3709_v61 = vadd.f32 %v5527_v13, %v8029_v47 }
 0x3b9   : > { %v8153_v42 = vpop.f32.mrf.mxu1  ;;  %v5529_v44 = vpop.f32.mrf.mxu0 }
 0x3ba   : > { %v5530_v15 = vadd.f32 %v5529_v44, %v5528_v60  ;;  %v8155_v38 = vadd.f32 %v5975_v62, %v3709_v61 }
 0x3bb   : > { %v3906_v55 = vpop.f32.mrf.mxu1  ;;  %v5531_v21 = vpop.f32.mrf.mxu0 }
 0x3bc   : > { %v3714_v19 = vadd.f32 %v5530_v15, %v8038_v22 }
 0x3bd   : > { %v8158_v31 = vpop.f32.mrf.mxu1  ;;  %v5532_v25 = vpop.f32.mrf.mxu0 }
 0x3be   : > { %v5533_v43 = vadd.f32 %v5532_v25, %v5531_v21  ;;  %v8160_v45 = vadd.f32 %v3874_v58, %v3714_v19 }
 0x3bf   : > { %v3909_v23 = vpop.f32.mrf.mxu1  ;;  %v5534_v39 = vpop.f32.mrf.mxu0 }
 0x3c0   : > { %v3717_v47 = vadd.f32 %v5533_v43, %v8042_v16 }
 0x3c1   : > { %v8163_v3 = vpop.f32.mrf.mxu1  ;;  %v5535_v48 = vpop.f32.mrf.mxu0 }
 0x3c2   : > { %v5536_v6 = vadd.f32 %v5535_v48, %v5534_v39  ;;  %v8165_v62 = vadd.f32 %v3877_v34, %v3717_v47 }
 0x3c3   : > { %v8167_v50 = vpop.f32.mrf.mxu1  ;;  %v5537_v37 = vpop.f32.mrf.mxu0 }
 0x3c4   : > { %v3722_v22 = vadd.f32 %v5536_v6, %v8040_v46 }
 0x3c5   : > { %v8170_v0 = vpop.f32.mrf.mxu1  ;;  %v5538_v36 = vpop.f32.mrf.mxu0 }
 0x3c6   : > { %v5539_v58 = vadd.f32 %v5538_v36, %v5537_v37  ;;  %v8172_v13 = vadd.f32 %v5978_v27, %v3722_v22 }
 0x3c7   : > { %v8174_v60 = vpop.f32.mrf.mxu1  ;;  %v5540_v16 = vpop.f32.mrf.mxu0 }
 0x3c8   : > { %v3725_v61 = vadd.f32 %v5539_v58, %v8047_v57 }
 0x3c9   : > { %v8177_v44 = vpop.f32.mrf.mxu1  ;;  %v5541_v34 = vpop.f32.mrf.mxu0 }
 0x3ca   : > { %v5542_v15 = vadd.f32 %v5541_v34, %v5540_v16  ;;  %v8179_v21 = vadd.f32 %v5979_v29, %v3725_v61 }
 0x3cb   : > { %v8181_v19 = vpop.f32.mrf.mxu1  ;;  %v5543_v46 = vpop.f32.mrf.mxu0 }
 0x3cc   : > { %v3730_v25 = vadd.f32 %v5542_v15, %v8054_v53 }
 0x3cd   : > { %v8184_v43 = vpop.f32.mrf.mxu1  ;;  %v5544_v27 = vpop.f32.mrf.mxu0 }
 0x3ce   : > { %v5545_v39 = vadd.f32 %v5544_v27, %v5543_v46  ;;  %v8186_v47 = vadd.f32 %v3890_v40, %v3730_v25 }
 0x3cf   : > { %v8188_v48 = vpop.f32.mrf.mxu1  ;;  %v5546_v57 = vpop.f32.mrf.mxu0 }
 0x3d0   : > { %v3733_v6 = vadd.f32 %v5545_v39, %v8058_v20 }
 0x3d1   : > { %v8191_v37 = vpop.f32.mrf.mxu1  ;;  %v5547_v29 = vpop.f32.mrf.mxu0 }
 0x3d2   : > { %8688 = vst [vmem:[#allocation20_spill] sm:$0xff] %v8191_v37  ;;  %v5548_v22 = vadd.f32 %v5547_v29, %v5546_v57  ;;  %v8193_v36 = vadd.f32 %v3893_v54, %v3733_v6 }
 0x3d3   : > { %v8195_v58 = vpop.f32.mrf.mxu1  ;;  %v5549_v53 = vpop.f32.mrf.mxu0 }
 0x3d4   : > { %v3738_v16 = vadd.f32 %v5548_v22, %v8056_v56 }
 0x3d5   : > { %v8198_v61 = vpop.f32.mrf.mxu1  ;;  %v5550_v40 = vpop.f32.mrf.mxu0 }
 0x3d6   : > { %8689 = vst [vmem:[#allocation21_spill] sm:$0xff] %v8198_v61  ;;  %v5551_v34 = vadd.f32 %v5550_v40, %v5549_v53  ;;  %v8201_v15 = vadd.f32 %v8143_v52, %v3738_v16 }
 0x3d7   : > { %v8203_v46 = vpop.f32.mrf.mxu1  ;;  %v5552_v20 = vpop.f32.mrf.mxu0 }
 0x3d8   : > { %v3741_v25 = vadd.f32 %v5551_v34, %v8063_v14 }
 0x3d9   : > { %v8206_v27 = vpop.f32.mrf.mxu1  ;;  %v5553_v54 = vpop.f32.mrf.mxu0 }
 0x3da   : > { %v5554_v39 = vadd.f32 %v5553_v54, %v5552_v20  ;;  %v8209_v57 = vadd.f32 %v8148_v49, %v3741_v25 }
 0x3db   : > { %v8211_v56 = vpop.f32.mrf.mxu1  ;;  %v5555_v6 = vpop.f32.mrf.mxu0 }
 0x3dc   : > { %v3746_v29 = vadd.f32 %v5554_v39, %v8070_v8 }
 0x3dd   : > { %v8214_v22 = vpop.f32.mrf.mxu1  ;;  %v5556_v52 = vpop.f32.mrf.mxu0 }
 0x3de   : > { %v5557_v53 = vadd.f32 %v5556_v52, %v5555_v6  ;;  %v8216_v16 = vadd.f32 %v3906_v55, %v3746_v29 }
 0x3df   : > { %v8218_v40 = vpop.f32.mrf.mxu1  ;;  %v5558_v14 = vpop.f32.mrf.mxu0 }
 0x3e0   : > { %v3749_v34 = vadd.f32 %v5557_v53, %v8074_v12 }
 0x3e1   : > { %v8221_v20 = vpop.f32.mrf.mxu1  ;;  %v5559_v49 = vpop.f32.mrf.mxu0 }
 0x3e2   : > { %v5560_v25 = vadd.f32 %v5559_v49, %v5558_v14  ;;  %v8223_v54 = vadd.f32 %v3909_v23, %v3749_v34 }
 0x3e3   : > { %v8225_v61 = vpop.f32.mrf.mxu1  ;;  %v5561_v8 = vpop.f32.mrf.mxu0 }
 0x3e4   : > { %8690 = vst [vmem:[#allocation22_spill] sm:$0xff] %v8223_v54  ;;  %v3754_v39 = vadd.f32 %v5560_v25, %v8072_v17 }
 0x3e5   : > { %v8228_v37 = vpop.f32.mrf.mxu1  ;;  %v5562_v55 = vpop.f32.mrf.mxu0 }
 0x3e6   : > { %v5563_v6 = vadd.f32 %v5562_v55, %v5561_v8  ;;  %v8231_v29 = vadd.f32 %v8153_v42, %v3754_v39 }
 0x3e7   : > { %v8233_v52 = vpop.f32.mrf.mxu1  ;;  %v5564_v12 = vpop.f32.mrf.mxu0 }
 0x3e8   : > { %v3757_v53 = vadd.f32 %v5563_v6, %v8079_v24 }
 0x3e9   : > { %v8236_v14 = vpop.f32.mrf.mxu1  ;;  %v5565_v23 = vpop.f32.mrf.mxu0 }
 0x3ea   : > { %v5566_v34 = vadd.f32 %v5565_v23, %v5564_v12  ;;  %v8239_v49 = vadd.f32 %v8158_v31, %v3757_v53 }
 0x3eb   : > { %v8241_v17 = vpop.f32.mrf.mxu1  ;;  %v5567_v25 = vpop.f32.mrf.mxu0 }
 0x3ec   : > { %8691 = vst [vmem:[#allocation23_spill] sm:$0xff] %v8239_v49  ;;  %v3762_v8 = vadd.f32 %v5566_v34, %v8086_v63 }
 0x3ed   : > { %v8244_v55 = vpop.f32.mrf.mxu1  ;;  %v5568_v42 = vpop.f32.mrf.mxu0 }
 0x3ee   : > { %v5569_v39 = vadd.f32 %v5568_v42, %v5567_v25  ;;  %v8247_v54 = vadd.f32 %v8167_v50, %v3762_v8 }
 0x3ef   : > { %v8249_v24 = vpop.f32.mrf.mxu1  ;;  %v5570_v6 = vpop.f32.mrf.mxu0 }
 0x3f0   : > { %8692 = vst [vmem:[#allocation24_spill] sm:$0xff] %v8247_v54  ;;  %v3765_v12 = vadd.f32 %v5569_v39, %v8090_v32 }
 0x3f1   : > { %v8252_v23 = vpop.f32.mrf.mxu1  ;;  %v5571_v31 = vpop.f32.mrf.mxu0 }
 0x3f2   : > { %v5572_v53 = vadd.f32 %v5571_v31, %v5570_v6  ;;  %v8255_v49 = vadd.f32 %v8174_v60, %v3765_v12 }
 0x3f3   : > { %v8257_v63 = vpop.f32.mrf.mxu1  ;;  %v5573_v34 = vpop.f32.mrf.mxu0 }
 0x3f4   : > { %8693 = vst [vmem:[#allocation25_spill] sm:$0xff] %v8255_v49  ;;  %v3770_v25 = vadd.f32 %v5572_v53, %v8088_v10 }
 0x3f5   : > { %v8260_v42 = vpop.f32.mrf.mxu1  ;;  %v5574_v50 = vpop.f32.mrf.mxu0 }
 0x3f6   : > { %v5575_v8 = vadd.f32 %v5574_v50, %v5573_v34  ;;  %v8263_v54 = vadd.f32 %v8163_v3, %v3770_v25 }
 0x3f7   : > { %v8265_v32 = vpop.f32.mrf.mxu1  ;;  %v5576_v39 = vpop.f32.mrf.mxu0 }
 0x3f8   : > { %8694 = vst [vmem:[#allocation26_spill] sm:$0xff] %v8263_v54  ;;  %v3773_v6 = vadd.f32 %v5575_v8, %v8095_v5 }
 0x3f9   : > { %v8268_v31 = vpop.f32.mrf.mxu1  ;;  %v5577_v60 = vpop.f32.mrf.mxu0 }
 0x3fa   : > { %v5578_v12 = vadd.f32 %v5577_v60, %v5576_v39  ;;  %v8271_v49 = vadd.f32 %v8170_v0, %v3773_v6 }
 0x3fb   : > { %v8273_v10 = vpop.f32.mrf.mxu1  ;;  %v5579_v53 = vpop.f32.mrf.mxu0 }
 0x3fc   : > { %8695 = vst [vmem:[#allocation28_spill] sm:$0xff] %v8271_v49  ;;  %v3778_v34 = vadd.f32 %v5578_v12, %v8102_v9 }
 0x3fd   : > { %v8276_v50 = vpop.f32.mrf.mxu1  ;;  %v5580_v3 = vpop.f32.mrf.mxu0 }
 0x3fe   : > { %v5581_v25 = vadd.f32 %v5580_v3, %v5579_v53  ;;  %v8279_v54 = vadd.f32 %v8181_v19, %v3778_v34 }
 0x3ff   : > { %v8281_v5 = vpop.f32.mrf.mxu1  ;;  %v5582_v8 = vpop.f32.mrf.mxu0 }
 0x400   : > { %8696 = vst [vmem:[#allocation29_spill] sm:$0xff] %v8279_v54  ;;  %v3781_v39 = vadd.f32 %v5581_v25, %v8108_v33 }
 0x401   : > { %v8284_v60 = vpop.f32.mrf.mxu1  ;;  %v5583_v0 = vpop.f32.mrf.mxu0 }
 0x402   : > { %v5584_v6 = vadd.f32 %v5583_v0, %v5582_v8  ;;  %v8287_v49 = vadd.f32 %v8188_v48, %v3781_v39 }
 0x403   : > { %v8289_v9 = vpop.f32.mrf.mxu1  ;;  %v5585_v12 = vpop.f32.mrf.mxu0 }
 0x404   : > { %8697 = vst [vmem:[#allocation30_spill] sm:$0xff] %v8287_v49  ;;  %v3786_v53 = vadd.f32 %v5584_v6, %v8106_v51 }
 0x405   : > { %v8292_v3 = vpop.f32.mrf.mxu1  ;;  %v5586_v19 = vpop.f32.mrf.mxu0 }
 0x406   : > { %v5587_v34 = vadd.f32 %v5586_v19, %v5585_v12  ;;  %v8295_v54 = vadd.f32 %v8177_v44, %v3786_v53 }
 0x407   : > { %v8297_v33 = vpop.f32.mrf.mxu1  ;;  %v5588_v25 = vpop.f32.mrf.mxu0 }
 0x408   : > { %8698 = vst [vmem:[#allocation27_spill] sm:$0xff] %v8295_v54  ;;  %v3789_v8 = vadd.f32 %v5587_v34, %v8115_v59 }
 0x409   : > { %v8300_v0 = vpop.f32.mrf.mxu1  ;;  %v5589_v48 = vpop.f32.mrf.mxu0 }
 0x40a   : > { %v5590_v39 = vadd.f32 %v5589_v48, %v5588_v25  ;;  %v8303_v49 = vadd.f32 %v8184_v43, %v3789_v8 }
 0x40b   : > { %v8305_v51 = vpop.f32.mrf.mxu1  ;;  %v5591_v6 = vpop.f32.mrf.mxu0 }
 0x40c   : > { %8699 = vst [vmem:[#allocation14_spill] sm:$0xff] %v8303_v49  ;;  %v3794_v12 = vadd.f32 %v5590_v39, %v8117_v2 }
 0x40d   : > { %v8308_v19 = vpop.f32.mrf.mxu1  ;;  %v5592_v44 = vpop.f32.mrf.mxu0 }
 0x40e   : > { %v5593_v53 = vadd.f32 %v5592_v44, %v5591_v6  ;;  %v8311_v54 = vadd.f32 %v8195_v58, %v3794_v12  ;;  %v5648_v44 = vadd.f32 %v8225_v61, %v8221_v20  ;;  %v5651_v61 = vadd.f32 %v8233_v52, %v8228_v37 }
 0x40f   : > { %v8313_v59 = vpop.f32.mrf.mxu1  ;;  %v5594_v34 = vpop.f32.mrf.mxu0 }
 0x410   : > { %8700 = vst [vmem:[#allocation15_spill] sm:$0xff] %v8311_v54  ;;  %v3797_v25 = vadd.f32 %v5593_v53, %v8121_v4 }
 0x411   : > { %v8316_v48 = vpop.f32.mrf.mxu1  ;;  %v5595_v43 = vpop.f32.mrf.mxu0 }
 0x412   : > { %v5596_v8 = vadd.f32 %v5595_v43, %v5594_v34  ;;  %v8319_v49 = vadd.f32 %v8203_v46, %v3797_v25  ;;  %v5642_v46 = vadd.f32 %v8211_v56, %v8206_v27 }
 0x413   : > { %v8321_v2 = vpop.f32.mrf.mxu1  ;;  %v5597_v39 = vpop.f32.mrf.mxu0 }
 0x414   : > { %8701 = vst [vmem:[#allocation16_spill] sm:$0xff] %v8319_v49  ;;  %v8324_v6 = vadd.f32 %v5596_v8, %v8119_v18  ;;  %v8340_v18 = vld [vmem:[%s8567_s4] ss:$0 sm:$0xff]  ;;  %v6267_v49 = vld [vmem:[#allocation2 + $0x31] sm:$0xff] }
 0x415   : > { %v8326_v58 = vpop.f32.mrf.mxu1  ;;  %v5598_v12 = vpop.f32.mrf.mxu0 }
 0x416   : > { %8702 = vst [vmem:[#allocation17_spill] sm:$0xff] %v8324_v6  ;;  %v5599_v4 = vadd.f32 %v5598_v12, %v5597_v39 }
 0x417   : > { %v8330_v53 = vpop.f32.mrf.mxu1  ;;  %v6018_v54 = vpop.f32.mrf.mxu0 }
 0x418   : > { %v8335_v34 = vadd.f32 %v5599_v4, %v8123_v26  ;;  %v4386_v25 = vadd.f32 %v6018_v54, %v5648_v44  ;;  %v5645_v26 = vadd.f32 %v8218_v40, %v8214_v22  ;;  %v5660_v22 = vadd.f32 %v8257_v63, %v8252_v23 }
 0x419   : > { %v8342_v43 = vpop.f32.mrf.mxu1  ;;  %v4377_v8 = vpop.f32.mrf.mxu0 }
 0x41a   : > { %8703 = vst [vmem:[#allocation18_spill] sm:$0xff] %v8335_v34  ;;  %v4506_v20 = vadd.f32 %v4386_v25, %v8133_v35  ;;  %v4378_v39 = vadd.f32 %v5642_v46, %v4377_v8  ;;  %v5654_v46 = vadd.f32 %v8241_v17, %v8236_v14  ;;  %v6268_v8 = vld [vmem:[#allocation2 + $0x19] sm:$0xff] }
 0x41b   : > { %v8347_v12 = vpop.f32.mrf.mxu1  ;;  %v6019_v27 = vpop.f32.mrf.mxu0  ;;  %v6269_v17 = vld [vmem:[#allocation2 + $0x39] sm:$0xff] }
 0x41c   : > { %v4545_v56 = vadd.f32 %v8340_v18, %v4506_v20  ;;  %v4504_v54 = vadd.f32 %v4378_v39, %v8128_v28  ;;  %v4389_v44 = vadd.f32 %v6019_v27, %v5651_v61 }
 0x41d   : > { %v8353_v4 = vpop.f32.mrf.mxu1  ;;  %v4380_v34 = vpop.f32.mrf.mxu0 }
 0x41e   : > { %v4577_v6 = vadd.f32 %v6267_v49, %v4545_v56  ;;  %v4543_v35 = vadd.f32 %v8340_v18, %v4504_v54  ;;  %v4507_v37 = vadd.f32 %v4389_v44, %v8136_v30  ;;  %v4381_v52 = vadd.f32 %v5645_v26, %v4380_v34 }
 0x41f   : > { %v8361_v40 = vpop.f32.mrf.mxu1  ;;  %v6022_v28 = vpop.f32.mrf.mxu0  ;;  %v5657_v54 = vadd.f32 %v8249_v24, %v8244_v55 }
 0x420   : > { %v4609_v25 = vmax.f32 %v4577_v6, 0.0  ;;  %v4575_v61 = vadd.f32 %v6268_v8, %v4543_v35  ;;  %v4546_v49 = vadd.f32 %v8340_v18, %v4507_v37  ;;  %v4505_v20 = vadd.f32 %v4381_v52, %v8130_v7  ;;  %v6270_v35 = vld [vmem:[#allocation2 + $0x21] sm:$0xff] }
 0x421   : > { %v4402_v39 = vadd.f32 %v6022_v28, %v5660_v22  ;;  %v8365_v30 = vpop.f32.mrf.mxu1  ;;  %v4393_v34 = vpop.f32.mrf.mxu0  ;;  %v5663_v6 = vadd.f32 %v8265_v32, %v8260_v42 }
 0x422   : > { %4641 = vst [vmem:[%s6632_s26 + $0x10] sm:$0xff] %v4609_v25  ;;  %v4607_v14 = vmax.f32 %v4575_v61, 0.0  ;;  %v4578_v27 = vadd.f32 %v6269_v17, %v4546_v49  ;;  %v4544_v23 = vadd.f32 %v8340_v18, %v4505_v20  ;;  %v4394_v63 = vadd.f32 %v5654_v46, %v4393_v34  ;;  %v6271_v25 = vld [vmem:[#allocation2 + $0x61] sm:$0xff] }
 0x423   : > { %v4510_v26 = vadd.f32 %v4402_v39, %v8150_v1  ;;  %v8372_v56 = vpop.f32.mrf.mxu1  ;;  %v6023_v7 = vpop.f32.mrf.mxu0  ;;  %v5672_v1 = vadd.f32 %v8289_v9, %v8284_v60  ;;  %v5666_v20 = vadd.f32 %v8273_v10, %v8268_v31  ;;  %v6272_v39 = vld [vmem:[#allocation2 + $0x49] sm:$0xff]  ;;  %v5675_v31 = vadd.f32 %v8297_v33, %v8292_v3 }
 0x424   : > { %4639 = vst [vmem:[%s6632_s26] sm:$0xff] %v4607_v14  ;;  %v4610_v44 = vmax.f32 %v4578_v27, 0.0  ;;  %v4576_v37 = vadd.f32 %v6270_v35, %v4544_v23  ;;  %v4508_v52 = vadd.f32 %v4394_v63, %v8141_v11  ;;  %v4405_v22 = vadd.f32 %v6023_v7, %v5663_v6  ;;  %v6273_v10 = vld [vmem:[#allocation2 + $0x69] sm:$0xff]  ;;  %v6274_v35 = vld [vmem:[#allocation2 + $0x51] sm:$0xff] }
 0x425   : > { %v4549_v46 = vadd.f32 %v8340_v18, %v4510_v26  ;;  %v8379_v28 = vpop.f32.mrf.mxu1  ;;  %v4396_v42 = vpop.f32.mrf.mxu0 }
 0x426   : > { %4642 = vst [vmem:[%s6632_s26 + $0x18] sm:$0xff] %v4610_v44  ;;  %v4608_v32 = vmax.f32 %v4576_v37, 0.0  ;;  %v4547_v55 = vadd.f32 %v8340_v18, %v4508_v52  ;;  %v4397_v24 = vadd.f32 %v5657_v54, %v4396_v42  ;;  %v4511_v61 = vadd.f32 %v4405_v22, %v8155_v38 }
 0x427   : > { %v4581_v8 = vadd.f32 %v6271_v25, %v4549_v46  ;;  %v8386_v11 = vpop.f32.mrf.mxu1  ;;  %v6026_v49 = vpop.f32.mrf.mxu0  ;;  %v5669_v44 = vadd.f32 %v8281_v5, %v8276_v50  ;;  %v5684_v5 = vadd.f32 %v8321_v2, %v8316_v48 }
 0x428   : > { %4640 = vst [vmem:[%s6632_s26 + $0x8] sm:$0xff] %v4608_v32  ;;  %v4579_v34 = vadd.f32 %v6272_v39, %v4547_v55  ;;  %v4509_v60 = vadd.f32 %v4397_v24, %v8145_v41  ;;  %v4418_v9 = vadd.f32 %v6026_v49, %v5672_v1  ;;  %v4550_v17 = vadd.f32 %v8340_v18, %v4511_v61  ;;  %v6275_v1 = vld [vmem:[#allocation2 + $0x91] sm:$0xff]  ;;  %v6276_v49 = vld [vmem:[#allocation2 + $0x79] sm:$0xff] }
 0x429   : > { %v4613_v14 = vmax.f32 %v4581_v8, 0.0  ;;  %v8393_v27 = vpop.f32.mrf.mxu1  ;;  %v4409_v38 = vpop.f32.mrf.mxu0  ;;  %v5678_v8 = vadd.f32 %v8305_v51, %v8300_v0  ;;  %v6277_v51 = vld [vmem:[#allocation2 + $0x99] sm:$0xff] }
 0x42a   : > { %v4611_v23 = vmax.f32 %v4579_v34, 0.0  ;;  %v4548_v63 = vadd.f32 %v8340_v18, %v4509_v60  ;;  %v4514_v6 = vadd.f32 %v4418_v9, %v8172_v13  ;;  %v4410_v26 = vadd.f32 %v5666_v20, %v4409_v38 }
 0x42b   : > { %4645 = vst [vmem:[%s6632_s26 + $0x30] sm:$0xff] %v4613_v14  ;;  %v4582_v41 = vadd.f32 %v6273_v10, %v4550_v17  ;;  %v8400_v7 = vpop.f32.mrf.mxu1  ;;  %v6027_v54 = vpop.f32.mrf.mxu0 }
 0x42c   : > { %4643 = vst [vmem:[%s6632_s26 + $0x20] sm:$0xff] %v4611_v23  ;;  %v4580_v37 = vadd.f32 %v6274_v35, %v4548_v63  ;;  %v4553_v52 = vadd.f32 %v8340_v18, %v4514_v6  ;;  %v4512_v13 = vadd.f32 %v4410_v26, %v8160_v45  ;;  %v4421_v3 = vadd.f32 %v6027_v54, %v5675_v31  ;;  %v6278_v6 = vld [vmem:[#allocation2 + $0x81] sm:$0xff] }
 0x42d   : > { %v4614_v46 = vmax.f32 %v4582_v41, 0.0  ;;  %v8407_v33 = vpop.f32.mrf.mxu1  ;;  %v4412_v22 = vpop.f32.mrf.mxu0  ;;  %v5681_v63 = vadd.f32 %v8313_v59, %v8308_v19  ;;  %v5696_v19 = vadd.f32 %v8372_v56, %v8365_v30  ;;  %v6279_v59 = vld [vmem:[#allocation2 + $0xc1] sm:$0xff] }
 0x42e   : > { %v4612_v42 = vmax.f32 %v4580_v37, 0.0  ;;  %v4585_v32 = vadd.f32 %v6275_v1, %v4553_v52  ;;  %v4551_v55 = vadd.f32 %v8340_v18, %v4512_v13  ;;  %v4413_v50 = vadd.f32 %v5669_v44, %v4412_v22 }
 0x42f   : > { %4646 = vst [vmem:[%s6632_s26 + $0x38] sm:$0xff] %v4614_v46  ;;  %v4515_v24 = vadd.f32 %v4421_v3, %v8179_v21  ;;  %v8414_v45 = vpop.f32.mrf.mxu1  ;;  %v6030_v25 = vpop.f32.mrf.mxu0  ;;  %v5687_v21 = vadd.f32 %v8330_v53, %v8326_v58  ;;  %v5690_v46 = vadd.f32 %v8347_v12, %v8342_v43  ;;  %v6280_v3 = vld [vmem:[#allocation2 + $0xa9] sm:$0xff]  ;;  %v5699_v12 = vadd.f32 %v8386_v11, %v8379_v28 }
 0x430   : > { %4644 = vst [vmem:[%s6632_s26 + $0x28] sm:$0xff] %v4612_v42  ;;  %v4617_v61 = vmax.f32 %v4585_v32, 0.0  ;;  %v4583_v20 = vadd.f32 %v6276_v49, %v4551_v55  ;;  %v4513_v39 = vadd.f32 %v4413_v50, %v8165_v62  ;;  %v4434_v48 = vadd.f32 %v6030_v25, %v5684_v5  ;;  %v6281_v50 = vld [vmem:[#allocation2 + $0xc9] sm:$0xff] }
 0x431   : > { %v4554_v34 = vadd.f32 %v8340_v18, %v4515_v24  ;;  %v5706_v2 = vpop.f32.mrf.mxu1  ;;  %v4425_v60 = vpop.f32.mrf.mxu0 }
 0x432   : > { %4649 = vst [vmem:[%s6632_s26 + $0x50] sm:$0xff] %v4617_v61  ;;  %v4615_v9 = vmax.f32 %v4583_v20, 0.0  ;;  %v4552_v14 = vadd.f32 %v8340_v18, %v4513_v39  ;;  %v4426_v0 = vadd.f32 %v5678_v8, %v4425_v60  ;;  %v4518_v38 = vadd.f32 %v4434_v48, %v8201_v15  ;;  %v6282_v20 = vld [vmem:[#allocation2 + $0xb1] sm:$0xff] }
 0x433   : > { %v4586_v17 = vadd.f32 %v6277_v51, %v4554_v34  ;;  %v5707_v23 = vpop.f32.mrf.mxu1  ;;  %v6031_v62 = vpop.f32.mrf.mxu0  ;;  %v5693_v61 = vadd.f32 %v8361_v40, %v8353_v4  ;;  %v6283_v4 = vld [vmem:[#allocation2 + $0xf1] sm:$0xff] }
 0x434   : > { %4647 = vst [vmem:[%s6632_s26 + $0x40] sm:$0xff] %v4615_v9  ;;  %v4584_v26 = vadd.f32 %v6278_v6, %v4552_v14  ;;  %v4516_v58 = vadd.f32 %v4426_v0, %v8186_v47  ;;  %v4437_v53 = vadd.f32 %v6031_v62, %v5687_v21  ;;  %v4557_v10 = vadd.f32 %v8340_v18, %v4518_v38  ;;  %v8704_v0 = vld [vmem:[#allocation23_spill] sm:$0xff]  ;;  %v6284_v62 = vld [vmem:[#allocation2 + $0xd9] sm:$0xff] }
 0x435   : > { %v4618_v31 = vmax.f32 %v4586_v17, 0.0  ;;  %v8431_v41 = vpop.f32.mrf.mxu1  ;;  %v4428_v54 = vpop.f32.mrf.mxu0  ;;  %v5708_v21 = vadd.f32 %v5707_v23, %v5706_v2  ;;  %v8705_v6 = vld [vmem:[#allocation22_spill] sm:$0xff] }
 0x436   : > { %v4616_v15 = vmax.f32 %v4584_v26, 0.0  ;;  %v4555_v44 = vadd.f32 %v8340_v18, %v4516_v58  ;;  %v4519_v35 = vadd.f32 %v4437_v53, %v8209_v57  ;;  %v4429_v37 = vadd.f32 %v5681_v63, %v4428_v54 }
 0x437   : > { %4650 = vst [vmem:[%s6632_s26 + $0x58] sm:$0xff] %v4618_v31  ;;  %v4589_v47 = vadd.f32 %v6279_v59, %v4557_v10  ;;  %v5710_v52 = vpop.f32.mrf.mxu1  ;;  %v6034_v13 = vpop.f32.mrf.mxu0 }
 0x438   : > { %4648 = vst [vmem:[%s6632_s26 + $0x48] sm:$0xff] %v4616_v15  ;;  %v4587_v22 = vadd.f32 %v6280_v3, %v4555_v44  ;;  %v4558_v42 = vadd.f32 %v8340_v18, %v4519_v35  ;;  %v4517_v57 = vadd.f32 %v4429_v37, %v8193_v36  ;;  %v4450_v32 = vadd.f32 %v6034_v13, %v5696_v19  ;;  %v8706_v15 = vld [vmem:[#allocation26_spill] sm:$0xff] }
 0x439   : > { %v4621_v1 = vmax.f32 %v4589_v47, 0.0  ;;  %v8443_v30 = vpop.f32.mrf.mxu1  ;;  %v4441_v56 = vpop.f32.mrf.mxu0  ;;  %v5705_v47 = vadd.f32 %v8414_v45, %v8407_v33  ;;  %v6286_v13 = vld [vmem:[#allocation2 + $0xe1] sm:$0xff]  ;;  %v8708_v45 = vld [vmem:[#allocation28_spill] sm:$0xff] }
 0x43a   : > { %v4619_v55 = vmax.f32 %v4587_v22, 0.0  ;;  %v4590_v5 = vadd.f32 %v6281_v50, %v4558_v42  ;;  %v4556_v24 = vadd.f32 %v8340_v18, %v4517_v57  ;;  %v4442_v43 = vadd.f32 %v5690_v46, %v4441_v56  ;;  %v8707_v22 = vld [vmem:[#allocation24_spill] sm:$0xff]  ;;  %v6287_v56 = vld [vmem:[#allocation2 + $0x121] sm:$0xff] }
 0x43b   : > { %4653 = vst [vmem:[%s6632_s26 + $0x70] sm:$0xff] %v4621_v1  ;;  %v4522_v25 = vadd.f32 %v4450_v32, %v8231_v29  ;;  %v5713_v36 = vpop.f32.mrf.mxu1  ;;  %v6035_v8 = vpop.f32.mrf.mxu0 }
 0x43c   : > { %4651 = vst [vmem:[%s6632_s26 + $0x60] sm:$0xff] %v4619_v55  ;;  %v4622_v49 = vmax.f32 %v4590_v5, 0.0  ;;  %v4588_v39 = vadd.f32 %v6282_v20, %v4556_v24  ;;  %v4520_v34 = vadd.f32 %v4442_v43, %v8216_v16  ;;  %v4453_v60 = vadd.f32 %v6035_v8, %v5699_v12  ;;  %v8709_v20 = vld [vmem:[#allocation25_spill] sm:$0xff] }
 0x43d   : > { %v4561_v48 = vadd.f32 %v8340_v18, %v4522_v25  ;;  %v8455_v28 = vpop.f32.mrf.mxu1  ;;  %v4444_v11 = vpop.f32.mrf.mxu0  ;;  %v5702_v16 = vadd.f32 %v8400_v7, %v8393_v27  ;;  %v5711_v27 = vadd.f32 %v5710_v52, %v8431_v41  ;;  %v6285_v7 = vld [vmem:[#allocation2 + $0xf9] sm:$0xff]  ;;  %v5714_v25 = vadd.f32 %v5713_v36, %v8443_v30  ;;  %v8710_v36 = vld [vmem:[#allocation27_spill] sm:$0xff] }
 0x43e   : > { %4654 = vst [vmem:[%s6632_s26 + $0x78] sm:$0xff] %v4622_v49  ;;  %v4620_v29 = vmax.f32 %v4588_v39, 0.0  ;;  %v4559_v9 = vadd.f32 %v8340_v18, %v4520_v34  ;;  %v4445_v14 = vadd.f32 %v5693_v61, %v4444_v11  ;;  %v4523_v51 = vadd.f32 %v4453_v60, %v8704_v0  ;;  %v6288_v61 = vld [vmem:[#allocation2 + $0x109] sm:$0xff] }
 0x43f   : > { %v4593_v40 = vadd.f32 %v6283_v4, %v4561_v48  ;;  %v5716_v17 = vpop.f32.mrf.mxu1  ;;  %v6038_v38 = vpop.f32.mrf.mxu0  ;;  %v6289_v4 = vld [vmem:[#allocation2 + $0x129] sm:$0xff] }
 0x440   : > { %4652 = vst [vmem:[%s6632_s26 + $0x68] sm:$0xff] %v4620_v29  ;;  %v4591_v63 = vadd.f32 %v6284_v62, %v4559_v9  ;;  %v4521_v2 = vadd.f32 %v4445_v14, %v8705_v6  ;;  %v4466_v23 = vadd.f32 %v6038_v38, %v5708_v21  ;;  %v4562_v58 = vadd.f32 %v8340_v18, %v4523_v51 }
 0x441   : > { %v4625_v26 = vmax.f32 %v4593_v40, 0.0  ;;  %v5718_v53 = vpop.f32.mrf.mxu1  ;;  %v4457_v31 = vpop.f32.mrf.mxu0  ;;  %v5717_v38 = vadd.f32 %v5716_v17, %v8455_v28  ;;  %v6291_v28 = vld [vmem:[#allocation2 + $0x151] sm:$0xff] }
 0x442   : > { %v4623_v10 = vmax.f32 %v4591_v63, 0.0  ;;  %v4560_v54 = vadd.f32 %v8340_v18, %v4521_v2  ;;  %v4526_v44 = vadd.f32 %v4466_v23, %v8706_v15  ;;  %v4458_v35 = vadd.f32 %v5702_v16, %v4457_v31  ;;  %v6290_v16 = vld [vmem:[#allocation2 + $0x111] sm:$0xff] }
 0x443   : > { %4657 = vst [vmem:[%s6632_s26 + $0x90] sm:$0xff] %v4625_v26  ;;  %v4594_v37 = vadd.f32 %v6285_v7, %v4562_v58  ;;  %v5719_v19 = vpop.f32.mrf.mxu1  ;;  %v6039_v59 = vpop.f32.mrf.mxu0  ;;  %v8711_v63 = vld [vmem:[#allocation29_spill] sm:$0xff] }
 0x444   : > { %4655 = vst [vmem:[%s6632_s26 + $0x80] sm:$0xff] %v4623_v10  ;;  %v4592_v46 = vadd.f32 %v6286_v13, %v4560_v54  ;;  %v4565_v3 = vadd.f32 %v8340_v18, %v4526_v44  ;;  %v4524_v42 = vadd.f32 %v4458_v35, %v8707_v22  ;;  %v4469_v1 = vadd.f32 %v6039_v59, %v5711_v27  ;;  %v8712_v54 = vld [vmem:[#allocation14_spill] sm:$0xff] }
 0x445   : > { %v4626_v57 = vmax.f32 %v4594_v37, 0.0  ;;  %v5721_v41 = vpop.f32.mrf.mxu1  ;;  %v4460_v52 = vpop.f32.mrf.mxu0  ;;  %v5720_v33 = vadd.f32 %v5719_v19, %v5718_v53  ;;  %v6292_v7 = vld [vmem:[#allocation2 + $0x139] sm:$0xff] }
 0x446   : > { %v4624_v32 = vmax.f32 %v4592_v46, 0.0  ;;  %v4597_v55 = vadd.f32 %v6287_v56, %v4565_v3  ;;  %v4563_v50 = vadd.f32 %v8340_v18, %v4524_v42  ;;  %v4461_v5 = vadd.f32 %v5705_v47, %v4460_v52  ;;  %v8713_v47 = vld [vmem:[#allocation30_spill] sm:$0xff] }
 0x447   : > { %4658 = vst [vmem:[%s6632_s26 + $0x98] sm:$0xff] %v4626_v57  ;;  %v4527_v24 = vadd.f32 %v4469_v1, %v8708_v45  ;;  %v5722_v43 = vpop.f32.mrf.mxu1  ;;  %v6042_v12 = vpop.f32.mrf.mxu0  ;;  %v6293_v57 = vld [vmem:[#allocation2 + $0x159] sm:$0xff]  ;;  %v8714_v45 = vld [vmem:[#allocation15_spill] sm:$0xff] }
 0x448   : > { %4656 = vst [vmem:[%s6632_s26 + $0x88] sm:$0xff] %v4624_v32  ;;  %v4629_v8 = vmax.f32 %v4597_v55, 0.0  ;;  %v4595_v49 = vadd.f32 %v6288_v61, %v4563_v50  ;;  %v4525_v39 = vadd.f32 %v4461_v5, %v8709_v20  ;;  %v4482_v48 = vadd.f32 %v6042_v12, %v5720_v33  ;;  %v6294_v5 = vld [vmem:[#allocation2 + $0x141] sm:$0xff]  ;;  %v8715_v12 = vld [vmem:[#allocation17_spill] sm:$0xff] }
 0x449   : > { %v4566_v34 = vadd.f32 %v8340_v18, %v4527_v24  ;;  %v5724_v60 = vpop.f32.mrf.mxu1  ;;  %v4473_v11 = vpop.f32.mrf.mxu0  ;;  %v5723_v9 = vadd.f32 %v5722_v43, %v5721_v41 }
 0x44a   : > { %4661 = vst [vmem:[%s6632_s26 + $0xb0] sm:$0xff] %v4629_v8  ;;  %v4627_v21 = vmax.f32 %v4595_v49, 0.0  ;;  %v4564_v29 = vadd.f32 %v8340_v18, %v4525_v39  ;;  %v4474_v14 = vadd.f32 %v5714_v25, %v4473_v11  ;;  %v4530_v40 = vadd.f32 %v4482_v48, %v8710_v36  ;;  %v8716_v25 = vld [vmem:[#allocation20_spill] sm:$0xff]  ;;  %v8719_v36 = vld [vmem:[#allocation21_spill] sm:$0xff] }
 0x44b   : > { %v4598_v30 = vadd.f32 %v6289_v4, %v4566_v34  ;;  %v5725_v0 = vpop.f32.mrf.mxu1  ;;  %v6043_v51 = vpop.f32.mrf.mxu0  ;;  %v3963_v8 = vadd.f32 %v8716_v25, %v8715_v12  ;;  %v6295_v11 = vld [vmem:[#allocation2 + $0x169] sm:$0xff] }
 0x44c   : > { %4659 = vst [vmem:[%s6632_s26 + $0xa0] sm:$0xff] %v4627_v21  ;;  %v4596_v62 = vadd.f32 %v6290_v16, %v4564_v29  ;;  %v4528_v6 = vadd.f32 %v4474_v14, %v8711_v63  ;;  %v4485_v2 = vadd.f32 %v6043_v51, %v5723_v9  ;;  %v4569_v26 = vadd.f32 %v8340_v18, %v4530_v40  ;;  %v8717_v9 = vld [vmem:[#allocation16_spill] sm:$0xff] }
 0x44d   : > { %v4630_v23 = vmax.f32 %v4598_v30, 0.0  ;;  %v5727_v58 = vpop.f32.mrf.mxu1  ;;  %v4476_v53 = vpop.f32.mrf.mxu0  ;;  %v5726_v19 = vadd.f32 %v5725_v0, %v5724_v60  ;;  %v8718_v30 = vld [vmem:[#allocation18_spill] sm:$0xff] }
 0x44e   : > { %v4628_v31 = vmax.f32 %v4596_v62, 0.0  ;;  %v4567_v10 = vadd.f32 %v8340_v18, %v4528_v6  ;;  %v4531_v15 = vadd.f32 %v4485_v2, %v8712_v54  ;;  %v4477_v44 = vadd.f32 %v5717_v38, %v4476_v53  ;;  %v6296_v62 = vld [vmem:[#allocation2 + $0x181] sm:$0xff]  ;;  %v6297_v6 = vld [vmem:[#allocation2 + $0x171] sm:$0xff] }
 0x44f   : > { %4662 = vst [vmem:[%s6632_s26 + $0xb8] sm:$0xff] %v4630_v23  ;;  %v4601_v17 = vadd.f32 %v6291_v28, %v4569_v26  ;;  %v5728_v35 = vpop.f32.mrf.mxu1  ;;  %v6046_v27 = vpop.f32.mrf.mxu0  ;;  %v3966_v40 = vadd.f32 %v8719_v36, %v8718_v30 }
 0x450   : > { %4660 = vst [vmem:[%s6632_s26 + $0xa8] sm:$0xff] %v4628_v31  ;;  %v4599_v37 = vadd.f32 %v6292_v7, %v4567_v10  ;;  %v4570_v59 = vadd.f32 %v8340_v18, %v4531_v15  ;;  %v4529_v13 = vadd.f32 %v4477_v44, %v8713_v47  ;;  %v5729_v32 = vadd.f32 %v5728_v35, %v5727_v58  ;;  %v6298_v31 = vld [vmem:[#allocation2 + $0x189] sm:$0xff] }
 0x451   : > { %v4633_v46 = vmax.f32 %v4601_v17, 0.0  ;;  %v5730_v3 = vpop.f32.mrf.mxu1  ;;  %v4489_v22 = vpop.f32.mrf.mxu0 }
 0x452   : > { %v4631_v42 = vmax.f32 %v4599_v37, 0.0  ;;  %v4602_v1 = vadd.f32 %v6293_v57, %v4570_v59  ;;  %v4568_v41 = vadd.f32 %v8340_v18, %v4529_v13  ;;  %v4490_v52 = vadd.f32 %v5726_v19, %v4489_v22 }
 0x453   : > { %4665 = vst [vmem:[%s6632_s26 + $0xd0] sm:$0xff] %v4633_v46  ;;  %v5731_v56 = vpop.f32.mrf.mxu1  ;;  %v6047_v55 = vpop.f32.mrf.mxu0 }
 0x454   : > { %4663 = vst [vmem:[%s6632_s26 + $0xc0] sm:$0xff] %v4631_v42  ;;  %v4634_v50 = vmax.f32 %v4602_v1, 0.0  ;;  %v4600_v33 = vadd.f32 %v6294_v5, %v4568_v41  ;;  %v4532_v24 = vadd.f32 %v4490_v52, %v8714_v45  ;;  %v5732_v43 = vadd.f32 %v5731_v56, %v5730_v3 }
 0x455   : > { %v5733_v61 = vpop.f32.mrf.mxu1  ;;  %v4492_v49 = vpop.f32.mrf.mxu0 }
 0x456   : > { %4666 = vst [vmem:[%s6632_s26 + $0xd8] sm:$0xff] %v4634_v50  ;;  %v4632_v20 = vmax.f32 %v4600_v33, 0.0  ;;  %v4571_v39 = vadd.f32 %v8340_v18, %v4532_v24  ;;  %v4498_v34 = vadd.f32 %v6046_v27, %v5732_v43  ;;  %v4493_v48 = vadd.f32 %v5729_v32, %v4492_v49 }
 0x457   : > { %v5734_v60 = vpop.f32.mrf.mxu1 }
 0x458   : > { %4664 = vst [vmem:[%s6632_s26 + $0xc8] sm:$0xff] %v4632_v20  ;;  %v4603_v21 = vadd.f32 %v6295_v11, %v4571_v39  ;;  %v4534_v29 = vadd.f32 %v4498_v34, %v3963_v8  ;;  %v4533_v14 = vadd.f32 %v4493_v48, %v8717_v9  ;;  %v5735_v4 = vadd.f32 %v5734_v60, %v5733_v61 }
 0x45a   : > { %v4635_v0 = vmax.f32 %v4603_v21, 0.0  ;;  %v4573_v51 = vadd.f32 %v8340_v18, %v4534_v29  ;;  %v4572_v38 = vadd.f32 %v8340_v18, %v4533_v14  ;;  %v4501_v16 = vadd.f32 %v6047_v55, %v5735_v4 }
 0x45c   : > { %4667 = vst [vmem:[%s6632_s26 + $0xe0] sm:$0xff] %v4635_v0  ;;  %v4605_v63 = vadd.f32 %v6296_v62, %v4573_v51  ;;  %v4604_v2 = vadd.f32 %v6297_v6, %v4572_v38  ;;  %v4535_v23 = vadd.f32 %v4501_v16, %v3966_v40 }
 0x45e   : > { %v4637_v26 = vmax.f32 %v4605_v63, 0.0  ;;  %v4636_v58 = vmax.f32 %v4604_v2, 0.0  ;;  %v4574_v53 = vadd.f32 %v8340_v18, %v4535_v23 }
 0x460   : > { %4669 = vst [vmem:[%s6632_s26 + $0xf0] sm:$0xff] %v4637_v26  ;;  %4668 = vst [vmem:[%s6632_s26 + $0xe8] sm:$0xff] %v4636_v58  ;;  %v4606_v10 = vadd.f32 %v6298_v31, %v4574_v53 }
 0x462   : > { %v4638_v54 = vmax.f32 %v4606_v10, 0.0 }
 0x464   : > { %4670 = vst [vmem:[%s6632_s26 + $0xf8] sm:$0xff] %v4638_v54 }
 0x465   : > { %6392 = shalt.err (!%p6389_p0)
}
 0x466   : > { %s6393_s26 = scalar_lea.hbm %s8517_s14, 4096  ;;  %s6397_s11 = scalar_lea.hbm %s8568_s5, 8192 }
 0x467   : > { %p6394_p11 = scmp.ne.s32.totalorder %s8517_s14, %s6393_s26  ;;  %p6398_p9 = scmp.lt.s32.totalorder %s8517_s14, %s8568_s5 }
 0x468   : > { %p6399_p5 = scmp.lt.s32.totalorder %s6397_s11, %s6393_s26 }
 0x469   : > { %p6395_p3 = pnand %p6394_p11, %p8720_p1 }
 0x46a   : > { %p6400_p12 = por %p6399_p5, %p6398_p9 }
 0x46b   : > { %p6396_p4 = pneg %p6395_p3 }
 0x46d   : > { %p6401_p8 = pnand %p6400_p12, %p6396_p4 }
 0x46f   : > { %6404 = shalt.err (!%p6401_p8)
}
 0x470   : > { %s6458_s6 = smov 128   ;;  %s6459_s9 = smov 8  }
 0x471   : > { %6058 = dma.vmem_to_hbm [thread:$0]  (%p8720_p1), %s8519_s7, 4096, %s8517_s14, %s4672_s17, %s6458_s6, %s6458_s6, %s6459_s9  }
 0x472 PF: > { %s4700_s13 = sand.u32 1, %s6435_s18   ;;  %p8721_p2 = scmp.ne.s32.totalorder %s8622_s25, 0 }
 0x473   : > { %p8722_p6 = scmp.ge.s32.totalorder %s6447_s21, 2  ;;  %s4701_s29 = scalar_lea.sflag [#allocation6], %s4700_s13 }
 0x475   : > { %p6072_p13 = pnand %p8722_p6, %p8721_p2 }
 0x477   : > { %p6073_p7 = pneg %p6072_p13 }
 0x479   : > { %6430 = dma.done.wait (%p6073_p7), %s4701_s29, 4096  }
 0x47a   : > { %6432 = vsyncadd (%p6073_p7), %s4701_s29, 4294963200  ;;  %p19_p10 = scmp.ge.s32.totalorder %s6563_s15, 4   ;;  %s8723_s18 = smov %s6439_s19 }
 0x47b   : > { %s8724_s19 = smov %s6443_s20  ;;  %s8725_s20 = smov %s6579_s27 }
 0x47c   : > { %s8726_s21 = smov %s6563_s15  ;;  %21 = sbr.rel (!%p19_p10) target bundleno = 6 (0x6), region = 103 }
 0x481   :  { %4706 = vsyncpa [#allocation5], 1 }
 0x482   :  { %4708 = vsyncpa [#allocation5 + $0x1], 1 }
 0x483   :  { %4709 = vsyncpa [#allocation8], 1 }
 0x484   :  { %4710 = vsyncpa [#allocation6], 1 }
 0x485   :  { %4712 = vsyncpa [#allocation6 + $0x1], 1 }

</bundles_post_ra>
